<compile_context>
chip_gen: v5e
topology: v5e:2x2
jax: 0.10.0
libtpu: 0.0.40
codegen_flags: <defaults>
</compile_context>

<pallas_src>
import jax
import jax.numpy as jnp
from jax.experimental import pallas as pl
from jax.experimental.pallas import tpu as pltpu

# ---- hyperparameters (scaled-down, consistent with the PyTorch module) -------
VOCAB_SIZE = 65                    # char-level vocab
N_EMBED    = 96                    # n_embedding (scaled down, divisible by n_head)
N_HEAD     = 6
HEAD_SIZE  = N_EMBED // N_HEAD     # 16
N_BLOCKS   = 2                     # scaled down from 6
BLOCK_SIZE = 16                    # max context (scaled down from 256)
FF_DIM     = 4 * N_EMBED           # 384 (already a multiple of 128)
LN_EPS     = 1e-5

# lane-padded sizes (dense, unmasked vector stores / whole 128x128 MXU tiles)
C_PAD   = 128                      # embedding dim 96 -> 128
V_PAD   = 128                      # vocab 65 -> 128
NEG_BIG = -1e30                    # finite "minus infinity" for causal masking
assert C_PAD == V_PAD              # final-LN vectors and lm bias share one array


# ---- fused whole-model kernel -------------------------------------------------
def _make_gpt_kernel(batch, seq):
    bt = batch * seq
    inv_c = 1.0 / N_EMBED

    def kernel(ids_ref, tok_emb_ref, pos_emb_ref, wqkv_ref, wproj_ref,
               wff1_ref, bff1_ref, wff2_ref, vecs_ref, head_vecs_ref,
               wlm_ref, out_ref):
        # ---- token embedding gather (as a one-hot MXU matmul) + positional add
        ids = ids_ref[...]                                           # (bt, 1) i32
        vlane = jax.lax.broadcasted_iota(jnp.int32, (bt, V_PAD), 1)
        onehot = jnp.where(vlane == ids, 1.0, 0.0).astype(jnp.bfloat16)
        x = jnp.dot(onehot, tok_emb_ref[...],
                    preferred_element_type=jnp.float32)              # (bt, C_PAD)
        pos = jnp.concatenate([pos_emb_ref[0:seq, :]] * batch, axis=0)
        x = x + pos                                                   # padded lanes stay 0

        # ---- hoisted constants (built once, reused by every layer) ----
        lane = jax.lax.broadcasted_iota(jnp.int32, (bt, C_PAD), 1)
        ch_mask = (lane < N_EMBED).astype(jnp.float32)               # (bt, C_PAD)
        row = jax.lax.broadcasted_iota(jnp.int32, (1, seq, seq), 1)
        col = jax.lax.broadcasted_iota(jnp.int32, (1, seq, seq), 2)
        causal_bias = jnp.where(col <= row, 0.0, NEG_BIG).astype(jnp.float32)

        def layer_norm(h, w_, b_):
            # mean/var over the 96 true channels only (padded lanes of h are 0)
            mu = jnp.sum(h, axis=-1, keepdims=True) * inv_c
            d = (h - mu) * ch_mask
            var = jnp.sum(d * d, axis=-1, keepdims=True) * inv_c
            return d * jax.lax.rsqrt(var + LN_EPS) * w_ + b_          # pads stay 0

        def softmax_last(s):
            m = jnp.max(s, axis=-1, keepdims=True)
            e = jnp.exp(s - m)
            return e / jnp.sum(e, axis=-1, keepdims=True)             # exact division

        for l in range(N_BLOCKS):
            v6 = vecs_ref[l]                                          # (6, C_PAD)
            ln1_w, ln1_b = v6[0:1], v6[1:2]
            ln2_w, ln2_b = v6[2:3], v6[3:4]
            b_proj, b_ff2 = v6[4:5], v6[5:6]

            # --- multi-head causal self-attention on LN1(x) ---
            h = layer_norm(x, ln1_w, ln1_b)                           # (bt, C_PAD)
            # one wide fused QKV matmul (attention scale pre-folded into Q cols)
            qkv = jnp.dot(h.astype(jnp.bfloat16), wqkv_ref[l],
                          preferred_element_type=jnp.float32)         # (bt, 3*C_PAD)
            qkv3 = qkv.reshape(batch, seq, 3 * C_PAD)

            outs = []
            for hd in range(N_HEAD):
                o_q = hd * HEAD_SIZE
                q = qkv3[:, :, o_q:o_q + HEAD_SIZE]                   # (B, T, D)
                k = qkv3[:, :, C_PAD + o_q:C_PAD + o_q + HEAD_SIZE]
                v = qkv3[:, :, 2 * C_PAD + o_q:2 * C_PAD + o_q + HEAD_SIZE]
                s = jnp.einsum('btd,bsd->bts', q, k,
                               preferred_element_type=jnp.float32) + causal_bias
                p = softmax_last(s)
                outs.append(jnp.einsum('bts,bsd->btd', p, v,
                                       preferred_element_type=jnp.float32))
            outs.append(jnp.zeros((batch, seq, C_PAD - N_EMBED), jnp.float32))
            o_cat = jnp.concatenate(outs, axis=-1).reshape(bt, C_PAD)  # (bt, 128)
            # single 128-wide output projection (replaces 6 serialized dots+adds)
            att = jnp.dot(o_cat.astype(jnp.bfloat16), wproj_ref[l],
                          preferred_element_type=jnp.float32) + b_proj
            x = x + att                                               # residual 1

            # --- feed-forward on LN2(x) ---
            h2 = layer_norm(x, ln2_w, ln2_b)
            ff = jnp.dot(h2.astype(jnp.bfloat16), wff1_ref[l],
                         preferred_element_type=jnp.float32) + bff1_ref[l]
            ff = jnp.maximum(ff, 0.0)
            ff = jnp.dot(ff.astype(jnp.bfloat16), wff2_ref[l],
                         preferred_element_type=jnp.float32) + b_ff2
            x = x + ff                                                # residual 2

        # --- final LayerNorm + lm_head ---
        hv = head_vecs_ref[...]                                       # (3, 128)
        lnf_w, lnf_b, b_lm = hv[0:1], hv[1:2], hv[2:3]
        hf = layer_norm(x, lnf_w, lnf_b)
        out_ref[...] = jnp.dot(hf.astype(jnp.bfloat16), wlm_ref[...],
                               preferred_element_type=jnp.float32) + b_lm

    return kernel


# ---- wrapper ------------------------------------------------------------------
def gpt_forward_impl(tokens, params):
    B, T = tokens.shape
    ids = tokens.reshape(B * T, 1).astype(jnp.int32)     # gather now fused in-kernel

    logits_pad = pl.pallas_call(
        _make_gpt_kernel(B, T),
        out_shape=jax.ShapeDtypeStruct((B * T, V_PAD), jnp.float32),
        in_specs=[pl.BlockSpec(memory_space=pltpu.MemorySpace.VMEM)] * 11,
        out_specs=pl.BlockSpec(memory_space=pltpu.MemorySpace.VMEM),
    )(ids, params["tok_emb"], params["pos_emb"], params["wqkv"], params["wproj"],
      params["wff1"], params["bff1"], params["wff2"], params["vecs"],
      params["head_vecs"], params["wlm"])

    return logits_pad.reshape(B, T, V_PAD)[:, :, :VOCAB_SIZE]


gpt_forward = jax.jit(gpt_forward_impl)


# ---- deterministic parameter construction (padded + packed layout) -------------
def init_params(key):
    C, Cp, F = N_EMBED, C_PAD, FF_DIM
    V, Vp = VOCAB_SIZE, V_PAD
    H, D, L = N_HEAD, HEAD_SIZE, N_BLOCKS

    keys = iter(jax.random.split(key, 4 + 8 * L))

    def w(shape, scale=0.02):
        return (scale * jax.random.normal(next(keys), shape)).astype(jnp.float32)

    def pad2(a, r, c):
        return jnp.pad(a, ((0, r - a.shape[0]), (0, c - a.shape[1])))

    def pack_heads(wx):                       # (H, C, D) -> (Cp, Cp), head-major cols
        m = jnp.transpose(wx, (1, 0, 2)).reshape(C, H * D)
        return pad2(m, Cp, Cp)

    tok_emb = pad2(w((V, C)), Vp, Cp).astype(jnp.bfloat16)        # (128, 128)
    pos_emb = pad2(w((BLOCK_SIZE, C)), BLOCK_SIZE, Cp)            # (16, 128) f32

    ones_c = pad2(jnp.ones((1, C), jnp.float32), 1, Cp)           # LN weight: 1 real, 0 pad
    zeros_cp = jnp.zeros((1, Cp), jnp.float32)

    wqkv, wproj, wff1, bff1, wff2, vecs = [], [], [], [], [], []
    for _ in range(L):
        wq = w((H, C, D)) * (D ** -0.5)       # attention scale folded into Q weights
        wk = w((H, C, D))
        wv = w((H, C, D))
        wqkv.append(jnp.concatenate(
            [pack_heads(wq), pack_heads(wk), pack_heads(wv)], axis=1))   # (128, 384)

        wproj.append(pad2(w((C, C)), Cp, Cp))                            # (128, 128)
        wff1.append(pad2(w((C, F)), Cp, F))                              # (128, 384)
        bff1.append(jnp.zeros((1, F), jnp.float32))
        wff2.append(pad2(w((F, C)), F, Cp))                              # (384, 128)

        # packed per-layer vectors: [ln1_w, ln1_b, ln2_w, ln2_b, proj_bias, ff2_bias]
        vecs.append(jnp.concatenate(
            [ones_c, zeros_cp, ones_c, zeros_cp, zeros_cp, zeros_cp], axis=0))

    params = {
        "tok_emb": tok_emb,                                              # (128, 128) bf16
        "pos_emb": pos_emb,                                              # (16, 128)  f32
        "wqkv": jnp.stack(wqkv).astype(jnp.bfloat16),                    # (L, 128, 384)
        "wproj": jnp.stack(wproj).astype(jnp.bfloat16),                  # (L, 128, 128)
        "wff1": jnp.stack(wff1).astype(jnp.bfloat16),                    # (L, 128, 384)
        "bff1": jnp.stack(bff1),                                         # (L, 1, 384) f32
        "wff2": jnp.stack(wff2).astype(jnp.bfloat16),                    # (L, 384, 128)
        "vecs": jnp.stack(vecs),                                         # (L, 6, 128) f32
        # packed final vectors: [lnf_w, lnf_b, lm_head bias]  (C_PAD == V_PAD)
        "head_vecs": jnp.concatenate([ones_c, zeros_cp, zeros_cp], axis=0),  # (3, 128)
        "wlm": pad2(w((C, V)), Cp, Vp).astype(jnp.bfloat16),             # (128, 128)
    }
    return params


if __name__ == "__main__":
    key = jax.random.PRNGKey(0)
    pkey, dkey = jax.random.split(key)
    params = init_params(pkey)

    B, T = 2, BLOCK_SIZE                              # batch=2, seq=16
    tokens = jax.random.randint(dkey, (B, T), 0, VOCAB_SIZE, dtype=jnp.int32)

    logits = gpt_forward(tokens, params)
    jax.block_until_ready(logits)
    assert logits.shape == (B, T, VOCAB_SIZE)
    assert bool(jnp.all(jnp.isfinite(logits)))
    print("KERNEL_OK")
</pallas_src>

<mosaic_0001>
module attributes {stable_mosaic.version = 11 : i64} {
  func.func @kernel(%arg0: memref<32x1xi32, #tpu.memory_space<vmem>>, %arg1: memref<128x128xbf16, #tpu.memory_space<vmem>>, %arg2: memref<16x128xf32, #tpu.memory_space<vmem>>, %arg3: memref<2x128x384xbf16, #tpu.memory_space<vmem>>, %arg4: memref<2x128x128xbf16, #tpu.memory_space<vmem>>, %arg5: memref<2x128x384xbf16, #tpu.memory_space<vmem>>, %arg6: memref<2x1x384xf32, #tpu.memory_space<vmem>>, %arg7: memref<2x384x128xbf16, #tpu.memory_space<vmem>>, %arg8: memref<2x6x128xf32, #tpu.memory_space<vmem>>, %arg9: memref<3x128xf32, #tpu.memory_space<vmem>>, %arg10: memref<128x128xbf16, #tpu.memory_space<vmem>>, %arg11: memref<32x128xf32, #tpu.memory_space<vmem>>) attributes {dimension_semantics = [], scalar_prefetch = 0 : i64, scratch_operands = 0 : i64, tpu.core_type = #tpu.core_type<tc>} {
    %c0 = arith.constant 0 : index
    %c0_0 = arith.constant 0 : index
    %0 = vector.load %arg0[%c0, %c0_0] : memref<32x1xi32, #tpu.memory_space<vmem>>, vector<32x1xi32>
    %1 = tpu.iota {dimensions = array<i32: 1>} : vector<32x128xi32>
    %2 = vector.broadcast %0 : vector<32x1xi32> to vector<32x128xi32>
    %3 = arith.cmpi eq, %1, %2 : vector<32x128xi32>
    %cst = arith.constant 1.000000e+00 : f32
    %cst_1 = arith.constant 0.000000e+00 : f32
    %4 = vector.broadcast %cst : f32 to vector<32x128xf32>
    %5 = vector.broadcast %cst_1 : f32 to vector<32x128xf32>
    %6 = arith.select %3, %4, %5 : vector<32x128xi1>, vector<32x128xf32>
    %7 = arith.truncf %6 : vector<32x128xf32> to vector<32x128xbf16>
    %c0_2 = arith.constant 0 : index
    %c0_3 = arith.constant 0 : index
    %8 = vector.load %arg1[%c0_2, %c0_3] : memref<128x128xbf16, #tpu.memory_space<vmem>>, vector<128x128xbf16>
    %cst_4 = arith.constant dense<0.000000e+00> : vector<32x128xf32>
    %9 = tpu.matmul %7, %8, %cst_4 {dimension_numbers = #tpu.dot_dimension_numbers<[1], [0], [0], [1], [0, 0, 1, 1], [], []>} : vector<32x128xbf16>, vector<128x128xbf16>, vector<32x128xf32> -> vector<32x128xf32>
    %c0_5 = arith.constant 0 : index
    %c0_6 = arith.constant 0 : index
    %10 = vector.load %arg2[%c0_5, %c0_6] : memref<16x128xf32, #tpu.memory_space<vmem>>, vector<16x128xf32>
    %11 = tpu.concatenate %10, %10 in 0 : vector<16x128xf32>, vector<16x128xf32> -> vector<32x128xf32>
    %12 = arith.addf %9, %11 : vector<32x128xf32>
    %13 = tpu.iota {dimensions = array<i32: 1>} : vector<32x128xi32>
    %c96_i32 = arith.constant 96 : i32
    %14 = vector.broadcast %c96_i32 : i32 to vector<32x128xi32>
    %15 = arith.cmpi slt, %13, %14 : vector<32x128xi32>
    %16 = arith.extui %15 : vector<32x128xi1> to vector<32x128xi32>
    %17 = arith.sitofp %16 : vector<32x128xi32> to vector<32x128xf32>
    %18 = tpu.iota {dimensions = array<i32: 1>} : vector<1x16x16xi32>
    %19 = tpu.iota {dimensions = array<i32: 2>} : vector<1x16x16xi32>
    %20 = arith.cmpi sle, %19, %18 : vector<1x16x16xi32>
    %cst_7 = arith.constant 0.000000e+00 : f32
    %cst_8 = arith.constant -1.000000e+30 : f32
    %21 = vector.broadcast %cst_7 : f32 to vector<1x16x16xf32>
    %22 = vector.broadcast %cst_8 : f32 to vector<1x16x16xf32>
    %23 = arith.select %20, %21, %22 : vector<1x16x16xi1>, vector<1x16x16xf32>
    %c0_9 = arith.constant 0 : index
    %c0_10 = arith.constant 0 : index
    %c0_11 = arith.constant 0 : index
    %24 = vector.load %arg8[%c0_9, %c0_10, %c0_11] : memref<2x6x128xf32, #tpu.memory_space<vmem>>, vector<1x6x128xf32>
    %25 = vector.shape_cast %24 : vector<1x6x128xf32> to vector<6x128xf32>
    %26 = vector.extract_strided_slice %25 {offsets = [0, 0], sizes = [1, 128], strides = [1, 1]} : vector<6x128xf32> to vector<1x128xf32>
    %27 = vector.extract_strided_slice %25 {offsets = [1, 0], sizes = [1, 128], strides = [1, 1]} : vector<6x128xf32> to vector<1x128xf32>
    %28 = vector.extract_strided_slice %25 {offsets = [2, 0], sizes = [1, 128], strides = [1, 1]} : vector<6x128xf32> to vector<1x128xf32>
    %29 = vector.extract_strided_slice %25 {offsets = [3, 0], sizes = [1, 128], strides = [1, 1]} : vector<6x128xf32> to vector<1x128xf32>
    %30 = vector.extract_strided_slice %25 {offsets = [4, 0], sizes = [1, 128], strides = [1, 1]} : vector<6x128xf32> to vector<1x128xf32>
    %31 = vector.extract_strided_slice %25 {offsets = [5, 0], sizes = [1, 128], strides = [1, 1]} : vector<6x128xf32> to vector<1x128xf32>
    %cst_12 = arith.constant dense<0.000000e+00> : vector<32xf32>
    %32 = vector.multi_reduction <add>, %12, %cst_12 [1] : vector<32x128xf32> to vector<32xf32>
    %33 = vector.shape_cast %32 : vector<32xf32> to vector<32x1xf32>
    %cst_13 = arith.constant 0.010416667 : f32
    %34 = vector.broadcast %cst_13 : f32 to vector<32x1xf32>
    %35 = arith.mulf %33, %34 : vector<32x1xf32>
    %36 = vector.broadcast %35 : vector<32x1xf32> to vector<32x128xf32>
    %37 = arith.subf %12, %36 : vector<32x128xf32>
    %38 = arith.mulf %37, %17 : vector<32x128xf32>
    %39 = arith.mulf %38, %38 : vector<32x128xf32>
    %cst_14 = arith.constant dense<0.000000e+00> : vector<32xf32>
    %40 = vector.multi_reduction <add>, %39, %cst_14 [1] : vector<32x128xf32> to vector<32xf32>
    %41 = vector.shape_cast %40 : vector<32xf32> to vector<32x1xf32>
    %cst_15 = arith.constant 0.010416667 : f32
    %42 = vector.broadcast %cst_15 : f32 to vector<32x1xf32>
    %43 = arith.mulf %41, %42 : vector<32x1xf32>
    %cst_16 = arith.constant 9.99999974E-6 : f32
    %44 = vector.broadcast %cst_16 : f32 to vector<32x1xf32>
    %45 = arith.addf %43, %44 : vector<32x1xf32>
    %46 = math.rsqrt %45 : vector<32x1xf32>
    %47 = vector.broadcast %46 : vector<32x1xf32> to vector<32x128xf32>
    %48 = arith.mulf %38, %47 : vector<32x128xf32>
    %49 = vector.broadcast %26 : vector<1x128xf32> to vector<32x128xf32>
    %50 = arith.mulf %48, %49 : vector<32x128xf32>
    %51 = vector.broadcast %27 : vector<1x128xf32> to vector<32x128xf32>
    %52 = arith.addf %50, %51 : vector<32x128xf32>
    %53 = arith.truncf %52 : vector<32x128xf32> to vector<32x128xbf16>
    %c0_17 = arith.constant 0 : index
    %c0_18 = arith.constant 0 : index
    %c0_19 = arith.constant 0 : index
    %54 = vector.load %arg3[%c0_17, %c0_18, %c0_19] : memref<2x128x384xbf16, #tpu.memory_space<vmem>>, vector<1x128x384xbf16>
    %55 = vector.shape_cast %54 : vector<1x128x384xbf16> to vector<128x384xbf16>
    %cst_20 = arith.constant dense<0.000000e+00> : vector<32x384xf32>
    %56 = tpu.matmul %53, %55, %cst_20 {dimension_numbers = #tpu.dot_dimension_numbers<[1], [0], [0], [1], [0, 0, 1, 1], [], []>} : vector<32x128xbf16>, vector<128x384xbf16>, vector<32x384xf32> -> vector<32x384xf32>
    %57 = vector.shape_cast %56 : vector<32x384xf32> to vector<2x16x384xf32>
    %58 = vector.extract_strided_slice %57 {offsets = [0, 0, 0], sizes = [2, 16, 16], strides = [1, 1, 1]} : vector<2x16x384xf32> to vector<2x16x16xf32>
    %59 = vector.extract_strided_slice %57 {offsets = [0, 0, 128], sizes = [2, 16, 16], strides = [1, 1, 1]} : vector<2x16x384xf32> to vector<2x16x16xf32>
    %60 = vector.extract_strided_slice %57 {offsets = [0, 0, 256], sizes = [2, 16, 16], strides = [1, 1, 1]} : vector<2x16x384xf32> to vector<2x16x16xf32>
    "tpu.trace_start"() <{level = 10 : i32, message = "btd,bsd->bts"}> : () -> ()
    %cst_21 = arith.constant dense<0.000000e+00> : vector<2x16x16xf32>
    %61 = tpu.matmul %58, %59, %cst_21 {dimension_numbers = #tpu.dot_dimension_numbers<[2], [2], [1], [1], [0, 0, 0, 1, 1, 1], [0], [0]>} : vector<2x16x16xf32>, vector<2x16x16xf32>, vector<2x16x16xf32> -> vector<2x16x16xf32>
    "tpu.trace_stop"() : () -> ()
    %62 = vector.broadcast %23 : vector<1x16x16xf32> to vector<2x16x16xf32>
    %63 = arith.addf %61, %62 : vector<2x16x16xf32>
    %cst_22 = arith.constant dense<0xFF800000> : vector<2x16xf32>
    %64 = vector.multi_reduction <maximumf>, %63, %cst_22 [2] : vector<2x16x16xf32> to vector<2x16xf32>
    %65 = vector.shape_cast %64 : vector<2x16xf32> to vector<2x16x1xf32>
    %66 = vector.broadcast %65 : vector<2x16x1xf32> to vector<2x16x16xf32>
    %67 = arith.subf %63, %66 : vector<2x16x16xf32>
    %68 = math.exp %67 : vector<2x16x16xf32>
    %cst_23 = arith.constant dense<0.000000e+00> : vector<2x16xf32>
    %69 = vector.multi_reduction <add>, %68, %cst_23 [2] : vector<2x16x16xf32> to vector<2x16xf32>
    %70 = vector.shape_cast %69 : vector<2x16xf32> to vector<2x16x1xf32>
    %71 = vector.broadcast %70 : vector<2x16x1xf32> to vector<2x16x16xf32>
    %72 = arith.divf %68, %71 : vector<2x16x16xf32>
    "tpu.trace_start"() <{level = 10 : i32, message = "bts,bsd->btd"}> : () -> ()
    %cst_24 = arith.constant dense<0.000000e+00> : vector<2x16x16xf32>
    %73 = tpu.matmul %72, %60, %cst_24 {dimension_numbers = #tpu.dot_dimension_numbers<[2], [1], [1], [2], [0, 0, 0, 1, 1, 2], [0], [0]>} : vector<2x16x16xf32>, vector<2x16x16xf32>, vector<2x16x16xf32> -> vector<2x16x16xf32>
    "tpu.trace_stop"() : () -> ()
    %74 = vector.extract_strided_slice %57 {offsets = [0, 0, 16], sizes = [2, 16, 16], strides = [1, 1, 1]} : vector<2x16x384xf32> to vector<2x16x16xf32>
    %75 = vector.extract_strided_slice %57 {offsets = [0, 0, 144], sizes = [2, 16, 16], strides = [1, 1, 1]} : vector<2x16x384xf32> to vector<2x16x16xf32>
    %76 = vector.extract_strided_slice %57 {offsets = [0, 0, 272], sizes = [2, 16, 16], strides = [1, 1, 1]} : vector<2x16x384xf32> to vector<2x16x16xf32>
    "tpu.trace_start"() <{level = 10 : i32, message = "btd,bsd->bts"}> : () -> ()
    %cst_25 = arith.constant dense<0.000000e+00> : vector<2x16x16xf32>
    %77 = tpu.matmul %74, %75, %cst_25 {dimension_numbers = #tpu.dot_dimension_numbers<[2], [2], [1], [1], [0, 0, 0, 1, 1, 1], [0], [0]>} : vector<2x16x16xf32>, vector<2x16x16xf32>, vector<2x16x16xf32> -> vector<2x16x16xf32>
    "tpu.trace_stop"() : () -> ()
    %78 = vector.broadcast %23 : vector<1x16x16xf32> to vector<2x16x16xf32>
    %79 = arith.addf %77, %78 : vector<2x16x16xf32>
    %cst_26 = arith.constant dense<0xFF800000> : vector<2x16xf32>
    %80 = vector.multi_reduction <maximumf>, %79, %cst_26 [2] : vector<2x16x16xf32> to vector<2x16xf32>
    %81 = vector.shape_cast %80 : vector<2x16xf32> to vector<2x16x1xf32>
    %82 = vector.broadcast %81 : vector<2x16x1xf32> to vector<2x16x16xf32>
    %83 = arith.subf %79, %82 : vector<2x16x16xf32>
    %84 = math.exp %83 : vector<2x16x16xf32>
    %cst_27 = arith.constant dense<0.000000e+00> : vector<2x16xf32>
    %85 = vector.multi_reduction <add>, %84, %cst_27 [2] : vector<2x16x16xf32> to vector<2x16xf32>
    %86 = vector.shape_cast %85 : vector<2x16xf32> to vector<2x16x1xf32>
    %87 = vector.broadcast %86 : vector<2x16x1xf32> to vector<2x16x16xf32>
    %88 = arith.divf %84, %87 : vector<2x16x16xf32>
    "tpu.trace_start"() <{level = 10 : i32, message = "bts,bsd->btd"}> : () -> ()
    %cst_28 = arith.constant dense<0.000000e+00> : vector<2x16x16xf32>
    %89 = tpu.matmul %88, %76, %cst_28 {dimension_numbers = #tpu.dot_dimension_numbers<[2], [1], [1], [2], [0, 0, 0, 1, 1, 2], [0], [0]>} : vector<2x16x16xf32>, vector<2x16x16xf32>, vector<2x16x16xf32> -> vector<2x16x16xf32>
    "tpu.trace_stop"() : () -> ()
    %90 = vector.extract_strided_slice %57 {offsets = [0, 0, 32], sizes = [2, 16, 16], strides = [1, 1, 1]} : vector<2x16x384xf32> to vector<2x16x16xf32>
    %91 = vector.extract_strided_slice %57 {offsets = [0, 0, 160], sizes = [2, 16, 16], strides = [1, 1, 1]} : vector<2x16x384xf32> to vector<2x16x16xf32>
    %92 = vector.extract_strided_slice %57 {offsets = [0, 0, 288], sizes = [2, 16, 16], strides = [1, 1, 1]} : vector<2x16x384xf32> to vector<2x16x16xf32>
    "tpu.trace_start"() <{level = 10 : i32, message = "btd,bsd->bts"}> : () -> ()
    %cst_29 = arith.constant dense<0.000000e+00> : vector<2x16x16xf32>
    %93 = tpu.matmul %90, %91, %cst_29 {dimension_numbers = #tpu.dot_dimension_numbers<[2], [2], [1], [1], [0, 0, 0, 1, 1, 1], [0], [0]>} : vector<2x16x16xf32>, vector<2x16x16xf32>, vector<2x16x16xf32> -> vector<2x16x16xf32>
    "tpu.trace_stop"() : () -> ()
    %94 = vector.broadcast %23 : vector<1x16x16xf32> to vector<2x16x16xf32>
    %95 = arith.addf %93, %94 : vector<2x16x16xf32>
    %cst_30 = arith.constant dense<0xFF800000> : vector<2x16xf32>
    %96 = vector.multi_reduction <maximumf>, %95, %cst_30 [2] : vector<2x16x16xf32> to vector<2x16xf32>
    %97 = vector.shape_cast %96 : vector<2x16xf32> to vector<2x16x1xf32>
    %98 = vector.broadcast %97 : vector<2x16x1xf32> to vector<2x16x16xf32>
    %99 = arith.subf %95, %98 : vector<2x16x16xf32>
    %100 = math.exp %99 : vector<2x16x16xf32>
    %cst_31 = arith.constant dense<0.000000e+00> : vector<2x16xf32>
    %101 = vector.multi_reduction <add>, %100, %cst_31 [2] : vector<2x16x16xf32> to vector<2x16xf32>
    %102 = vector.shape_cast %101 : vector<2x16xf32> to vector<2x16x1xf32>
    %103 = vector.broadcast %102 : vector<2x16x1xf32> to vector<2x16x16xf32>
    %104 = arith.divf %100, %103 : vector<2x16x16xf32>
    "tpu.trace_start"() <{level = 10 : i32, message = "bts,bsd->btd"}> : () -> ()
    %cst_32 = arith.constant dense<0.000000e+00> : vector<2x16x16xf32>
    %105 = tpu.matmul %104, %92, %cst_32 {dimension_numbers = #tpu.dot_dimension_numbers<[2], [1], [1], [2], [0, 0, 0, 1, 1, 2], [0], [0]>} : vector<2x16x16xf32>, vector<2x16x16xf32>, vector<2x16x16xf32> -> vector<2x16x16xf32>
    "tpu.trace_stop"() : () -> ()
    %106 = vector.extract_strided_slice %57 {offsets = [0, 0, 48], sizes = [2, 16, 16], strides = [1, 1, 1]} : vector<2x16x384xf32> to vector<2x16x16xf32>
    %107 = vector.extract_strided_slice %57 {offsets = [0, 0, 176], sizes = [2, 16, 16], strides = [1, 1, 1]} : vector<2x16x384xf32> to vector<2x16x16xf32>
    %108 = vector.extract_strided_slice %57 {offsets = [0, 0, 304], sizes = [2, 16, 16], strides = [1, 1, 1]} : vector<2x16x384xf32> to vector<2x16x16xf32>
    "tpu.trace_start"() <{level = 10 : i32, message = "btd,bsd->bts"}> : () -> ()
    %cst_33 = arith.constant dense<0.000000e+00> : vector<2x16x16xf32>
    %109 = tpu.matmul %106, %107, %cst_33 {dimension_numbers = #tpu.dot_dimension_numbers<[2], [2], [1], [1], [0, 0, 0, 1, 1, 1], [0], [0]>} : vector<2x16x16xf32>, vector<2x16x16xf32>, vector<2x16x16xf32> -> vector<2x16x16xf32>
    "tpu.trace_stop"() : () -> ()
    %110 = vector.broadcast %23 : vector<1x16x16xf32> to vector<2x16x16xf32>
    %111 = arith.addf %109, %110 : vector<2x16x16xf32>
    %cst_34 = arith.constant dense<0xFF800000> : vector<2x16xf32>
    %112 = vector.multi_reduction <maximumf>, %111, %cst_34 [2] : vector<2x16x16xf32> to vector<2x16xf32>
    %113 = vector.shape_cast %112 : vector<2x16xf32> to vector<2x16x1xf32>
    %114 = vector.broadcast %113 : vector<2x16x1xf32> to vector<2x16x16xf32>
    %115 = arith.subf %111, %114 : vector<2x16x16xf32>
    %116 = math.exp %115 : vector<2x16x16xf32>
    %cst_35 = arith.constant dense<0.000000e+00> : vector<2x16xf32>
    %117 = vector.multi_reduction <add>, %116, %cst_35 [2] : vector<2x16x16xf32> to vector<2x16xf32>
    %118 = vector.shape_cast %117 : vector<2x16xf32> to vector<2x16x1xf32>
    %119 = vector.broadcast %118 : vector<2x16x1xf32> to vector<2x16x16xf32>
    %120 = arith.divf %116, %119 : vector<2x16x16xf32>
    "tpu.trace_start"() <{level = 10 : i32, message = "bts,bsd->btd"}> : () -> ()
    %cst_36 = arith.constant dense<0.000000e+00> : vector<2x16x16xf32>
    %121 = tpu.matmul %120, %108, %cst_36 {dimension_numbers = #tpu.dot_dimension_numbers<[2], [1], [1], [2], [0, 0, 0, 1, 1, 2], [0], [0]>} : vector<2x16x16xf32>, vector<2x16x16xf32>, vector<2x16x16xf32> -> vector<2x16x16xf32>
    "tpu.trace_stop"() : () -> ()
    %122 = vector.extract_strided_slice %57 {offsets = [0, 0, 64], sizes = [2, 16, 16], strides = [1, 1, 1]} : vector<2x16x384xf32> to vector<2x16x16xf32>
    %123 = vector.extract_strided_slice %57 {offsets = [0, 0, 192], sizes = [2, 16, 16], strides = [1, 1, 1]} : vector<2x16x384xf32> to vector<2x16x16xf32>
    %124 = vector.extract_strided_slice %57 {offsets = [0, 0, 320], sizes = [2, 16, 16], strides = [1, 1, 1]} : vector<2x16x384xf32> to vector<2x16x16xf32>
    "tpu.trace_start"() <{level = 10 : i32, message = "btd,bsd->bts"}> : () -> ()
    %cst_37 = arith.constant dense<0.000000e+00> : vector<2x16x16xf32>
    %125 = tpu.matmul %122, %123, %cst_37 {dimension_numbers = #tpu.dot_dimension_numbers<[2], [2], [1], [1], [0, 0, 0, 1, 1, 1], [0], [0]>} : vector<2x16x16xf32>, vector<2x16x16xf32>, vector<2x16x16xf32> -> vector<2x16x16xf32>
    "tpu.trace_stop"() : () -> ()
    %126 = vector.broadcast %23 : vector<1x16x16xf32> to vector<2x16x16xf32>
    %127 = arith.addf %125, %126 : vector<2x16x16xf32>
    %cst_38 = arith.constant dense<0xFF800000> : vector<2x16xf32>
    %128 = vector.multi_reduction <maximumf>, %127, %cst_38 [2] : vector<2x16x16xf32> to vector<2x16xf32>
    %129 = vector.shape_cast %128 : vector<2x16xf32> to vector<2x16x1xf32>
    %130 = vector.broadcast %129 : vector<2x16x1xf32> to vector<2x16x16xf32>
    %131 = arith.subf %127, %130 : vector<2x16x16xf32>
    %132 = math.exp %131 : vector<2x16x16xf32>
    %cst_39 = arith.constant dense<0.000000e+00> : vector<2x16xf32>
    %133 = vector.multi_reduction <add>, %132, %cst_39 [2] : vector<2x16x16xf32> to vector<2x16xf32>
    %134 = vector.shape_cast %133 : vector<2x16xf32> to vector<2x16x1xf32>
    %135 = vector.broadcast %134 : vector<2x16x1xf32> to vector<2x16x16xf32>
    %136 = arith.divf %132, %135 : vector<2x16x16xf32>
    "tpu.trace_start"() <{level = 10 : i32, message = "bts,bsd->btd"}> : () -> ()
    %cst_40 = arith.constant dense<0.000000e+00> : vector<2x16x16xf32>
    %137 = tpu.matmul %136, %124, %cst_40 {dimension_numbers = #tpu.dot_dimension_numbers<[2], [1], [1], [2], [0, 0, 0, 1, 1, 2], [0], [0]>} : vector<2x16x16xf32>, vector<2x16x16xf32>, vector<2x16x16xf32> -> vector<2x16x16xf32>
    "tpu.trace_stop"() : () -> ()
    %138 = vector.extract_strided_slice %57 {offsets = [0, 0, 80], sizes = [2, 16, 16], strides = [1, 1, 1]} : vector<2x16x384xf32> to vector<2x16x16xf32>
    %139 = vector.extract_strided_slice %57 {offsets = [0, 0, 208], sizes = [2, 16, 16], strides = [1, 1, 1]} : vector<2x16x384xf32> to vector<2x16x16xf32>
    %140 = vector.extract_strided_slice %57 {offsets = [0, 0, 336], sizes = [2, 16, 16], strides = [1, 1, 1]} : vector<2x16x384xf32> to vector<2x16x16xf32>
    "tpu.trace_start"() <{level = 10 : i32, message = "btd,bsd->bts"}> : () -> ()
    %cst_41 = arith.constant dense<0.000000e+00> : vector<2x16x16xf32>
    %141 = tpu.matmul %138, %139, %cst_41 {dimension_numbers = #tpu.dot_dimension_numbers<[2], [2], [1], [1], [0, 0, 0, 1, 1, 1], [0], [0]>} : vector<2x16x16xf32>, vector<2x16x16xf32>, vector<2x16x16xf32> -> vector<2x16x16xf32>
    "tpu.trace_stop"() : () -> ()
    %142 = vector.broadcast %23 : vector<1x16x16xf32> to vector<2x16x16xf32>
    %143 = arith.addf %141, %142 : vector<2x16x16xf32>
    %cst_42 = arith.constant dense<0xFF800000> : vector<2x16xf32>
    %144 = vector.multi_reduction <maximumf>, %143, %cst_42 [2] : vector<2x16x16xf32> to vector<2x16xf32>
    %145 = vector.shape_cast %144 : vector<2x16xf32> to vector<2x16x1xf32>
    %146 = vector.broadcast %145 : vector<2x16x1xf32> to vector<2x16x16xf32>
    %147 = arith.subf %143, %146 : vector<2x16x16xf32>
    %148 = math.exp %147 : vector<2x16x16xf32>
    %cst_43 = arith.constant dense<0.000000e+00> : vector<2x16xf32>
    %149 = vector.multi_reduction <add>, %148, %cst_43 [2] : vector<2x16x16xf32> to vector<2x16xf32>
    %150 = vector.shape_cast %149 : vector<2x16xf32> to vector<2x16x1xf32>
    %151 = vector.broadcast %150 : vector<2x16x1xf32> to vector<2x16x16xf32>
    %152 = arith.divf %148, %151 : vector<2x16x16xf32>
    "tpu.trace_start"() <{level = 10 : i32, message = "bts,bsd->btd"}> : () -> ()
    %cst_44 = arith.constant dense<0.000000e+00> : vector<2x16x16xf32>
    %153 = tpu.matmul %152, %140, %cst_44 {dimension_numbers = #tpu.dot_dimension_numbers<[2], [1], [1], [2], [0, 0, 0, 1, 1, 2], [0], [0]>} : vector<2x16x16xf32>, vector<2x16x16xf32>, vector<2x16x16xf32> -> vector<2x16x16xf32>
    %cst_45 = arith.constant 0.000000e+00 : f32
    "tpu.trace_stop"() : () -> ()
    %154 = vector.broadcast %cst_45 : f32 to vector<2x16x32xf32>
    %155 = tpu.concatenate %73, %89, %105, %121, %137, %153, %154 in 2 : vector<2x16x16xf32>, vector<2x16x16xf32>, vector<2x16x16xf32>, vector<2x16x16xf32>, vector<2x16x16xf32>, vector<2x16x16xf32>, vector<2x16x32xf32> -> vector<2x16x128xf32>
    %156 = vector.shape_cast %155 : vector<2x16x128xf32> to vector<32x128xf32>
    %157 = arith.truncf %156 : vector<32x128xf32> to vector<32x128xbf16>
    %c0_46 = arith.constant 0 : index
    %c0_47 = arith.constant 0 : index
    %c0_48 = arith.constant 0 : index
    %158 = vector.load %arg4[%c0_46, %c0_47, %c0_48] : memref<2x128x128xbf16, #tpu.memory_space<vmem>>, vector<1x128x128xbf16>
    %159 = vector.shape_cast %158 : vector<1x128x128xbf16> to vector<128x128xbf16>
    %cst_49 = arith.constant dense<0.000000e+00> : vector<32x128xf32>
    %160 = tpu.matmul %157, %159, %cst_49 {dimension_numbers = #tpu.dot_dimension_numbers<[1], [0], [0], [1], [0, 0, 1, 1], [], []>} : vector<32x128xbf16>, vector<128x128xbf16>, vector<32x128xf32> -> vector<32x128xf32>
    %161 = vector.broadcast %30 : vector<1x128xf32> to vector<32x128xf32>
    %162 = arith.addf %160, %161 : vector<32x128xf32>
    %163 = arith.addf %12, %162 : vector<32x128xf32>
    %cst_50 = arith.constant dense<0.000000e+00> : vector<32xf32>
    %164 = vector.multi_reduction <add>, %163, %cst_50 [1] : vector<32x128xf32> to vector<32xf32>
    %165 = vector.shape_cast %164 : vector<32xf32> to vector<32x1xf32>
    %cst_51 = arith.constant 0.010416667 : f32
    %166 = vector.broadcast %cst_51 : f32 to vector<32x1xf32>
    %167 = arith.mulf %165, %166 : vector<32x1xf32>
    %168 = vector.broadcast %167 : vector<32x1xf32> to vector<32x128xf32>
    %169 = arith.subf %163, %168 : vector<32x128xf32>
    %170 = arith.mulf %169, %17 : vector<32x128xf32>
    %171 = arith.mulf %170, %170 : vector<32x128xf32>
    %cst_52 = arith.constant dense<0.000000e+00> : vector<32xf32>
    %172 = vector.multi_reduction <add>, %171, %cst_52 [1] : vector<32x128xf32> to vector<32xf32>
    %173 = vector.shape_cast %172 : vector<32xf32> to vector<32x1xf32>
    %cst_53 = arith.constant 0.010416667 : f32
    %174 = vector.broadcast %cst_53 : f32 to vector<32x1xf32>
    %175 = arith.mulf %173, %174 : vector<32x1xf32>
    %cst_54 = arith.constant 9.99999974E-6 : f32
    %176 = vector.broadcast %cst_54 : f32 to vector<32x1xf32>
    %177 = arith.addf %175, %176 : vector<32x1xf32>
    %178 = math.rsqrt %177 : vector<32x1xf32>
    %179 = vector.broadcast %178 : vector<32x1xf32> to vector<32x128xf32>
    %180 = arith.mulf %170, %179 : vector<32x128xf32>
    %181 = vector.broadcast %28 : vector<1x128xf32> to vector<32x128xf32>
    %182 = arith.mulf %180, %181 : vector<32x128xf32>
    %183 = vector.broadcast %29 : vector<1x128xf32> to vector<32x128xf32>
    %184 = arith.addf %182, %183 : vector<32x128xf32>
    %185 = arith.truncf %184 : vector<32x128xf32> to vector<32x128xbf16>
    %c0_55 = arith.constant 0 : index
    %c0_56 = arith.constant 0 : index
    %c0_57 = arith.constant 0 : index
    %186 = vector.load %arg5[%c0_55, %c0_56, %c0_57] : memref<2x128x384xbf16, #tpu.memory_space<vmem>>, vector<1x128x384xbf16>
    %187 = vector.shape_cast %186 : vector<1x128x384xbf16> to vector<128x384xbf16>
    %cst_58 = arith.constant dense<0.000000e+00> : vector<32x384xf32>
    %188 = tpu.matmul %185, %187, %cst_58 {dimension_numbers = #tpu.dot_dimension_numbers<[1], [0], [0], [1], [0, 0, 1, 1], [], []>} : vector<32x128xbf16>, vector<128x384xbf16>, vector<32x384xf32> -> vector<32x384xf32>
    %c0_59 = arith.constant 0 : index
    %c0_60 = arith.constant 0 : index
    %c0_61 = arith.constant 0 : index
    %189 = vector.load %arg6[%c0_59, %c0_60, %c0_61] : memref<2x1x384xf32, #tpu.memory_space<vmem>>, vector<1x1x384xf32>
    %190 = vector.shape_cast %189 : vector<1x1x384xf32> to vector<1x384xf32>
    %191 = vector.broadcast %190 : vector<1x384xf32> to vector<32x384xf32>
    %192 = arith.addf %188, %191 : vector<32x384xf32>
    %cst_62 = arith.constant 0.000000e+00 : f32
    %193 = vector.broadcast %cst_62 : f32 to vector<32x384xf32>
    %194 = arith.maximumf %192, %193 : vector<32x384xf32>
    %195 = arith.truncf %194 : vector<32x384xf32> to vector<32x384xbf16>
    %c0_63 = arith.constant 0 : index
    %c0_64 = arith.constant 0 : index
    %c0_65 = arith.constant 0 : index
    %196 = vector.load %arg7[%c0_63, %c0_64, %c0_65] : memref<2x384x128xbf16, #tpu.memory_space<vmem>>, vector<1x384x128xbf16>
    %197 = vector.shape_cast %196 : vector<1x384x128xbf16> to vector<384x128xbf16>
    %cst_66 = arith.constant dense<0.000000e+00> : vector<32x128xf32>
    %198 = tpu.matmul %195, %197, %cst_66 {dimension_numbers = #tpu.dot_dimension_numbers<[1], [0], [0], [1], [0, 0, 1, 1], [], []>} : vector<32x384xbf16>, vector<384x128xbf16>, vector<32x128xf32> -> vector<32x128xf32>
    %199 = vector.broadcast %31 : vector<1x128xf32> to vector<32x128xf32>
    %200 = arith.addf %198, %199 : vector<32x128xf32>
    %201 = arith.addf %163, %200 : vector<32x128xf32>
    %c1 = arith.constant 1 : index
    %c0_67 = arith.constant 0 : index
    %c0_68 = arith.constant 0 : index
    %202 = vector.load %arg8[%c1, %c0_67, %c0_68] : memref<2x6x128xf32, #tpu.memory_space<vmem>>, vector<1x6x128xf32>
    %203 = vector.shape_cast %202 : vector<1x6x128xf32> to vector<6x128xf32>
    %204 = vector.extract_strided_slice %203 {offsets = [0, 0], sizes = [1, 128], strides = [1, 1]} : vector<6x128xf32> to vector<1x128xf32>
    %205 = vector.extract_strided_slice %203 {offsets = [1, 0], sizes = [1, 128], strides = [1, 1]} : vector<6x128xf32> to vector<1x128xf32>
    %206 = vector.extract_strided_slice %203 {offsets = [2, 0], sizes = [1, 128], strides = [1, 1]} : vector<6x128xf32> to vector<1x128xf32>
    %207 = vector.extract_strided_slice %203 {offsets = [3, 0], sizes = [1, 128], strides = [1, 1]} : vector<6x128xf32> to vector<1x128xf32>
    %208 = vector.extract_strided_slice %203 {offsets = [4, 0], sizes = [1, 128], strides = [1, 1]} : vector<6x128xf32> to vector<1x128xf32>
    %209 = vector.extract_strided_slice %203 {offsets = [5, 0], sizes = [1, 128], strides = [1, 1]} : vector<6x128xf32> to vector<1x128xf32>
    %cst_69 = arith.constant dense<0.000000e+00> : vector<32xf32>
    %210 = vector.multi_reduction <add>, %201, %cst_69 [1] : vector<32x128xf32> to vector<32xf32>
    %211 = vector.shape_cast %210 : vector<32xf32> to vector<32x1xf32>
    %cst_70 = arith.constant 0.010416667 : f32
    %212 = vector.broadcast %cst_70 : f32 to vector<32x1xf32>
    %213 = arith.mulf %211, %212 : vector<32x1xf32>
    %214 = vector.broadcast %213 : vector<32x1xf32> to vector<32x128xf32>
    %215 = arith.subf %201, %214 : vector<32x128xf32>
    %216 = arith.mulf %215, %17 : vector<32x128xf32>
    %217 = arith.mulf %216, %216 : vector<32x128xf32>
    %cst_71 = arith.constant dense<0.000000e+00> : vector<32xf32>
    %218 = vector.multi_reduction <add>, %217, %cst_71 [1] : vector<32x128xf32> to vector<32xf32>
    %219 = vector.shape_cast %218 : vector<32xf32> to vector<32x1xf32>
    %cst_72 = arith.constant 0.010416667 : f32
    %220 = vector.broadcast %cst_72 : f32 to vector<32x1xf32>
    %221 = arith.mulf %219, %220 : vector<32x1xf32>
    %cst_73 = arith.constant 9.99999974E-6 : f32
    %222 = vector.broadcast %cst_73 : f32 to vector<32x1xf32>
    %223 = arith.addf %221, %222 : vector<32x1xf32>
    %224 = math.rsqrt %223 : vector<32x1xf32>
    %225 = vector.broadcast %224 : vector<32x1xf32> to vector<32x128xf32>
    %226 = arith.mulf %216, %225 : vector<32x128xf32>
    %227 = vector.broadcast %204 : vector<1x128xf32> to vector<32x128xf32>
    %228 = arith.mulf %226, %227 : vector<32x128xf32>
    %229 = vector.broadcast %205 : vector<1x128xf32> to vector<32x128xf32>
    %230 = arith.addf %228, %229 : vector<32x128xf32>
    %231 = arith.truncf %230 : vector<32x128xf32> to vector<32x128xbf16>
    %c1_74 = arith.constant 1 : index
    %c0_75 = arith.constant 0 : index
    %c0_76 = arith.constant 0 : index
    %232 = vector.load %arg3[%c1_74, %c0_75, %c0_76] : memref<2x128x384xbf16, #tpu.memory_space<vmem>>, vector<1x128x384xbf16>
    %233 = vector.shape_cast %232 : vector<1x128x384xbf16> to vector<128x384xbf16>
    %cst_77 = arith.constant dense<0.000000e+00> : vector<32x384xf32>
    %234 = tpu.matmul %231, %233, %cst_77 {dimension_numbers = #tpu.dot_dimension_numbers<[1], [0], [0], [1], [0, 0, 1, 1], [], []>} : vector<32x128xbf16>, vector<128x384xbf16>, vector<32x384xf32> -> vector<32x384xf32>
    %235 = vector.shape_cast %234 : vector<32x384xf32> to vector<2x16x384xf32>
    %236 = vector.extract_strided_slice %235 {offsets = [0, 0, 0], sizes = [2, 16, 16], strides = [1, 1, 1]} : vector<2x16x384xf32> to vector<2x16x16xf32>
    %237 = vector.extract_strided_slice %235 {offsets = [0, 0, 128], sizes = [2, 16, 16], strides = [1, 1, 1]} : vector<2x16x384xf32> to vector<2x16x16xf32>
    %238 = vector.extract_strided_slice %235 {offsets = [0, 0, 256], sizes = [2, 16, 16], strides = [1, 1, 1]} : vector<2x16x384xf32> to vector<2x16x16xf32>
    "tpu.trace_start"() <{level = 10 : i32, message = "btd,bsd->bts"}> : () -> ()
    %cst_78 = arith.constant dense<0.000000e+00> : vector<2x16x16xf32>
    %239 = tpu.matmul %236, %237, %cst_78 {dimension_numbers = #tpu.dot_dimension_numbers<[2], [2], [1], [1], [0, 0, 0, 1, 1, 1], [0], [0]>} : vector<2x16x16xf32>, vector<2x16x16xf32>, vector<2x16x16xf32> -> vector<2x16x16xf32>
    "tpu.trace_stop"() : () -> ()
    %240 = vector.broadcast %23 : vector<1x16x16xf32> to vector<2x16x16xf32>
    %241 = arith.addf %239, %240 : vector<2x16x16xf32>
    %cst_79 = arith.constant dense<0xFF800000> : vector<2x16xf32>
    %242 = vector.multi_reduction <maximumf>, %241, %cst_79 [2] : vector<2x16x16xf32> to vector<2x16xf32>
    %243 = vector.shape_cast %242 : vector<2x16xf32> to vector<2x16x1xf32>
    %244 = vector.broadcast %243 : vector<2x16x1xf32> to vector<2x16x16xf32>
    %245 = arith.subf %241, %244 : vector<2x16x16xf32>
    %246 = math.exp %245 : vector<2x16x16xf32>
    %cst_80 = arith.constant dense<0.000000e+00> : vector<2x16xf32>
    %247 = vector.multi_reduction <add>, %246, %cst_80 [2] : vector<2x16x16xf32> to vector<2x16xf32>
    %248 = vector.shape_cast %247 : vector<2x16xf32> to vector<2x16x1xf32>
    %249 = vector.broadcast %248 : vector<2x16x1xf32> to vector<2x16x16xf32>
    %250 = arith.divf %246, %249 : vector<2x16x16xf32>
    "tpu.trace_start"() <{level = 10 : i32, message = "bts,bsd->btd"}> : () -> ()
    %cst_81 = arith.constant dense<0.000000e+00> : vector<2x16x16xf32>
    %251 = tpu.matmul %250, %238, %cst_81 {dimension_numbers = #tpu.dot_dimension_numbers<[2], [1], [1], [2], [0, 0, 0, 1, 1, 2], [0], [0]>} : vector<2x16x16xf32>, vector<2x16x16xf32>, vector<2x16x16xf32> -> vector<2x16x16xf32>
    "tpu.trace_stop"() : () -> ()
    %252 = vector.extract_strided_slice %235 {offsets = [0, 0, 16], sizes = [2, 16, 16], strides = [1, 1, 1]} : vector<2x16x384xf32> to vector<2x16x16xf32>
    %253 = vector.extract_strided_slice %235 {offsets = [0, 0, 144], sizes = [2, 16, 16], strides = [1, 1, 1]} : vector<2x16x384xf32> to vector<2x16x16xf32>
    %254 = vector.extract_strided_slice %235 {offsets = [0, 0, 272], sizes = [2, 16, 16], strides = [1, 1, 1]} : vector<2x16x384xf32> to vector<2x16x16xf32>
    "tpu.trace_start"() <{level = 10 : i32, message = "btd,bsd->bts"}> : () -> ()
    %cst_82 = arith.constant dense<0.000000e+00> : vector<2x16x16xf32>
    %255 = tpu.matmul %252, %253, %cst_82 {dimension_numbers = #tpu.dot_dimension_numbers<[2], [2], [1], [1], [0, 0, 0, 1, 1, 1], [0], [0]>} : vector<2x16x16xf32>, vector<2x16x16xf32>, vector<2x16x16xf32> -> vector<2x16x16xf32>
    "tpu.trace_stop"() : () -> ()
    %256 = vector.broadcast %23 : vector<1x16x16xf32> to vector<2x16x16xf32>
    %257 = arith.addf %255, %256 : vector<2x16x16xf32>
    %cst_83 = arith.constant dense<0xFF800000> : vector<2x16xf32>
    %258 = vector.multi_reduction <maximumf>, %257, %cst_83 [2] : vector<2x16x16xf32> to vector<2x16xf32>
    %259 = vector.shape_cast %258 : vector<2x16xf32> to vector<2x16x1xf32>
    %260 = vector.broadcast %259 : vector<2x16x1xf32> to vector<2x16x16xf32>
    %261 = arith.subf %257, %260 : vector<2x16x16xf32>
    %262 = math.exp %261 : vector<2x16x16xf32>
    %cst_84 = arith.constant dense<0.000000e+00> : vector<2x16xf32>
    %263 = vector.multi_reduction <add>, %262, %cst_84 [2] : vector<2x16x16xf32> to vector<2x16xf32>
    %264 = vector.shape_cast %263 : vector<2x16xf32> to vector<2x16x1xf32>
    %265 = vector.broadcast %264 : vector<2x16x1xf32> to vector<2x16x16xf32>
    %266 = arith.divf %262, %265 : vector<2x16x16xf32>
    "tpu.trace_start"() <{level = 10 : i32, message = "bts,bsd->btd"}> : () -> ()
    %cst_85 = arith.constant dense<0.000000e+00> : vector<2x16x16xf32>
    %267 = tpu.matmul %266, %254, %cst_85 {dimension_numbers = #tpu.dot_dimension_numbers<[2], [1], [1], [2], [0, 0, 0, 1, 1, 2], [0], [0]>} : vector<2x16x16xf32>, vector<2x16x16xf32>, vector<2x16x16xf32> -> vector<2x16x16xf32>
    "tpu.trace_stop"() : () -> ()
    %268 = vector.extract_strided_slice %235 {offsets = [0, 0, 32], sizes = [2, 16, 16], strides = [1, 1, 1]} : vector<2x16x384xf32> to vector<2x16x16xf32>
    %269 = vector.extract_strided_slice %235 {offsets = [0, 0, 160], sizes = [2, 16, 16], strides = [1, 1, 1]} : vector<2x16x384xf32> to vector<2x16x16xf32>
    %270 = vector.extract_strided_slice %235 {offsets = [0, 0, 288], sizes = [2, 16, 16], strides = [1, 1, 1]} : vector<2x16x384xf32> to vector<2x16x16xf32>
    "tpu.trace_start"() <{level = 10 : i32, message = "btd,bsd->bts"}> : () -> ()
    %cst_86 = arith.constant dense<0.000000e+00> : vector<2x16x16xf32>
    %271 = tpu.matmul %268, %269, %cst_86 {dimension_numbers = #tpu.dot_dimension_numbers<[2], [2], [1], [1], [0, 0, 0, 1, 1, 1], [0], [0]>} : vector<2x16x16xf32>, vector<2x16x16xf32>, vector<2x16x16xf32> -> vector<2x16x16xf32>
    "tpu.trace_stop"() : () -> ()
    %272 = vector.broadcast %23 : vector<1x16x16xf32> to vector<2x16x16xf32>
    %273 = arith.addf %271, %272 : vector<2x16x16xf32>
    %cst_87 = arith.constant dense<0xFF800000> : vector<2x16xf32>
    %274 = vector.multi_reduction <maximumf>, %273, %cst_87 [2] : vector<2x16x16xf32> to vector<2x16xf32>
    %275 = vector.shape_cast %274 : vector<2x16xf32> to vector<2x16x1xf32>
    %276 = vector.broadcast %275 : vector<2x16x1xf32> to vector<2x16x16xf32>
    %277 = arith.subf %273, %276 : vector<2x16x16xf32>
    %278 = math.exp %277 : vector<2x16x16xf32>
    %cst_88 = arith.constant dense<0.000000e+00> : vector<2x16xf32>
    %279 = vector.multi_reduction <add>, %278, %cst_88 [2] : vector<2x16x16xf32> to vector<2x16xf32>
    %280 = vector.shape_cast %279 : vector<2x16xf32> to vector<2x16x1xf32>
    %281 = vector.broadcast %280 : vector<2x16x1xf32> to vector<2x16x16xf32>
    %282 = arith.divf %278, %281 : vector<2x16x16xf32>
    "tpu.trace_start"() <{level = 10 : i32, message = "bts,bsd->btd"}> : () -> ()
    %cst_89 = arith.constant dense<0.000000e+00> : vector<2x16x16xf32>
    %283 = tpu.matmul %282, %270, %cst_89 {dimension_numbers = #tpu.dot_dimension_numbers<[2], [1], [1], [2], [0, 0, 0, 1, 1, 2], [0], [0]>} : vector<2x16x16xf32>, vector<2x16x16xf32>, vector<2x16x16xf32> -> vector<2x16x16xf32>
    "tpu.trace_stop"() : () -> ()
    %284 = vector.extract_strided_slice %235 {offsets = [0, 0, 48], sizes = [2, 16, 16], strides = [1, 1, 1]} : vector<2x16x384xf32> to vector<2x16x16xf32>
    %285 = vector.extract_strided_slice %235 {offsets = [0, 0, 176], sizes = [2, 16, 16], strides = [1, 1, 1]} : vector<2x16x384xf32> to vector<2x16x16xf32>
    %286 = vector.extract_strided_slice %235 {offsets = [0, 0, 304], sizes = [2, 16, 16], strides = [1, 1, 1]} : vector<2x16x384xf32> to vector<2x16x16xf32>
    "tpu.trace_start"() <{level = 10 : i32, message = "btd,bsd->bts"}> : () -> ()
    %cst_90 = arith.constant dense<0.000000e+00> : vector<2x16x16xf32>
    %287 = tpu.matmul %284, %285, %cst_90 {dimension_numbers = #tpu.dot_dimension_numbers<[2], [2], [1], [1], [0, 0, 0, 1, 1, 1], [0], [0]>} : vector<2x16x16xf32>, vector<2x16x16xf32>, vector<2x16x16xf32> -> vector<2x16x16xf32>
    "tpu.trace_stop"() : () -> ()
    %288 = vector.broadcast %23 : vector<1x16x16xf32> to vector<2x16x16xf32>
    %289 = arith.addf %287, %288 : vector<2x16x16xf32>
    %cst_91 = arith.constant dense<0xFF800000> : vector<2x16xf32>
    %290 = vector.multi_reduction <maximumf>, %289, %cst_91 [2] : vector<2x16x16xf32> to vector<2x16xf32>
    %291 = vector.shape_cast %290 : vector<2x16xf32> to vector<2x16x1xf32>
    %292 = vector.broadcast %291 : vector<2x16x1xf32> to vector<2x16x16xf32>
    %293 = arith.subf %289, %292 : vector<2x16x16xf32>
    %294 = math.exp %293 : vector<2x16x16xf32>
    %cst_92 = arith.constant dense<0.000000e+00> : vector<2x16xf32>
    %295 = vector.multi_reduction <add>, %294, %cst_92 [2] : vector<2x16x16xf32> to vector<2x16xf32>
    %296 = vector.shape_cast %295 : vector<2x16xf32> to vector<2x16x1xf32>
    %297 = vector.broadcast %296 : vector<2x16x1xf32> to vector<2x16x16xf32>
    %298 = arith.divf %294, %297 : vector<2x16x16xf32>
    "tpu.trace_start"() <{level = 10 : i32, message = "bts,bsd->btd"}> : () -> ()
    %cst_93 = arith.constant dense<0.000000e+00> : vector<2x16x16xf32>
    %299 = tpu.matmul %298, %286, %cst_93 {dimension_numbers = #tpu.dot_dimension_numbers<[2], [1], [1], [2], [0, 0, 0, 1, 1, 2], [0], [0]>} : vector<2x16x16xf32>, vector<2x16x16xf32>, vector<2x16x16xf32> -> vector<2x16x16xf32>
    "tpu.trace_stop"() : () -> ()
    %300 = vector.extract_strided_slice %235 {offsets = [0, 0, 64], sizes = [2, 16, 16], strides = [1, 1, 1]} : vector<2x16x384xf32> to vector<2x16x16xf32>
    %301 = vector.extract_strided_slice %235 {offsets = [0, 0, 192], sizes = [2, 16, 16], strides = [1, 1, 1]} : vector<2x16x384xf32> to vector<2x16x16xf32>
    %302 = vector.extract_strided_slice %235 {offsets = [0, 0, 320], sizes = [2, 16, 16], strides = [1, 1, 1]} : vector<2x16x384xf32> to vector<2x16x16xf32>
    "tpu.trace_start"() <{level = 10 : i32, message = "btd,bsd->bts"}> : () -> ()
    %cst_94 = arith.constant dense<0.000000e+00> : vector<2x16x16xf32>
    %303 = tpu.matmul %300, %301, %cst_94 {dimension_numbers = #tpu.dot_dimension_numbers<[2], [2], [1], [1], [0, 0, 0, 1, 1, 1], [0], [0]>} : vector<2x16x16xf32>, vector<2x16x16xf32>, vector<2x16x16xf32> -> vector<2x16x16xf32>
    "tpu.trace_stop"() : () -> ()
    %304 = vector.broadcast %23 : vector<1x16x16xf32> to vector<2x16x16xf32>
    %305 = arith.addf %303, %304 : vector<2x16x16xf32>
    %cst_95 = arith.constant dense<0xFF800000> : vector<2x16xf32>
    %306 = vector.multi_reduction <maximumf>, %305, %cst_95 [2] : vector<2x16x16xf32> to vector<2x16xf32>
    %307 = vector.shape_cast %306 : vector<2x16xf32> to vector<2x16x1xf32>
    %308 = vector.broadcast %307 : vector<2x16x1xf32> to vector<2x16x16xf32>
    %309 = arith.subf %305, %308 : vector<2x16x16xf32>
    %310 = math.exp %309 : vector<2x16x16xf32>
    %cst_96 = arith.constant dense<0.000000e+00> : vector<2x16xf32>
    %311 = vector.multi_reduction <add>, %310, %cst_96 [2] : vector<2x16x16xf32> to vector<2x16xf32>
    %312 = vector.shape_cast %311 : vector<2x16xf32> to vector<2x16x1xf32>
    %313 = vector.broadcast %312 : vector<2x16x1xf32> to vector<2x16x16xf32>
    %314 = arith.divf %310, %313 : vector<2x16x16xf32>
    "tpu.trace_start"() <{level = 10 : i32, message = "bts,bsd->btd"}> : () -> ()
    %cst_97 = arith.constant dense<0.000000e+00> : vector<2x16x16xf32>
    %315 = tpu.matmul %314, %302, %cst_97 {dimension_numbers = #tpu.dot_dimension_numbers<[2], [1], [1], [2], [0, 0, 0, 1, 1, 2], [0], [0]>} : vector<2x16x16xf32>, vector<2x16x16xf32>, vector<2x16x16xf32> -> vector<2x16x16xf32>
    "tpu.trace_stop"() : () -> ()
    %316 = vector.extract_strided_slice %235 {offsets = [0, 0, 80], sizes = [2, 16, 16], strides = [1, 1, 1]} : vector<2x16x384xf32> to vector<2x16x16xf32>
    %317 = vector.extract_strided_slice %235 {offsets = [0, 0, 208], sizes = [2, 16, 16], strides = [1, 1, 1]} : vector<2x16x384xf32> to vector<2x16x16xf32>
    %318 = vector.extract_strided_slice %235 {offsets = [0, 0, 336], sizes = [2, 16, 16], strides = [1, 1, 1]} : vector<2x16x384xf32> to vector<2x16x16xf32>
    "tpu.trace_start"() <{level = 10 : i32, message = "btd,bsd->bts"}> : () -> ()
    %cst_98 = arith.constant dense<0.000000e+00> : vector<2x16x16xf32>
    %319 = tpu.matmul %316, %317, %cst_98 {dimension_numbers = #tpu.dot_dimension_numbers<[2], [2], [1], [1], [0, 0, 0, 1, 1, 1], [0], [0]>} : vector<2x16x16xf32>, vector<2x16x16xf32>, vector<2x16x16xf32> -> vector<2x16x16xf32>
    "tpu.trace_stop"() : () -> ()
    %320 = vector.broadcast %23 : vector<1x16x16xf32> to vector<2x16x16xf32>
    %321 = arith.addf %319, %320 : vector<2x16x16xf32>
    %cst_99 = arith.constant dense<0xFF800000> : vector<2x16xf32>
    %322 = vector.multi_reduction <maximumf>, %321, %cst_99 [2] : vector<2x16x16xf32> to vector<2x16xf32>
    %323 = vector.shape_cast %322 : vector<2x16xf32> to vector<2x16x1xf32>
    %324 = vector.broadcast %323 : vector<2x16x1xf32> to vector<2x16x16xf32>
    %325 = arith.subf %321, %324 : vector<2x16x16xf32>
    %326 = math.exp %325 : vector<2x16x16xf32>
    %cst_100 = arith.constant dense<0.000000e+00> : vector<2x16xf32>
    %327 = vector.multi_reduction <add>, %326, %cst_100 [2] : vector<2x16x16xf32> to vector<2x16xf32>
    %328 = vector.shape_cast %327 : vector<2x16xf32> to vector<2x16x1xf32>
    %329 = vector.broadcast %328 : vector<2x16x1xf32> to vector<2x16x16xf32>
    %330 = arith.divf %326, %329 : vector<2x16x16xf32>
    "tpu.trace_start"() <{level = 10 : i32, message = "bts,bsd->btd"}> : () -> ()
    %cst_101 = arith.constant dense<0.000000e+00> : vector<2x16x16xf32>
    %331 = tpu.matmul %330, %318, %cst_101 {dimension_numbers = #tpu.dot_dimension_numbers<[2], [1], [1], [2], [0, 0, 0, 1, 1, 2], [0], [0]>} : vector<2x16x16xf32>, vector<2x16x16xf32>, vector<2x16x16xf32> -> vector<2x16x16xf32>
    %cst_102 = arith.constant 0.000000e+00 : f32
    "tpu.trace_stop"() : () -> ()
    %332 = vector.broadcast %cst_102 : f32 to vector<2x16x32xf32>
    %333 = tpu.concatenate %251, %267, %283, %299, %315, %331, %332 in 2 : vector<2x16x16xf32>, vector<2x16x16xf32>, vector<2x16x16xf32>, vector<2x16x16xf32>, vector<2x16x16xf32>, vector<2x16x16xf32>, vector<2x16x32xf32> -> vector<2x16x128xf32>
    %334 = vector.shape_cast %333 : vector<2x16x128xf32> to vector<32x128xf32>
    %335 = arith.truncf %334 : vector<32x128xf32> to vector<32x128xbf16>
    %c1_103 = arith.constant 1 : index
    %c0_104 = arith.constant 0 : index
    %c0_105 = arith.constant 0 : index
    %336 = vector.load %arg4[%c1_103, %c0_104, %c0_105] : memref<2x128x128xbf16, #tpu.memory_space<vmem>>, vector<1x128x128xbf16>
    %337 = vector.shape_cast %336 : vector<1x128x128xbf16> to vector<128x128xbf16>
    %cst_106 = arith.constant dense<0.000000e+00> : vector<32x128xf32>
    %338 = tpu.matmul %335, %337, %cst_106 {dimension_numbers = #tpu.dot_dimension_numbers<[1], [0], [0], [1], [0, 0, 1, 1], [], []>} : vector<32x128xbf16>, vector<128x128xbf16>, vector<32x128xf32> -> vector<32x128xf32>
    %339 = vector.broadcast %208 : vector<1x128xf32> to vector<32x128xf32>
    %340 = arith.addf %338, %339 : vector<32x128xf32>
    %341 = arith.addf %201, %340 : vector<32x128xf32>
    %cst_107 = arith.constant dense<0.000000e+00> : vector<32xf32>
    %342 = vector.multi_reduction <add>, %341, %cst_107 [1] : vector<32x128xf32> to vector<32xf32>
    %343 = vector.shape_cast %342 : vector<32xf32> to vector<32x1xf32>
    %cst_108 = arith.constant 0.010416667 : f32
    %344 = vector.broadcast %cst_108 : f32 to vector<32x1xf32>
    %345 = arith.mulf %343, %344 : vector<32x1xf32>
    %346 = vector.broadcast %345 : vector<32x1xf32> to vector<32x128xf32>
    %347 = arith.subf %341, %346 : vector<32x128xf32>
    %348 = arith.mulf %347, %17 : vector<32x128xf32>
    %349 = arith.mulf %348, %348 : vector<32x128xf32>
    %cst_109 = arith.constant dense<0.000000e+00> : vector<32xf32>
    %350 = vector.multi_reduction <add>, %349, %cst_109 [1] : vector<32x128xf32> to vector<32xf32>
    %351 = vector.shape_cast %350 : vector<32xf32> to vector<32x1xf32>
    %cst_110 = arith.constant 0.010416667 : f32
    %352 = vector.broadcast %cst_110 : f32 to vector<32x1xf32>
    %353 = arith.mulf %351, %352 : vector<32x1xf32>
    %cst_111 = arith.constant 9.99999974E-6 : f32
    %354 = vector.broadcast %cst_111 : f32 to vector<32x1xf32>
    %355 = arith.addf %353, %354 : vector<32x1xf32>
    %356 = math.rsqrt %355 : vector<32x1xf32>
    %357 = vector.broadcast %356 : vector<32x1xf32> to vector<32x128xf32>
    %358 = arith.mulf %348, %357 : vector<32x128xf32>
    %359 = vector.broadcast %206 : vector<1x128xf32> to vector<32x128xf32>
    %360 = arith.mulf %358, %359 : vector<32x128xf32>
    %361 = vector.broadcast %207 : vector<1x128xf32> to vector<32x128xf32>
    %362 = arith.addf %360, %361 : vector<32x128xf32>
    %363 = arith.truncf %362 : vector<32x128xf32> to vector<32x128xbf16>
    %c1_112 = arith.constant 1 : index
    %c0_113 = arith.constant 0 : index
    %c0_114 = arith.constant 0 : index
    %364 = vector.load %arg5[%c1_112, %c0_113, %c0_114] : memref<2x128x384xbf16, #tpu.memory_space<vmem>>, vector<1x128x384xbf16>
    %365 = vector.shape_cast %364 : vector<1x128x384xbf16> to vector<128x384xbf16>
    %cst_115 = arith.constant dense<0.000000e+00> : vector<32x384xf32>
    %366 = tpu.matmul %363, %365, %cst_115 {dimension_numbers = #tpu.dot_dimension_numbers<[1], [0], [0], [1], [0, 0, 1, 1], [], []>} : vector<32x128xbf16>, vector<128x384xbf16>, vector<32x384xf32> -> vector<32x384xf32>
    %c1_116 = arith.constant 1 : index
    %c0_117 = arith.constant 0 : index
    %c0_118 = arith.constant 0 : index
    %367 = vector.load %arg6[%c1_116, %c0_117, %c0_118] : memref<2x1x384xf32, #tpu.memory_space<vmem>>, vector<1x1x384xf32>
    %368 = vector.shape_cast %367 : vector<1x1x384xf32> to vector<1x384xf32>
    %369 = vector.broadcast %368 : vector<1x384xf32> to vector<32x384xf32>
    %370 = arith.addf %366, %369 : vector<32x384xf32>
    %cst_119 = arith.constant 0.000000e+00 : f32
    %371 = vector.broadcast %cst_119 : f32 to vector<32x384xf32>
    %372 = arith.maximumf %370, %371 : vector<32x384xf32>
    %373 = arith.truncf %372 : vector<32x384xf32> to vector<32x384xbf16>
    %c1_120 = arith.constant 1 : index
    %c0_121 = arith.constant 0 : index
    %c0_122 = arith.constant 0 : index
    %374 = vector.load %arg7[%c1_120, %c0_121, %c0_122] : memref<2x384x128xbf16, #tpu.memory_space<vmem>>, vector<1x384x128xbf16>
    %375 = vector.shape_cast %374 : vector<1x384x128xbf16> to vector<384x128xbf16>
    %cst_123 = arith.constant dense<0.000000e+00> : vector<32x128xf32>
    %376 = tpu.matmul %373, %375, %cst_123 {dimension_numbers = #tpu.dot_dimension_numbers<[1], [0], [0], [1], [0, 0, 1, 1], [], []>} : vector<32x384xbf16>, vector<384x128xbf16>, vector<32x128xf32> -> vector<32x128xf32>
    %377 = vector.broadcast %209 : vector<1x128xf32> to vector<32x128xf32>
    %378 = arith.addf %376, %377 : vector<32x128xf32>
    %379 = arith.addf %341, %378 : vector<32x128xf32>
    %c0_124 = arith.constant 0 : index
    %c0_125 = arith.constant 0 : index
    %380 = vector.load %arg9[%c0_124, %c0_125] : memref<3x128xf32, #tpu.memory_space<vmem>>, vector<3x128xf32>
    %381 = vector.extract_strided_slice %380 {offsets = [0, 0], sizes = [1, 128], strides = [1, 1]} : vector<3x128xf32> to vector<1x128xf32>
    %382 = vector.extract_strided_slice %380 {offsets = [1, 0], sizes = [1, 128], strides = [1, 1]} : vector<3x128xf32> to vector<1x128xf32>
    %383 = vector.extract_strided_slice %380 {offsets = [2, 0], sizes = [1, 128], strides = [1, 1]} : vector<3x128xf32> to vector<1x128xf32>
    %cst_126 = arith.constant dense<0.000000e+00> : vector<32xf32>
    %384 = vector.multi_reduction <add>, %379, %cst_126 [1] : vector<32x128xf32> to vector<32xf32>
    %385 = vector.shape_cast %384 : vector<32xf32> to vector<32x1xf32>
    %cst_127 = arith.constant 0.010416667 : f32
    %386 = vector.broadcast %cst_127 : f32 to vector<32x1xf32>
    %387 = arith.mulf %385, %386 : vector<32x1xf32>
    %388 = vector.broadcast %387 : vector<32x1xf32> to vector<32x128xf32>
    %389 = arith.subf %379, %388 : vector<32x128xf32>
    %390 = arith.mulf %389, %17 : vector<32x128xf32>
    %391 = arith.mulf %390, %390 : vector<32x128xf32>
    %cst_128 = arith.constant dense<0.000000e+00> : vector<32xf32>
    %392 = vector.multi_reduction <add>, %391, %cst_128 [1] : vector<32x128xf32> to vector<32xf32>
    %393 = vector.shape_cast %392 : vector<32xf32> to vector<32x1xf32>
    %cst_129 = arith.constant 0.010416667 : f32
    %394 = vector.broadcast %cst_129 : f32 to vector<32x1xf32>
    %395 = arith.mulf %393, %394 : vector<32x1xf32>
    %cst_130 = arith.constant 9.99999974E-6 : f32
    %396 = vector.broadcast %cst_130 : f32 to vector<32x1xf32>
    %397 = arith.addf %395, %396 : vector<32x1xf32>
    %398 = math.rsqrt %397 : vector<32x1xf32>
    %399 = vector.broadcast %398 : vector<32x1xf32> to vector<32x128xf32>
    %400 = arith.mulf %390, %399 : vector<32x128xf32>
    %401 = vector.broadcast %381 : vector<1x128xf32> to vector<32x128xf32>
    %402 = arith.mulf %400, %401 : vector<32x128xf32>
    %403 = vector.broadcast %382 : vector<1x128xf32> to vector<32x128xf32>
    %404 = arith.addf %402, %403 : vector<32x128xf32>
    %405 = arith.truncf %404 : vector<32x128xf32> to vector<32x128xbf16>
    %c0_131 = arith.constant 0 : index
    %c0_132 = arith.constant 0 : index
    %406 = vector.load %arg10[%c0_131, %c0_132] : memref<128x128xbf16, #tpu.memory_space<vmem>>, vector<128x128xbf16>
    %cst_133 = arith.constant dense<0.000000e+00> : vector<32x128xf32>
    %407 = tpu.matmul %405, %406, %cst_133 {dimension_numbers = #tpu.dot_dimension_numbers<[1], [0], [0], [1], [0, 0, 1, 1], [], []>} : vector<32x128xbf16>, vector<128x128xbf16>, vector<32x128xf32> -> vector<32x128xf32>
    %408 = vector.broadcast %383 : vector<1x128xf32> to vector<32x128xf32>
    %409 = arith.addf %407, %408 : vector<32x128xf32>
    %c0_134 = arith.constant 0 : index
    %c0_135 = arith.constant 0 : index
    %410 = vector.load %arg11[%c0_134, %c0_135] : memref<32x128xf32, #tpu.memory_space<vmem>>, vector<32x128xf32>
    tpu.vector_store %arg11[%c0_134, %c0_135], %409 {strides = array<i32>} : memref<32x128xf32, #tpu.memory_space<vmem>>, vector<32x128xf32>,
    return
  }
}

</mosaic_0001>

<bundles_post_ra>
// kernel: gpt_forward_impl.1
= control target key start
LH: loop header
LB: loop body
LE: loop exit
PB: predicated region body
PF: predicated region fallthrough
CT: control target
= control target key end

     0   :  { %16 = vsyncpa [#allocation3], 0  ;;  %s8984_s0 = inlined_call_operand.vmem [shape: s32[32,1], index: 0, kind: input, shape index: {}]   ;;  %s8985_s1 = inlined_call_operand.hbm [shape: bf16[128,128], index: 1, kind: input, shape index: {}]   ;;  %s8986_s2 = inlined_call_operand.vmem [shape: f32[16,128], index: 2, kind: input, shape index: {}]   ;;  %s8987_s3 = inlined_call_operand.hbm [shape: bf16[2,128,384], index: 3, kind: input, shape index: {}]   ;;  %s8988_s4 = inlined_call_operand.hbm [shape: bf16[2,128,128], index: 4, kind: input, shape index: {}]   ;;  %s8989_s5 = inlined_call_operand.hbm [shape: bf16[2,128,384], index: 5, kind: input, shape index: {}]   ;;  %s8990_s6 = inlined_call_operand.vmem [shape: f32[2,1,384], index: 6, kind: input, shape index: {}]   ;;  %s8991_s7 = inlined_call_operand.hbm [shape: bf16[2,384,128], index: 7, kind: input, shape index: {}]   ;;  %s8992_s8 = inlined_call_operand.vmem [shape: f32[2,6,128], index: 8, kind: input, shape index: {}]   ;;  %s8993_s9 = inlined_call_operand.vmem [shape: f32[3,128], index: 9, kind: input, shape index: {}]   ;;  %s8994_s10 = inlined_call_operand.hbm [shape: bf16[128,128], index: 10, kind: input, shape index: {}]   ;;  %s8995_s11 = inlined_call_operand.hbm [shape: f32[32,128], index: 11, kind: output, shape index: {}]  }
   0x1   :  { %17 = vsyncpa [#allocation6], 0 }
   0x2   :  { %18 = vsyncpa [#allocation9], 0 }
   0x3   :  { %19 = vsyncpa [#allocation12], 0  ;;  %s42_s19 = sshll.u32 %s8987_s3, 4  ;;  %s43_s19 = int_to_ptr.hbm [resolvable:$true] %s42_s19 }
   0x4   :  { %20 = vsyncpa [#allocation4], 0  ;;  %s7253_s20 = smov [#allocation5]   ;;  %s68_s24 = sshll.u32 %s8989_s5, 4  ;;  %s69_s24 = int_to_ptr.hbm [resolvable:$true] %s68_s24 }
   0x5   :  { %s44_s21 = sshll.u32 %s7253_s20, 4  ;;  %s7254_s25 = smov 192   ;;  %s45_s21 = int_to_ptr.vmem [resolvable:$true] %s44_s21 }
   0x6   :  { %s7255_s26 = smov 12   ;;  %s7256_s27 = smov [#allocation8]  }
   0x7   :  { %50 = dma.hbm_to_vmem [thread:$0]  %s43_s19, 6144, %s45_s21, [#allocation6], %s7254_s25, %s7254_s25, %s7255_s26  }
   0x8   :  { %s70_s28 = sshll.u32 %s7256_s27, 4  ;;  %s27_s12 = sshll.u32 %s8985_s1, 4  ;;  %s71_s28 = int_to_ptr.vmem [resolvable:$true] %s70_s28  ;;  %s28_s12 = int_to_ptr.hbm [resolvable:$true] %s27_s12 }
   0x9   :  { %76 = dma.hbm_to_vmem [thread:$0]  %s69_s24, 6144, %s71_s28, [#allocation9], %s7254_s25, %s7254_s25, %s7255_s26  }
   0xa   :  { %s7257_s3 = smov [#allocation2]   ;;  %s55_s5 = sshll.u32 %s8988_s4, 4  ;;  %s56_s5 = int_to_ptr.hbm [resolvable:$true] %s55_s5 }
   0xb   :  { %s29_s13 = sshll.u32 %s7257_s3, 4  ;;  %s7258_s16 = smov 64   ;;  %s30_s13 = int_to_ptr.vmem [resolvable:$true] %s29_s13 }
   0xc   :  { %s7259_s17 = smov 4   ;;  %s7260_s18 = smov [#allocation7]  }
   0xd   :  { %35 = dma.hbm_to_vmem [thread:$0]  %s28_s12, 1024, %s30_s13, [#allocation3], %s7258_s16, %s7258_s16, %s7259_s17  }
   0xe   :  { %s57_s19 = sshll.u32 %s7260_s18, 4  ;;  %s83_s21 = sshll.u32 %s8991_s7, 4  ;;  %s58_s19 = int_to_ptr.vmem [resolvable:$true] %s57_s19  ;;  %s84_s21 = int_to_ptr.hbm [resolvable:$true] %s83_s21 }
   0xf   :  { %63 = dma.hbm_to_vmem [thread:$0]  %s56_s5, 2048, %s58_s19, [#allocation6], %s7258_s16, %s7258_s16, %s7259_s17  }
  0x10   :  { %s100_s4 = sshll.u32 %s8994_s10, 4  ;;  %s7261_s24 = smov [#allocation10]   ;;  %s101_s4 = int_to_ptr.hbm [resolvable:$true] %s100_s4 }
  0x11   :  { %s85_s25 = sshll.u32 %s7261_s24, 4  ;;  %s7262_s26 = smov [#allocation11]   ;;  %s86_s25 = int_to_ptr.vmem [resolvable:$true] %s85_s25 }
  0x12   :  { %91 = dma.hbm_to_vmem [thread:$0]  %s84_s21, 6144, %s86_s25, [#allocation9], %s7258_s16, %s7258_s16, %s7259_s17  }
  0x13   :  { %s102_s27 = sshll.u32 %s7262_s26, 4  ;;  %s103_s27 = int_to_ptr.vmem [resolvable:$true] %s102_s27 }
  0x14   :  { %108 = dma.hbm_to_vmem [thread:$0]  %s101_s4, 1024, %s103_s27, [#allocation12], %s7258_s16, %s7258_s16, %s7259_s17  }
  0x15   :  { %7243 = dma.done.wait [#allocation3], 1024  }
  0x16   :  { %7244 = vsyncadd [#allocation3], 4294966272 }
  0x17   :  { %7245 = dma.done.wait [#allocation6], 8192  }
  0x18   :  { %7246 = vsyncadd [#allocation6], 4294959104 }
  0x19   :  { %7247 = dma.done.wait [#allocation9], 12288  }
  0x1a   :  { %7248 = vsyncadd [#allocation9], 4294955008 }
  0x1b   :  { %7249 = dma.done.wait [#allocation12], 1024  }
  0x1c   :  { %7250 = vsyncadd [#allocation12], 4294966272  ;;  %v7263_v0 = vmov 0   ;;  %v133_v1 = vld [vmem:[%s8984_s0] sm:$0xff]  ;;  %v135_v2 = vld [vmem:[%s8984_s0 + $0x10] sm:$0xff]  ;;  %v137_v14 = vlaneseq  ;;  %v7265_v32 = vmov 0.0  }
  0x1d   :  { %6639 = vset.pattern.permute.xlu0 %v7263_v0  ;;  %6640 = vset.pattern.permute.xlu1 %v7263_v0  ;;  %v6447_v3 = vld [vmem:[#allocation2 + $0x38] sm:$0xff]  ;;  %v6446_v4 = vld [vmem:[#allocation2 + $0x30] sm:$0xff]  ;;  %v134_v5 = vld [vmem:[%s8984_s0 + $0x8] sm:$0xff]  ;;  %v7264_v18 = vmov 1.0|1.0   ;;  %s7266_s18 = smov 112  }
  0x1e   :  { %140 = vperm.xlu0 %6639, %v133_v1   ;;  %146 = vperm.xlu1 %6640, %v135_v2   ;;  %v136_v6 = vld [vmem:[%s8984_s0 + $0x18] sm:$0xff]  ;;  %v6445_v7 = vld [vmem:[#allocation2 + $0x28] sm:$0xff]  ;;  %v6444_v8 = vld [vmem:[#allocation2 + $0x20] sm:$0xff]  ;;  %v7375_v15 = vand.u32 127, %v137_v14  ;;  %s7267_s19 = smov 96   ;;  %s7268_s20 = smov 80  }
  0x1f   :  { %227 = vmatpush.bf16.msra.mxu0 %v6447_v3  ;;  %v6443_v9 = vld [vmem:[#allocation2 + $0x18] sm:$0xff]  ;;  %v6442_v10 = vld [vmem:[#allocation2 + $0x10] sm:$0xff]  ;;  %v6441_v11 = vld [vmem:[#allocation2 + $0x8] sm:$0xff]  ;;  %s7269_s1 = smov 48   ;;  %s7271_s21 = smov 16  }
  0x20   :  { %v6440_v12 = vld [vmem:[#allocation2] sm:$0xff]  ;;  %v178_v23 = vld [vmem:[%s8986_s2 + $0x8] sm:$0xff]  ;;  %vm246_vm6 = vcmp.lt.s32.totalorder %v7375_v15, 96  ;;  %v6470_v53 = vld [vmem:[#allocation5 + $0xb0] sm:$0xf0]  ;;  %s7272_s22 = smov 32  }
  0x21   :  { %v177_v20 = vld [vmem:[%s8986_s2] sm:$0xff]  ;;  %v7400_v33 = vsel %vm246_vm6, 1.0, %v7265_v32  ;;  %v5696_v52 = vld [vmem:[#allocation5 + $0xa8] sm:$0xf]  ;;  %v6469_v54 = vld [vmem:[#allocation5 + $0xac] sm:$0xf] }
  0x22   :  { %v5697_v55 = vor.u32 %v6470_v53, %v5696_v52  ;;  %v5698_v56 = vld [vmem:[#allocation5 + $0xb4] sm:$0xf0]  ;;  %v5704_v57 = vld [vmem:[#allocation5 + $0xb0] sm:$0xf]  ;;  %v6471_v58 = vld [vmem:[#allocation5 + $0xb8] sm:$0xf0] }
  0x23   :  { %228 = vmatpush.bf16.msra.mxu0 %v6446_v4  ;;  %v5701_v59 = vor.u32 %v6469_v54, %v5698_v56  ;;  %v5705_v60 = vor.u32 %v6471_v58, %v5704_v57  ;;  %v5684_v61 = vld [vmem:[#allocation5 + $0x90] sm:$0xf]  ;;  %v6467_v62 = vld [vmem:[#allocation5 + $0x98] sm:$0xf0]  ;;  %v6466_v63 = vld [vmem:[#allocation5 + $0x94] sm:$0xf] }
  0x24   :  { %513 = vmatpush.bf16.msra.mxu1 %v5697_v55  ;;  %v5685_v0 = vor.u32 %v6467_v62, %v5684_v61  ;;  %v5686_v1 = vld [vmem:[#allocation5 + $0x9c] sm:$0xf0]  ;;  %v5692_v2 = vld [vmem:[#allocation5 + $0x98] sm:$0xf]  ;;  %v6468_v3 = vld [vmem:[#allocation5 + $0xa0] sm:$0xf0] }
  0x25   :  { %532 = vmatpush.bf16.msra.mxu2 %v5701_v59  ;;  %551 = vmatpush.bf16.msra.mxu3 %v5705_v60  ;;  %v5689_v4 = vor.u32 %v6466_v63, %v5686_v1  ;;  %v6457_v32 = vld [vmem:[#allocation5 + $0x4c] sm:$0xf]  ;;  %v5624_v53 = vld [vmem:[#allocation5 + $0x18] sm:$0xf]  ;;  %v6452_v54 = vld [vmem:[#allocation5 + $0x20] sm:$0xf0] }
  0x26   :  { %143 = vperm.xlu0 %6639, %v134_v5   ;;  %149 = vperm.xlu1 %6640, %v136_v6   ;;  %v5693_v5 = vor.u32 %v6468_v3, %v5692_v2  ;;  %v5672_v6 = vld [vmem:[#allocation5 + $0x78] sm:$0xf]  ;;  %v6451_v55 = vld [vmem:[#allocation5 + $0x1c] sm:$0xf]  ;;  %v5625_v56 = vor.u32 %v6452_v54, %v5624_v53  ;;  %v5626_v57 = vld [vmem:[#allocation5 + $0x24] sm:$0xf0] }
  0x27   :  { %229 = vmatpush.bf16.msra.mxu0 %v6445_v7  ;;  %v6464_v7 = vld [vmem:[#allocation5 + $0x80] sm:$0xf0]  ;;  %v5632_v58 = vld [vmem:[#allocation5 + $0x20] sm:$0xf]  ;;  %v6453_v59 = vld [vmem:[#allocation5 + $0x28] sm:$0xf0]  ;;  %v5629_v60 = vor.u32 %v6451_v55, %v5626_v57 }
  0x28   :  { %514 = vmatpush.bf16.msra.mxu1 %v5685_v0  ;;  %v5633_v61 = vor.u32 %v6453_v59, %v5632_v58  ;;  %v5612_v0 = vld [vmem:[#allocation5] sm:$0xf]  ;;  %v6449_v1 = vld [vmem:[#allocation5 + $0x8] sm:$0xf0]  ;;  %v6448_v3 = vld [vmem:[#allocation5 + $0x4] sm:$0xf] }
  0x29   :  { %533 = vmatpush.bf16.msra.mxu2 %v5689_v4  ;;  %552 = vmatpush.bf16.msra.mxu3 %v5693_v5  ;;  %v5613_v2 = vor.u32 %v6449_v1, %v5612_v0  ;;  %v5614_v4 = vld [vmem:[#allocation5 + $0xc] sm:$0xf0]  ;;  %v5620_v5 = vld [vmem:[#allocation5 + $0x8] sm:$0xf]  ;;  %s5557_s3 = sshll.u32 %s8995_s11, 4  ;;  %s7274_s13 = smov 128   ;;  %s5558_s3 = int_to_ptr.hbm [resolvable:$true] %s5557_s3 }
  0x2a   :  { %s7275_s0 = smov 8  }
  0x2b   :  { %230 = vmatpush.bf16.msra.mxu0 %v6444_v8  ;;  %v6463_v8 = vld [vmem:[#allocation5 + $0x7c] sm:$0xf] }
  0x2f   :  { %231 = vmatpush.bf16.msra.mxu0 %v6443_v9  ;;  %v5673_v9 = vor.u32 %v6464_v7, %v5672_v6  ;;  %v5617_v7 = vor.u32 %v6448_v3, %v5614_v4 }
  0x31   :  { %515 = vmatpush.bf16.msra.mxu1 %v5673_v9 }
  0x33   :  { %232 = vmatpush.bf16.msra.mxu0 %v6442_v10  ;;  %v5674_v10 = vld [vmem:[#allocation5 + $0x84] sm:$0xf0] }
  0x37   :  { %233 = vmatpush.bf16.msra.mxu0 %v6441_v11  ;;  %v5680_v11 = vld [vmem:[#allocation5 + $0x80] sm:$0xf] }
  0x3b   :  { %234 = vmatpush.bf16.msra.mxu0 %v6440_v12  ;;  %v6465_v12 = vld [vmem:[#allocation5 + $0x88] sm:$0xf0] }
  0x90   :  { %v141_v13 = vpop.permute.xlu0 %140  ;;  %v147_v17 = vpop.permute.xlu1 %146 }
  0x91   :  { %vm151_vm0 = vcmp.eq.s32.totalorder %v7375_v15, %v141_v13  ;;  %vm153_vm3 = vcmp.eq.s32.totalorder %v7375_v15, %v147_v17  ;;  %v5677_v13 = vor.u32 %v6463_v8, %v5674_v10  ;;  %v5660_v17 = vld [vmem:[#allocation5 + $0x60] sm:$0xf]  ;;  %v6450_v8 = vld [vmem:[#allocation5 + $0x10] sm:$0xf0] }
  0x92   :  { %v5621_v9 = vor.u32 %v6450_v8, %v5620_v5 }
  0x93   :  { %534 = vmatpush.bf16.msra.mxu2 %v5677_v13 }
  0x98   :  { %v144_v16 = vpop.permute.xlu0 %143  ;;  %v150_v19 = vpop.permute.xlu1 %149 }
  0x99   :  { %vm152_vm1 = vcmp.eq.s32.totalorder %v7375_v15, %v144_v16  ;;  %vm154_vm4 = vcmp.eq.s32.totalorder %v7375_v15, %v150_v19  ;;  %v5681_v16 = vor.u32 %v6465_v12, %v5680_v11  ;;  %v6460_v19 = vld [vmem:[#allocation5 + $0x64] sm:$0xf] }
  0x9a   :  { %vm5605_vm2 = vmpackc.low %vm152_vm1, %vm151_vm0 }
  0x9b   :  { %5606 = vmatmul.msk.bf16.vlgmr.msra.gmra.mxu0 %vm5605_vm2, %v7264_v18  ;;  %vm5607_vm5 = vmpackc.low %vm154_vm4, %vm153_vm3  ;;  %553 = vmatpush.bf16.msra.mxu3 %v5681_v16  ;;  %vm570_vm3 = vcmask 130048  }
  0xab   :  { %5608 = vmatmul.msk.bf16.gmra.mxu0 %vm5607_vm5, %v7264_v18  ;;  %v6461_v18 = vld [vmem:[#allocation5 + $0x68] sm:$0xf0] }
 0x118   :  { %v236_v21 = vpop.f32.mrf.mxu0 }
 0x119   :  { %v7384_v22 = vadd.f32 %v236_v21, %v177_v20  ;;  %v5662_v21 = vld [vmem:[#allocation5 + $0x6c] sm:$0xf0] }
 0x11b   :  { %257 = vadd.xlane.f32.xlu2 %v7384_v22 }
 0x120   :  { %v238_v24 = vpop.f32.mrf.mxu0 }
 0x121   :  { %v7390_v25 = vadd.f32 %v238_v24, %v178_v23  ;;  %v6462_v24 = vld [vmem:[#allocation5 + $0x70] sm:$0xf0] }
 0x123   :  { %259 = vadd.xlane.f32.xlu2 %v7390_v25 }
 0x128   :  { %v241_v26 = vpop.f32.mrf.mxu0 }
 0x129   :  { %v7393_v27 = vadd.f32 %v241_v26, %v177_v20  ;;  %v5661_v20 = vor.u32 %v6461_v18, %v5660_v17  ;;  %v5665_v26 = vor.u32 %v6460_v19, %v5662_v21 }
 0x12b   :  { %261 = vadd.xlane.f32.xlu0 %v7393_v27  ;;  %516 = vmatpush.bf16.msra.mxu1 %v5661_v20 }
 0x12c   :  { %535 = vmatpush.bf16.msra.mxu2 %v5665_v26 }
 0x130   :  { %v243_v28 = vpop.f32.mrf.mxu0 }
 0x131   :  { %v7396_v29 = vadd.f32 %v243_v28, %v178_v23  ;;  %v5668_v23 = vld [vmem:[#allocation5 + $0x68] sm:$0xf] }
 0x132   :  { %v5669_v28 = vor.u32 %v6462_v24, %v5668_v23 }
 0x133   :  { %263 = vadd.xlane.f32.xlu1 %v7396_v29 }
 0x134   :  { %554 = vmatpush.bf16.msra.mxu3 %v5669_v28 }
 0x18e   :  { %v258_v30 = vpop.xlane.xlu2 %257 }
 0x18f   :  { %v265_v31 = vmul.f32 0.010416667, %v258_v30  ;;  %v5648_v30 = vld [vmem:[#allocation5 + $0x48] sm:$0xf] }
 0x191   :  { %v269_v34 = vsub.f32 %v7384_v22, %v265_v31  ;;  %v6458_v31 = vld [vmem:[#allocation5 + $0x50] sm:$0xf0] }
 0x193   :  { %v7404_v35 = vmul.f32 %v7400_v33, %v269_v34  ;;  %v5649_v34 = vor.u32 %v6458_v31, %v5648_v30 }
 0x195   :  { %v277_v36 = vmul.f32 %v7404_v35, %v7404_v35  ;;  %517 = vmatpush.bf16.msra.mxu1 %v5649_v34 }
 0x196   :  { %v260_v37 = vpop.xlane.xlu2 %259 }
 0x197   :  { %v266_v38 = vmul.f32 0.010416667, %v260_v37  ;;  %281 = vadd.xlane.f32.xlu2 %v277_v36  ;;  %v5650_v36 = vld [vmem:[#allocation5 + $0x54] sm:$0xf0]  ;;  %v5656_v37 = vld [vmem:[#allocation5 + $0x50] sm:$0xf] }
 0x199   :  { %v270_v39 = vsub.f32 %v7390_v25, %v266_v38  ;;  %v6459_v38 = vld [vmem:[#allocation5 + $0x58] sm:$0xf0] }
 0x19b   :  { %v7410_v40 = vmul.f32 %v7400_v33, %v270_v39  ;;  %v5653_v39 = vor.u32 %v6457_v32, %v5650_v36  ;;  %v256_v36 = vld [vmem:[%s8992_s8] sm:$0x3f] }
 0x19d   :  { %v278_v41 = vmul.f32 %v7410_v40, %v7410_v40  ;;  %536 = vmatpush.bf16.msra.mxu2 %v5653_v39 }
 0x19e   :  { %v262_v42 = vpop.xlane.xlu0 %261 }
 0x19f   :  { %v267_v43 = vmul.f32 0.010416667, %v262_v42  ;;  %283 = vadd.xlane.f32.xlu2 %v278_v41  ;;  %v5657_v41 = vor.u32 %v6459_v38, %v5656_v37  ;;  %v5636_v42 = vld [vmem:[#allocation5 + $0x30] sm:$0xf] }
 0x1a1   :  { %v271_v44 = vsub.f32 %v7393_v27, %v267_v43  ;;  %555 = vmatpush.bf16.msra.mxu3 %v5657_v41  ;;  %v6455_v43 = vld [vmem:[#allocation5 + $0x38] sm:$0xf0] }
 0x1a3   :  { %v7416_v45 = vmul.f32 %v7400_v33, %v271_v44  ;;  %v6454_v44 = vld [vmem:[#allocation5 + $0x34] sm:$0xf] }
 0x1a5   :  { %v279_v46 = vmul.f32 %v7416_v45, %v7416_v45 }
 0x1a6   :  { %v264_v47 = vpop.xlane.xlu1 %263 }
 0x1a7   :  { %v268_v48 = vmul.f32 0.010416667, %v264_v47  ;;  %285 = vadd.xlane.f32.xlu2 %v279_v46  ;;  %v5637_v46 = vor.u32 %v6455_v43, %v5636_v42  ;;  %v5638_v47 = vld [vmem:[#allocation5 + $0x3c] sm:$0xf0]  ;;  %v341_v43 = vperm.slane %v256_v36, 0 }
 0x1a9   :  { %v272_v49 = vsub.f32 %v7396_v29, %v268_v48  ;;  %v5644_v48 = vld [vmem:[#allocation5 + $0x38] sm:$0xf]  ;;  %518 = vmatpush.bf16.msra.mxu1 %v5637_v46 }
 0x1ab   :  { %v7422_v50 = vmul.f32 %v7400_v33, %v272_v49  ;;  %v6456_v49 = vld [vmem:[#allocation5 + $0x40] sm:$0xf0] }
 0x1ac   :  { %v5645_v52 = vor.u32 %v6456_v49, %v5644_v48 }
 0x1ad   :  { %v280_v51 = vmul.f32 %v7422_v50, %v7422_v50  ;;  %519 = vmatpush.bf16.msra.mxu1 %v5625_v56 }
 0x1ae   :  { %556 = vmatpush.bf16.msra.mxu3 %v5645_v52  ;;  %v346_v52 = vperm.slane %v256_v36, 1 }
 0x1af   :  { %287 = vadd.xlane.f32.xlu2 %v280_v51  ;;  %v5641_v51 = vor.u32 %v6454_v44, %v5638_v47 }
 0x1b1   :  { %537 = vmatpush.bf16.msra.mxu2 %v5641_v51  ;;  %520 = vmatpush.bf16.msra.mxu1 %v5613_v2 }
 0x1b2   :  { %557 = vmatpush.bf16.msra.mxu3 %v5633_v61 }
 0x1b5   :  { %538 = vmatpush.bf16.msra.mxu2 %v5629_v60 }
 0x1b6   :  { %558 = vmatpush.bf16.msra.mxu3 %v5621_v9 }
 0x1b9   :  { %539 = vmatpush.bf16.msra.mxu2 %v5617_v7 }
 0x20a   :  { %v282_v62 = vpop.xlane.xlu2 %281 }
 0x20b   :  { %v289_v63 = vmul.f32 0.010416667, %v282_v62 }
 0x20d   :  { %v293_v6 = vadd.f32 1e-05, %v289_v63 }
 0x20f   :  { %6841 = vrsqrt.f32 %v293_v6  ;;  %vm303_vm8 = vweird.f32 %v293_v6 }
 0x212   :  { %v284_v10 = vpop.xlane.xlu2 %283 }
 0x213   :  { %v290_v11 = vmul.f32 0.010416667, %v284_v10 }
 0x215   :  { %v6842_v12 = vpop.eup %6841  ;;  %v294_v13 = vadd.f32 1e-05, %v290_v11 }
 0x216   :  { %v298_v16 = vmul.f32 %v6842_v12, %v293_v6  ;;  %vm304_vm7 = vweird.f32 %v6842_v12 }
 0x217   :  { %6843 = vrsqrt.f32 %v294_v13  ;;  %vm305_vm9 = vmor %vm303_vm8, %vm304_vm7  ;;  %vm313_vm11 = vweird.f32 %v294_v13 }
 0x218   :  { %v299_v17 = vmul.f32 %v6842_v12, %v298_v16 }
 0x21a   :  { %v300_v18 = vmul.f32 0.5, %v299_v17  ;;  %v286_v19 = vpop.xlane.xlu2 %285 }
 0x21b   :  { %v291_v20 = vmul.f32 0.010416667, %v286_v19 }
 0x21c   :  { %v301_v21 = vsub.f32 1.5, %v300_v18 }
 0x21d   :  { %v6844_v23 = vpop.eup %6843  ;;  %v295_v24 = vadd.f32 1e-05, %v291_v20 }
 0x21e   :  { %v302_v26 = vmul.f32 %v6842_v12, %v301_v21  ;;  %v308_v28 = vmul.f32 %v6844_v23, %v294_v13  ;;  %vm314_vm10 = vweird.f32 %v6844_v23 }
 0x21f   :  { %6845 = vrsqrt.f32 %v295_v24  ;;  %vm315_vm12 = vmor %vm313_vm11, %vm314_vm10  ;;  %vm323_vm14 = vweird.f32 %v295_v24 }
 0x220   :  { %v309_v30 = vmul.f32 %v6844_v23, %v308_v28  ;;  %v306_v31 = vsel %vm305_vm9, %v6842_v12, %v302_v26 }
 0x221   :  { %v337_v42 = vmul.f32 %v306_v31, %v7404_v35 }
 0x222   :  { %v310_v32 = vmul.f32 0.5, %v309_v30  ;;  %v288_v34 = vpop.xlane.xlu2 %287 }
 0x223   :  { %v292_v37 = vmul.f32 0.010416667, %v288_v34  ;;  %v342_v51 = vmul.f32 %v341_v43, %v337_v42 }
 0x224   :  { %v311_v38 = vsub.f32 1.5, %v310_v32 }
 0x225   :  { %v6846_v39 = vpop.eup %6845  ;;  %v296_v41 = vadd.f32 1e-05, %v292_v37  ;;  %v347_v57 = vadd.f32 %v346_v52, %v342_v51 }
 0x226   :  { %v312_v44 = vmul.f32 %v6844_v23, %v311_v38  ;;  %v318_v46 = vmul.f32 %v6846_v39, %v295_v24  ;;  %vm324_vm13 = vweird.f32 %v6846_v39 }
 0x227   :  { %6847 = vrsqrt.f32 %v296_v41  ;;  %vm325_vm15 = vmor %vm323_vm14, %vm324_vm13  ;;  %vm333_vm1 = vweird.f32 %v296_v41 }
 0x228   :  { %v316_v47 = vsel %vm315_vm12, %v6844_v23, %v312_v44  ;;  %v319_v48 = vmul.f32 %v6846_v39, %v318_v46  ;;  %v250_v44 = vshrl.u32 %v137_v14, 7 }
 0x229   :  { %v338_v49 = vmul.f32 %v316_v47, %v7410_v40 }
 0x22a   :  { %v320_v53 = vmul.f32 0.5, %v319_v48  ;;  %vm252_vm4 = vcmp.le.s32.totalorder %v7375_v15, %v250_v44  ;;  %v7270_v48 = vmov -1e+30  }
 0x22b   :  { %v343_v54 = vmul.f32 %v341_v43, %v338_v49  ;;  %v7515_v49 = vsel %vm252_vm4, 0.0, %v7270_v48 }
 0x22c   :  { %v321_v55 = vsub.f32 1.5, %v320_v53 }
 0x22d   :  { %v6848_v56 = vpop.eup %6847  ;;  %v348_v58 = vadd.f32 %v346_v52, %v343_v54 }
 0x22e   :  { %v322_v59 = vmul.f32 %v6846_v39, %v321_v55  ;;  %v328_v35 = vmul.f32 %v6848_v56, %v296_v41  ;;  %vm334_vm0 = vweird.f32 %v6848_v56 }
 0x22f   :  { %v351_v60 = vpack.c.bf16 %v348_v58, %v347_v57  ;;  %vm335_vm2 = vmor %vm333_vm1, %vm334_vm0 }
 0x230   :  { %v329_v61 = vmul.f32 %v6848_v56, %v328_v35  ;;  %v326_v62 = vsel %vm325_vm15, %v6846_v39, %v322_v59 }
 0x231   :  { %521 = vmatmul.bf16.vlgmr.msra.gmra.mxu1 %v351_v60  ;;  %540 = vmatmul.bf16.vlgmr.msra.gmra.mxu2 %v351_v60  ;;  %v339_v0 = vmul.f32 %v326_v62, %v7416_v45 }
 0x232   :  { %v330_v63 = vmul.f32 0.5, %v329_v61  ;;  %559 = vmatmul.bf16.vlgmr.msra.gmra.mxu3 %v351_v60 }
 0x233   :  { %v344_v4 = vmul.f32 %v341_v43, %v339_v0 }
 0x234   :  { %v331_v40 = vsub.f32 1.5, %v330_v63 }
 0x235   :  { %v349_v6 = vadd.f32 %v346_v52, %v344_v4 }
 0x236   :  { %v332_v1 = vmul.f32 %v6848_v56, %v331_v40 }
 0x238   :  { %v336_v2 = vsel %vm335_vm2, %v6848_v56, %v332_v1  ;;  %v251_v56 = vadd.s32 8, %v250_v44 }
 0x239   :  { %v340_v3 = vmul.f32 %v336_v2, %v7422_v50 }
 0x23a   :  { %vm253_vm5 = vcmp.le.s32.totalorder %v7375_v15, %v251_v56 }
 0x23b   :  { %v345_v5 = vmul.f32 %v341_v43, %v340_v3  ;;  %v7536_v62 = vsel %vm253_vm5, 0.0, %v7270_v48 }
 0x23d   :  { %v350_v7 = vadd.f32 %v346_v52, %v345_v5 }
 0x23f   :  { %v352_v8 = vpack.c.bf16 %v350_v7, %v349_v6 }
 0x241   :  { %526 = vmatmul.bf16.gmra.mxu1 %v352_v8  ;;  %545 = vmatmul.bf16.gmra.mxu2 %v352_v8 }
 0x242   :  { %564 = vmatmul.bf16.gmra.mxu3 %v352_v8 }
 0x2ae   :  { %v522_v9 = vpop.f32.mrf.mxu1 }
 0x2af   :  { %795 = vrot.lane.b32.xlu1 %v522_v9, %s7266_s18 }
 0x2b4   :  { %v541_v10 = vpop.f32.mrf.mxu2 }
 0x2b5   :  { %v7434_v45 = vpop.f32.mrf.mxu3  ;;  %799 = vrot.lane.b32.xlu0 %v541_v10, %s7266_s18 }
 0x2b6   :  { %v524_v11 = vpop.f32.mrf.mxu1 }
 0x2b7   :  { %1043 = vrot.lane.b32.xlu1 %v522_v9, %s7267_s19  ;;  %797 = vrot.lane.b32.xlu2 %v524_v11, %s7266_s18 }
 0x2bc   :  { %v543_v50 = vpop.f32.mrf.mxu2 }
 0x2bd   :  { %v562_v12 = vpop.f32.mrf.mxu3  ;;  %1047 = vrot.lane.b32.xlu0 %v541_v10, %s7267_s19  ;;  %5706 = vmatpush.xpose.msk.msrb.mxu0 %vm570_vm3, %v543_v50 }
 0x2be   :  { %757 = vmatpush.msrb.mxu2 %v562_v12  ;;  %v527_v13 = vpop.f32.mrf.mxu1  ;;  %v7484_v24 = vpack.i.bf16 %v7434_v45, %v562_v12 }
 0x2bf   :  { %1045 = vrot.lane.b32.xlu2 %v524_v11, %s7267_s19 }
 0x2c0   :  { %758 = vmatpush.msrb.mxu2 %v7434_v45 }
 0x2c1   :  { %5707 = vmatpush.xpose.msk.msrb.mxu0 %vm570_vm3, %v541_v10 }
 0x2c4   :  { %v546_v16 = vpop.f32.mrf.mxu2  ;;  %5708 = vmatmul.msk.f32.vlgmr.msrb.gmra.mxu0 %vm570_vm3, %v522_v9 }
 0x2c5   :  { %v565_v17 = vpop.f32.mrf.mxu3  ;;  %838 = vrot.lane.b32.xlu1 %v546_v16, %s7266_s18 }
 0x2c6   :  { %v529_v18 = vpop.f32.mrf.mxu1 }
 0x2c7   :  { %801 = vrot.lane.b32.xlu2 %v543_v50, %s7266_s18  ;;  %836 = vrot.lane.b32.xlu0 %v529_v18, %s7266_s18 }
 0x2cc   :  { %v548_v19 = vpop.f32.mrf.mxu2  ;;  %5709 = vmatmul.msk.f32.gmra.mxu0 %vm570_vm3, %v524_v11 }
 0x2cd   :  { %v567_v20 = vpop.f32.mrf.mxu3  ;;  %1291 = vrot.lane.b32.xlu1 %v541_v10, %s7268_s20  ;;  %5710 = vmatpush.xpose.msk.msrb.mxu1 %vm570_vm3, %v548_v19 }
 0x2ce   :  { %786 = vmatpush.msrb.mxu3 %v567_v20  ;;  %v7492_v28 = vpack.i.bf16 %v565_v17, %v567_v20 }
 0x2cf   :  { %1049 = vrot.lane.b32.xlu2 %v543_v50, %s7267_s19  ;;  %840 = vrot.lane.b32.xlu0 %v548_v19, %s7266_s18 }
 0x2d0   :  { %787 = vmatpush.msrb.mxu3 %v565_v17 }
 0x2d1   :  { %5711 = vmatpush.xpose.msk.msrb.mxu1 %vm570_vm3, %v546_v16 }
 0x2d4   :  { %5712 = vmatmul.msk.f32.vlgmr.msrb.gmra.mxu1 %vm570_vm3, %v527_v13 }
 0x2d5   :  { %1084 = vrot.lane.b32.xlu1 %v529_v18, %s7267_s19 }
 0x2d7   :  { %834 = vrot.lane.b32.xlu2 %v527_v13, %s7266_s18  ;;  %1293 = vrot.lane.b32.xlu0 %v543_v50, %s7268_s20 }
 0x2dc   :  { %5713 = vmatmul.msk.f32.gmra.mxu1 %vm570_vm3, %v529_v18 }
 0x2dd   :  { %1088 = vrot.lane.b32.xlu1 %v548_v19, %s7267_s19 }
 0x2df   :  { %1086 = vrot.lane.b32.xlu2 %v546_v16, %s7267_s19  ;;  %1082 = vrot.lane.b32.xlu0 %v527_v13, %s7267_s19 }
 0x2e5   :  { %1537 = vrot.lane.b32.xlu1 %v543_v50, %s7258_s16 }
 0x2e7   :  { %1287 = vrot.lane.b32.xlu2 %v522_v9, %s7268_s20  ;;  %1289 = vrot.lane.b32.xlu0 %v524_v11, %s7268_s20 }
 0x2ed   :  { %1326 = vrot.lane.b32.xlu1 %v527_v13, %s7268_s20 }
 0x2ef   :  { %1535 = vrot.lane.b32.xlu2 %v541_v10, %s7258_s16  ;;  %1330 = vrot.lane.b32.xlu0 %v546_v16, %s7268_s20 }
 0x2f5   :  { %1533 = vrot.lane.b32.xlu1 %v524_v11, %s7258_s16 }
 0x2f7   :  { %1332 = vrot.lane.b32.xlu2 %v548_v19, %s7268_s20  ;;  %1531 = vrot.lane.b32.xlu0 %v522_v9, %s7258_s16 }
 0x2fd   :  { %1574 = vrot.lane.b32.xlu1 %v546_v16, %s7258_s16 }
 0x2ff   :  { %1328 = vrot.lane.b32.xlu2 %v529_v18, %s7268_s20  ;;  %1576 = vrot.lane.b32.xlu0 %v548_v19, %s7258_s16 }
 0x305   :  { %1775 = vrot.lane.b32.xlu1 %v522_v9, %s7269_s1 }
 0x307   :  { %1781 = vrot.lane.b32.xlu2 %v543_v50, %s7269_s1  ;;  %1779 = vrot.lane.b32.xlu0 %v541_v10, %s7269_s1 }
 0x30d   :  { %1820 = vrot.lane.b32.xlu1 %v548_v19, %s7269_s1 }
 0x30f   :  { %1570 = vrot.lane.b32.xlu2 %v527_v13, %s7258_s16  ;;  %1572 = vrot.lane.b32.xlu0 %v529_v18, %s7258_s16 }
 0x311   :  { %v798_v21 = vpop.permute.xlu2 %797 }
 0x315   :  { %1816 = vrot.lane.b32.xlu1 %v529_v18, %s7269_s1 }
 0x317   :  { %1777 = vrot.lane.b32.xlu2 %v524_v11, %s7269_s1  ;;  %1818 = vrot.lane.b32.xlu0 %v546_v16, %s7269_s1 }
 0x319   :  { %v1046_v23 = vpop.permute.xlu2 %1045 }
 0x31d   :  { %6657 = vrot.lane.b32.xlu1 %v7484_v24, %s7258_s16 }
 0x31f   :  { %1814 = vrot.lane.b32.xlu2 %v527_v13, %s7269_s1  ;;  %6647 = vrot.lane.b32.xlu0 %v7484_v24, %s7267_s19 }
 0x321   :  { %v802_v26 = vpop.permute.xlu2 %801  ;;  %v796_v30 = vpop.permute.xlu1 %795 }
 0x322   :  { %5718 = vmatpush.xpose.msk.msra.mxu0 %vm570_vm3, %v802_v26 }
 0x325   :  { %6662 = vrot.lane.b32.xlu1 %v7492_v28, %s7266_s18 }
 0x327   :  { %v800_v31 = vpop.permute.xlu0 %799  ;;  %6642 = vrot.lane.b32.xlu2 %v7484_v24, %s7266_s18  ;;  %6652 = vrot.lane.b32.xlu0 %v7484_v24, %s7268_s20 }
 0x328   :  { %5719 = vmatpush.xpose.msk.msra.mxu0 %vm570_vm3, %v800_v31 }
 0x329   :  { %v1050_v32 = vpop.permute.xlu2 %1049  ;;  %v1044_v34 = vpop.permute.xlu1 %1043 }
 0x32b   :  { %5720 = vmatmul.msk.f32.vlgmr.msra.gmra.mxu0 %vm570_vm3, %v796_v30 }
 0x32c   :  { %5730 = vmatpush.xpose.msk.msrb.mxu0 %vm570_vm3, %v1050_v32 }
 0x32f   :  { %v1048_v36 = vpop.permute.xlu0 %1047  ;;  %6667 = vrot.lane.b32.xlu2 %v7492_v28, %s7267_s19 }
 0x330   :  { %5731 = vmatpush.xpose.msk.msrb.mxu0 %vm570_vm3, %v1048_v36 }
 0x331   :  { %v835_v37 = vpop.permute.xlu2 %834 }
 0x333   :  { %5721 = vmatmul.msk.f32.gmra.mxu0 %vm570_vm3, %v798_v21 }
 0x337   :  { %v839_v38 = vpop.permute.xlu1 %838  ;;  %6672 = vrot.lane.b32.xlu2 %v7492_v28, %s7268_s20 }
 0x339   :  { %v837_v39 = vpop.permute.xlu0 %836  ;;  %v1087_v41 = vpop.permute.xlu2 %1086 }
 0x33b   :  { %5732 = vmatmul.msk.f32.vlgmr.msrb.gmra.mxu0 %vm570_vm3, %v1044_v34 }
 0x33f   :  { %v1292_v42 = vpop.permute.xlu1 %1291 }
 0x341   :  { %v841_v43 = vpop.permute.xlu0 %840  ;;  %v1288_v46 = vpop.permute.xlu2 %1287 }
 0x342   :  { %5722 = vmatpush.xpose.msk.msra.mxu1 %vm570_vm3, %v841_v43  ;;  %v600_v51 = vpop.f32.mrf.mxu0 }
 0x343   :  { %5733 = vmatmul.msk.f32.gmra.mxu0 %vm570_vm3, %v1046_v23  ;;  %v7520_v14 = vadd.f32 %v600_v51, %v7515_v49 }
 0x345   :  { %v641_v55 = vsel %vm570_vm3, %v7520_v14, -inf }
 0x346   :  { %5723 = vmatpush.xpose.msk.msra.mxu1 %vm570_vm3, %v839_v38 }
 0x347   :  { %v1085_v47 = vpop.permute.xlu1 %1084 }
 0x349   :  { %v1294_v52 = vpop.permute.xlu0 %1293  ;;  %5724 = vmatmul.msk.f32.vlgmr.msra.gmra.mxu1 %vm570_vm3, %v835_v37  ;;  %v1536_v53 = vpop.permute.xlu2 %1535 }
 0x34a   :  { %5742 = vmatpush.xpose.msk.msra.mxu0 %vm570_vm3, %v1294_v52  ;;  %v603_v63 = vpop.f32.mrf.mxu0 }
 0x34b   :  { %v7542_v1 = vadd.f32 %v603_v63, %v7536_v62 }
 0x34d   :  { %v644_v2 = vsel %vm570_vm3, %v7542_v1, -inf }
 0x34e   :  { %5743 = vmatpush.xpose.msk.msra.mxu0 %vm570_vm3, %v1292_v42 }
 0x34f   :  { %v1089_v54 = vpop.permute.xlu1 %1088 }
 0x350   :  { %5734 = vmatpush.xpose.msk.msrb.mxu1 %vm570_vm3, %v1089_v54 }
 0x351   :  { %642 = vmax.xlane.f32.xlu0 %v641_v55  ;;  %v1083_v57 = vpop.permute.xlu0 %1082  ;;  %v635_v58 = vpop.f32.mrf.mxu1  ;;  %5725 = vmatmul.msk.f32.gmra.mxu1 %vm570_vm3, %v837_v39 }
 0x352   :  { %v7528_v59 = vadd.f32 %v635_v58, %v7515_v49  ;;  %5744 = vmatmul.msk.f32.vlgmr.msra.gmra.mxu0 %vm570_vm3, %v1288_v46  ;;  %v1333_v35 = vpop.permute.xlu2 %1332 }
 0x354   :  { %5735 = vmatpush.xpose.msk.msrb.mxu1 %vm570_vm3, %v1087_v41  ;;  %v647_v60 = vsel %vm570_vm3, %v7528_v59, -inf }
 0x355   :  { %648 = vmax.xlane.f32.xlu1 %v647_v60 }
 0x357   :  { %v1538_v61 = vpop.permute.xlu1 %1537 }
 0x358   :  { %5746 = vmatpush.xpose.msk.msra.mxu1 %vm570_vm3, %v1333_v35  ;;  %5754 = vmatpush.xpose.msk.msrb.mxu0 %vm570_vm3, %v1538_v61 }
 0x359   :  { %v1290_v40 = vpop.permute.xlu0 %1289  ;;  %5736 = vmatmul.msk.f32.vlgmr.msrb.gmra.mxu1 %vm570_vm3, %v1083_v57  ;;  %v638_v3 = vpop.f32.mrf.mxu1 }
 0x35a   :  { %v1329_v0 = vpop.permute.xlu2 %1328  ;;  %5745 = vmatmul.msk.f32.gmra.mxu0 %vm570_vm3, %v1290_v40  ;;  %v7550_v6 = vadd.f32 %v638_v3, %v7536_v62 }
 0x35c   :  { %5755 = vmatpush.xpose.msk.msrb.mxu0 %vm570_vm3, %v1536_v53  ;;  %v650_v8 = vsel %vm570_vm3, %v7550_v6, -inf }
 0x35f   :  { %v1327_v15 = vpop.permute.xlu1 %1326 }
 0x360   :  { %645 = vmax.xlane.f32.xlu2 %v644_v2 }
 0x361   :  { %v1331_v4 = vpop.permute.xlu0 %1330  ;;  %5737 = vmatmul.msk.f32.gmra.mxu1 %vm570_vm3, %v1085_v47 }
 0x362   :  { %v1782_v5 = vpop.permute.xlu2 %1781  ;;  %5747 = vmatpush.xpose.msk.msra.mxu1 %vm570_vm3, %v1331_v4 }
 0x363   :  { %5766 = vmatpush.xpose.msk.msra.mxu0 %vm570_vm3, %v1782_v5 }
 0x367   :  { %v1534_v7 = vpop.permute.xlu1 %1533 }
 0x368   :  { %651 = vmax.xlane.f32.xlu2 %v650_v8 }
 0x369   :  { %v1532_v9 = vpop.permute.xlu0 %1531  ;;  %5748 = vmatmul.msk.f32.vlgmr.msra.gmra.mxu1 %vm570_vm3, %v1327_v15 }
 0x36a   :  { %v1571_v10 = vpop.permute.xlu2 %1570  ;;  %5756 = vmatmul.msk.f32.vlgmr.msrb.gmra.mxu0 %vm570_vm3, %v1532_v9 }
 0x36f   :  { %v1575_v45 = vpop.permute.xlu1 %1574 }
 0x371   :  { %v1577_v11 = vpop.permute.xlu0 %1576  ;;  %5749 = vmatmul.msk.f32.gmra.mxu1 %vm570_vm3, %v1329_v0 }
 0x372   :  { %v1778_v50 = vpop.permute.xlu2 %1777  ;;  %5757 = vmatmul.msk.f32.gmra.mxu0 %vm570_vm3, %v1534_v7  ;;  %5758 = vmatpush.xpose.msk.msrb.mxu1 %vm570_vm3, %v1577_v11 }
 0x376   :  { %5759 = vmatpush.xpose.msk.msrb.mxu1 %vm570_vm3, %v1575_v45 }
 0x377   :  { %v1776_v12 = vpop.permute.xlu1 %1775 }
 0x379   :  { %v1780_v13 = vpop.permute.xlu0 %1779  ;;  %5760 = vmatmul.msk.f32.vlgmr.msrb.gmra.mxu1 %vm570_vm3, %v1571_v10 }
 0x37a   :  { %v1815_v16 = vpop.permute.xlu2 %1814  ;;  %5767 = vmatpush.xpose.msk.msra.mxu0 %vm570_vm3, %v1780_v13 }
 0x37d   :  { %5768 = vmatmul.msk.f32.vlgmr.msra.gmra.mxu0 %vm570_vm3, %v1776_v12 }
 0x37f   :  { %v1821_v17 = vpop.permute.xlu1 %1820 }
 0x380   :  { %5770 = vmatpush.xpose.msk.msra.mxu1 %vm570_vm3, %v1821_v17 }
 0x381   :  { %v1573_v18 = vpop.permute.xlu0 %1572 }
 0x382   :  { %v6643_v19 = vpop.permute.xlu2 %6642  ;;  %5761 = vmatmul.msk.f32.gmra.mxu1 %vm570_vm3, %v1573_v18 }
 0x383   :  { %v6644_v20 = vunpack.i.l.bf16 %v6643_v19  ;;  %v6645_v21 = vunpack.i.h.bf16 %v6643_v19 }
 0x385   :  { %997 = vmatpush.msra.mxu2 %v6644_v20  ;;  %5769 = vmatmul.msk.f32.gmra.mxu0 %vm570_vm3, %v1778_v50 }
 0x387   :  { %998 = vmatpush.msra.mxu2 %v6645_v21  ;;  %v1817_v23 = vpop.permute.xlu1 %1816 }
 0x389   :  { %v1819_v26 = vpop.permute.xlu0 %1818 }
 0x38a   :  { %5771 = vmatpush.xpose.msk.msra.mxu1 %vm570_vm3, %v1819_v26  ;;  %v7591_v51 = vpop.permute.xlu2 %6667 }
 0x38d   :  { %5772 = vmatmul.msk.f32.vlgmr.msra.gmra.mxu1 %vm570_vm3, %v1815_v16 }
 0x38f   :  { %v7569_v30 = vpop.permute.xlu1 %6657 }
 0x391   :  { %v7580_v42 = vpop.permute.xlu0 %6647 }
 0x392   :  { %v7594_v57 = vpop.permute.xlu2 %6672 }
 0x395   :  { %5773 = vmatmul.msk.f32.gmra.mxu1 %vm570_vm3, %v1817_v23 }
 0x397   :  { %v6663_v31 = vpop.permute.xlu1 %6662 }
 0x398   :  { %v6664_v32 = vunpack.i.l.bf16 %v6663_v31  ;;  %v6665_v34 = vunpack.i.h.bf16 %v6663_v31 }
 0x399   :  { %v7589_v48 = vpop.permute.xlu0 %6652 }
 0x39a   :  { %1034 = vmatpush.msra.mxu3 %v6664_v32 }
 0x39c   :  { %1035 = vmatpush.msra.mxu3 %v6665_v34 }
 0x3a8   :  { %v828_v36 = vpop.f32.mrf.mxu0 }
 0x3a9   :  { %v7573_v37 = vadd.f32 %v828_v36, %v7515_v49 }
 0x3ab   :  { %v873_v38 = vsel %vm570_vm3, %v7573_v37, -inf }
 0x3ac   :  { %874 = vmax.xlane.f32.xlu0 %v873_v38 }
 0x3b0   :  { %v831_v39 = vpop.f32.mrf.mxu0 }
 0x3b1   :  { %v7578_v41 = vadd.f32 %v831_v39, %v7536_v62 }
 0x3b3   :  { %v876_v43 = vsel %vm570_vm3, %v7578_v41, -inf }
 0x3b4   :  { %877 = vmax.xlane.f32.xlu1 %v876_v43 }
 0x3b8   :  { %v1076_v44 = vpop.f32.mrf.mxu0 }
 0x3b9   :  { %v7585_v46 = vadd.f32 %v1076_v44, %v7515_v49 }
 0x3bb   :  { %v1121_v47 = vsel %vm570_vm3, %v7585_v46, -inf }
 0x3bc   :  { %1122 = vmax.xlane.f32.xlu2 %v1121_v47 }
 0x3c0   :  { %v1079_v56 = vpop.f32.mrf.mxu0 }
 0x3c4   :  { %v643_v52 = vpop.xlane.xlu0 %642 }
 0x3c5   :  { %v653_v53 = vsub.f32 %v7520_v14, %v643_v52 }
 0x3c6   :  { %v867_v54 = vpop.f32.mrf.mxu1 }
 0x3c7   :  { %v657_v55 = vmul.f32 1.442695, %v653_v53  ;;  %v7606_v0 = vadd.f32 %v867_v54, %v7515_v49 }
 0x3c8   :  { %v649_v45 = vpop.xlane.xlu1 %648 }
 0x3c9   :  { %6849 = vpow2.f32 %v657_v55  ;;  %v879_v7 = vsel %vm570_vm3, %v7606_v0, -inf  ;;  %v655_v17 = vsub.f32 %v7528_v59, %v649_v45 }
 0x3cb   :  { %v661_v20 = vmul.f32 1.442695, %v655_v17 }
 0x3ce   :  { %v870_v58 = vpop.f32.mrf.mxu1 }
 0x3cf   :  { %v7596_v35 = vpop.eup %6849  ;;  %v7599_v60 = vadd.f32 %v870_v58, %v7536_v62  ;;  %v1320_v61 = vpop.f32.mrf.mxu0 }
 0x3d0   :  { %v665_v63 = vsel %vm570_vm3, %v7596_v35, 0.0  ;;  %v7610_v2 = vadd.f32 %v1320_v61, %v7515_v49 }
 0x3d1   :  { %666 = vadd.xlane.f32.xlu0 %v665_v63  ;;  %v882_v14 = vsel %vm570_vm3, %v7599_v60, -inf }
 0x3d2   :  { %883 = vmax.xlane.f32.xlu1 %v882_v14  ;;  %v1365_v9 = vsel %vm570_vm3, %v7610_v2, -inf }
 0x3d3   :  { %v646_v40 = vpop.xlane.xlu2 %645 }
 0x3d4   :  { %v654_v15 = vsub.f32 %v7542_v1, %v646_v40 }
 0x3d6   :  { %v659_v3 = vmul.f32 1.442695, %v654_v15  ;;  %v1115_v4 = vpop.f32.mrf.mxu1 }
 0x3d7   :  { %v7613_v5 = vadd.f32 %v1115_v4, %v7515_v49  ;;  %v1323_v1 = vpop.f32.mrf.mxu0 }
 0x3d8   :  { %6851 = vpow2.f32 %v659_v3  ;;  %v7623_v50 = vadd.f32 %v1323_v1, %v7536_v62 }
 0x3d9   :  { %880 = vmax.xlane.f32.xlu0 %v879_v7  ;;  %v1127_v8 = vsel %vm570_vm3, %v7613_v5, -inf }
 0x3da   :  { %1128 = vmax.xlane.f32.xlu2 %v1127_v8  ;;  %1366 = vmax.xlane.f32.xlu1 %v1365_v9  ;;  %v1368_v19 = vsel %vm570_vm3, %v7623_v50, -inf }
 0x3db   :  { %v652_v10 = vpop.xlane.xlu2 %651 }
 0x3dc   :  { %v656_v11 = vsub.f32 %v7550_v6, %v652_v10  ;;  %v7633_v6 = vadd.f32 %v1079_v56, %v7536_v62 }
 0x3de   :  { %v7625_v12 = vpop.eup %6851  ;;  %v663_v13 = vmul.f32 1.442695, %v656_v11  ;;  %v1118_v16 = vpop.f32.mrf.mxu1  ;;  %v1124_v32 = vsel %vm570_vm3, %v7633_v6, -inf }
 0x3df   :  { %v668_v18 = vsel %vm570_vm3, %v7625_v12, 0.0  ;;  %v7647_v36 = vadd.f32 %v1118_v16, %v7536_v62 }
 0x3e0   :  { %6853 = vpow2.f32 %v663_v13 }
 0x3e1   :  { %669 = vadd.xlane.f32.xlu0 %v668_v18  ;;  %6855 = vpow2.f32 %v661_v20  ;;  %v1130_v44 = vsel %vm570_vm3, %v7647_v36, -inf }
 0x3e2   :  { %1369 = vmax.xlane.f32.xlu1 %v1368_v19 }
 0x3e6   :  { %v7635_v21 = vpop.eup %6853  ;;  %v1359_v23 = vpop.f32.mrf.mxu1 }
 0x3e7   :  { %v1564_v26 = vpop.f32.mrf.mxu0  ;;  %v674_v59 = vsel %vm570_vm3, %v7635_v21, 0.0  ;;  %v7649_v38 = vpop.eup %6855  ;;  %v7661_v54 = vadd.f32 %v1359_v23, %v7515_v49 }
 0x3e8   :  { %v7640_v31 = vadd.f32 %v1564_v26, %v7515_v49  ;;  %675 = vadd.xlane.f32.xlu2 %v674_v59  ;;  %v671_v47 = vsel %vm570_vm3, %v7649_v38, 0.0 }
 0x3e9   :  { %1125 = vmax.xlane.f32.xlu0 %v1124_v32  ;;  %v1371_v58 = vsel %vm570_vm3, %v7661_v54, -inf }
 0x3ea   :  { %v1609_v34 = vsel %vm570_vm3, %v7640_v31, -inf }
 0x3eb   :  { %1610 = vmax.xlane.f32.xlu1 %v1609_v34 }
 0x3ee   :  { %v1362_v39 = vpop.f32.mrf.mxu1 }
 0x3ef   :  { %v7652_v43 = vadd.f32 %v1362_v39, %v7536_v62  ;;  %v1567_v52 = vpop.f32.mrf.mxu0 }
 0x3f0   :  { %1131 = vmax.xlane.f32.xlu2 %v1130_v44  ;;  %v7664_v55 = vadd.f32 %v1567_v52, %v7536_v62 }
 0x3f1   :  { %672 = vadd.xlane.f32.xlu0 %v671_v47  ;;  %v1374_v53 = vsel %vm570_vm3, %v7652_v43, -inf }
 0x3f2   :  { %v1612_v61 = vsel %vm570_vm3, %v7664_v55, -inf }
 0x3f3   :  { %1375 = vmax.xlane.f32.xlu1 %v1374_v53 }
 0x3f6   :  { %v1603_v56 = vpop.f32.mrf.mxu1 }
 0x3f7   :  { %v7674_v40 = vadd.f32 %v1603_v56, %v7515_v49 }
 0x3f8   :  { %1372 = vmax.xlane.f32.xlu2 %v1371_v58 }
 0x3f9   :  { %1613 = vmax.xlane.f32.xlu0 %v1612_v61  ;;  %v1615_v7 = vsel %vm570_vm3, %v7674_v40, -inf }
 0x3fa   :  { %v1808_v63 = vpop.f32.mrf.mxu0 }
 0x3fb   :  { %v7671_v14 = vadd.f32 %v1808_v63, %v7515_v49 }
 0x3fd   :  { %v1853_v3 = vsel %vm570_vm3, %v7671_v14, -inf }
 0x3ff   :  { %v1606_v15 = vpop.f32.mrf.mxu1 }
 0x400   :  { %v7679_v4 = vadd.f32 %v1606_v15, %v7536_v62  ;;  %1854 = vmax.xlane.f32.xlu2 %v1853_v3 }
 0x401   :  { %1616 = vmax.xlane.f32.xlu0 %v1615_v7 }
 0x402   :  { %v1811_v8 = vpop.f32.mrf.mxu0  ;;  %v1618_v9 = vsel %vm570_vm3, %v7679_v4, -inf }
 0x403   :  { %1619 = vmax.xlane.f32.xlu1 %v1618_v9  ;;  %v7686_v1 = vadd.f32 %v1811_v8, %v7536_v62 }
 0x405   :  { %v1856_v10 = vsel %vm570_vm3, %v7686_v1, -inf }
 0x409   :  { %1857 = vmax.xlane.f32.xlu0 %v1856_v10 }
 0x40a   :  { %v1847_v45 = vpop.f32.mrf.mxu1 }
 0x40b   :  { %v7691_v11 = vadd.f32 %v1847_v45, %v7515_v49 }
 0x40d   :  { %v1859_v13 = vsel %vm570_vm3, %v7691_v11, -inf }
 0x40e   :  { %1860 = vmax.xlane.f32.xlu1 %v1859_v13 }
 0x412   :  { %v1850_v16 = vpop.f32.mrf.mxu1 }
 0x413   :  { %v7696_v17 = vadd.f32 %v1850_v16, %v7536_v62 }
 0x415   :  { %v1862_v18 = vsel %vm570_vm3, %v7696_v17, -inf }
 0x416   :  { %1863 = vmax.xlane.f32.xlu0 %v1862_v18 }
 0x41f   :  { %v875_v19 = vpop.xlane.xlu0 %874 }
 0x420   :  { %v885_v20 = vsub.f32 %v7573_v37, %v875_v19 }
 0x422   :  { %v889_v23 = vmul.f32 1.442695, %v885_v20 }
 0x424   :  { %6857 = vpow2.f32 %v889_v23 }
 0x427   :  { %v878_v26 = vpop.xlane.xlu1 %877 }
 0x428   :  { %v886_v59 = vsub.f32 %v7578_v41, %v878_v26 }
 0x42a   :  { %v7702_v32 = vpop.eup %6857  ;;  %v891_v34 = vmul.f32 1.442695, %v886_v59 }
 0x42b   :  { %v897_v39 = vsel %vm570_vm3, %v7702_v32, 0.0 }
 0x42c   :  { %6859 = vpow2.f32 %v891_v34  ;;  %898 = vadd.xlane.f32.xlu2 %v897_v39 }
 0x42f   :  { %v1123_v44 = vpop.xlane.xlu2 %1122 }
 0x430   :  { %v1133_v47 = vsub.f32 %v7585_v46, %v1123_v44 }
 0x432   :  { %v7707_v52 = vpop.eup %6859  ;;  %v1137_v53 = vmul.f32 1.442695, %v1133_v47 }
 0x433   :  { %v900_v37 = vsel %vm570_vm3, %v7707_v52, 0.0 }
 0x434   :  { %6861 = vpow2.f32 %v1137_v53  ;;  %901 = vadd.xlane.f32.xlu1 %v900_v37  ;;  %v6649_v53 = vunpack.i.l.bf16 %v7580_v42 }
 0x43a   :  { %v7711_v41 = vpop.eup %6861 }
 0x43b   :  { %v1145_v56 = vsel %vm570_vm3, %v7711_v41, 0.0 }
 0x43c   :  { %1146 = vadd.xlane.f32.xlu0 %v1145_v56 }
 0x444   :  { %v667_v58 = vpop.xlane.xlu0 %666 }
 0x445   :  { %6863 = vrcp.f32 %v667_v58  ;;  %v884_v61 = vpop.xlane.xlu1 %883  ;;  %v688_v10 = vand.u32 2147483648, %v667_v58  ;;  %v686_v19 = vand.u32 2147483647, %v667_v58  ;;  %vm682_vm7 = vweird.f32 %v667_v58 }
 0x446   :  { %v888_v45 = vsub.f32 %v7599_v60, %v884_v61  ;;  %v6650_v61 = vunpack.i.h.bf16 %v7580_v42 }
 0x447   :  { %v689_v23 = vor.u32 1.1754944e-38, %v688_v10  ;;  %vm687_vm9 = vcmp.eq.f32.partialorder %v686_v19, 8.507059e+37 }
 0x448   :  { %v895_v26 = vmul.f32 1.442695, %v888_v45 }
 0x44b   :  { %v6864_v63 = vpop.eup %6863 }
 0x44c   :  { %v678_v15 = vmul.f32 %v6864_v63, %v667_v58  ;;  %v881_v46 = vpop.xlane.xlu0 %880  ;;  %vm683_vm6 = vweird.f32 %v6864_v63 }
 0x44d   :  { %v887_v3 = vsub.f32 %v7606_v0, %v881_v46  ;;  %v1367_v7 = vpop.xlane.xlu1 %1366  ;;  %vm684_vm8 = vmor %vm682_vm7, %vm683_vm6  ;;  %v1129_v0 = vpop.xlane.xlu2 %1128 }
 0x44e   :  { %v679_v8 = vsub.f32 1.0, %v678_v15  ;;  %v1377_v9 = vsub.f32 %v7610_v2, %v1367_v7 }
 0x44f   :  { %v893_v13 = vmul.f32 1.442695, %v887_v3 }
 0x450   :  { %v680_v16 = vmul.f32 %v6864_v63, %v679_v8  ;;  %v1381_v18 = vmul.f32 1.442695, %v1377_v9 }
 0x451   :  { %6865 = vpow2.f32 %v893_v13 }
 0x452   :  { %6867 = vpow2.f32 %v1381_v18  ;;  %v681_v20 = vadd.f32 %v6864_v63, %v680_v16 }
 0x454   :  { %v670_v59 = vpop.xlane.xlu0 %669  ;;  %v685_v34 = vsel %vm684_vm8, %v6864_v63, %v681_v20  ;;  %v1135_v63 = vsub.f32 %v7613_v5, %v1129_v0 }
 0x455   :  { %6869 = vrcp.f32 %v670_v59  ;;  %v1370_v2 = vpop.xlane.xlu1 %1369  ;;  %v690_v39 = vsel %vm687_vm9, %v689_v23, %v685_v34  ;;  %v703_v18 = vand.u32 2147483648, %v670_v59  ;;  %v701_v19 = vand.u32 2147483647, %v670_v59 }
 0x456   :  { %v1378_v60 = vsub.f32 %v7623_v50, %v1370_v2  ;;  %v691_v44 = vmul.f32 %v7596_v35, %v690_v39  ;;  %6871 = vpow2.f32 %v895_v26  ;;  %v1141_v10 = vmul.f32 1.442695, %v1135_v63 }
 0x457   :  { %v7720_v47 = vpop.eup %6865  ;;  %vm697_vm11 = vweird.f32 %v670_v59  ;;  %v704_v2 = vor.u32 1.1754944e-38, %v703_v18  ;;  %vm702_vm13 = vcmp.eq.f32.partialorder %v701_v19, 8.507059e+37 }
 0x458   :  { %v7723_v37 = vpop.eup %6867  ;;  %v1383_v56 = vmul.f32 1.442695, %v1378_v60  ;;  %5714 = vmatmul.msk.f32.vlgmr.msrb.gmra.mxu2 %vm570_vm3, %v691_v44  ;;  %v903_v58 = vsel %vm570_vm3, %v7720_v47, 0.0 }
 0x459   :  { %1243 = vmatpush.msrb.mxu2 %v6649_v53  ;;  %904 = vadd.xlane.f32.xlu1 %v903_v58  ;;  %v1389_v35 = vsel %vm570_vm3, %v7723_v37, 0.0 }
 0x45a   :  { %6873 = vpow2.f32 %v1383_v56  ;;  %1390 = vadd.xlane.f32.xlu2 %v1389_v35 }
 0x45b   :  { %v6870_v50 = vpop.eup %6869  ;;  %1244 = vmatpush.msrb.mxu2 %v6650_v61  ;;  %v7732_v15 = vpop.xlane.xlu2 %675 }
 0x45c   :  { %v693_v46 = vmul.f32 %v6870_v50, %v670_v59  ;;  %v1126_v3 = vpop.xlane.xlu0 %1125  ;;  %v7734_v7 = vpop.eup %6871  ;;  %6875 = vrcp.f32 %v7732_v15  ;;  %vm698_vm10 = vweird.f32 %v6870_v50  ;;  %vm727_vm4 = vweird.f32 %v7732_v15 }
 0x45d   :  { %v1134_v8 = vsub.f32 %v7633_v6, %v1126_v3  ;;  %v906_v5 = vsel %vm570_vm3, %v7734_v7, 0.0  ;;  %vm699_vm12 = vmor %vm697_vm11, %vm698_vm10 }
 0x45e   :  { %v694_v42 = vsub.f32 1.0, %v693_v46  ;;  %v7737_v9 = vpop.xlane.xlu1 %1610 }
 0x45f   :  { %v1139_v45 = vmul.f32 1.442695, %v1134_v8  ;;  %v1621_v18 = vsub.f32 %v7640_v31, %v7737_v9 }
 0x460   :  { %v7740_v13 = vpop.eup %6873  ;;  %v695_v16 = vmul.f32 %v6870_v50, %v694_v42 }
 0x461   :  { %6877 = vpow2.f32 %v1139_v45  ;;  %907 = vadd.xlane.f32.xlu1 %v906_v5  ;;  %v1392_v6 = vsel %vm570_vm3, %v7740_v13, 0.0 }
 0x462   :  { %1393 = vadd.xlane.f32.xlu2 %v1392_v6  ;;  %v696_v20 = vadd.f32 %v6870_v50, %v695_v16  ;;  %6879 = vpow2.f32 %v1141_v10  ;;  %v7747_v39 = vpop.eup %6875 }
 0x463   :  { %v1132_v23 = vpop.xlane.xlu2 %1131  ;;  %v723_v61 = vmul.f32 %v7747_v39, %v7732_v15  ;;  %vm728_vm1 = vweird.f32 %v7747_v39 }
 0x464   :  { %v1136_v26 = vsub.f32 %v7647_v36, %v1132_v23  ;;  %v673_v0 = vpop.xlane.xlu0 %672  ;;  %v700_v34 = vsel %vm699_vm12, %v6870_v50, %v696_v20  ;;  %vm729_vm5 = vmor %vm727_vm4, %vm728_vm1 }
 0x465   :  { %6881 = vrcp.f32 %v673_v0  ;;  %v705_v53 = vsel %vm702_vm13, %v704_v2, %v700_v34  ;;  %v724_v3 = vsub.f32 1.0, %v723_v61  ;;  %v718_v6 = vand.u32 2147483648, %v673_v0 }
 0x466   :  { %v1143_v60 = vmul.f32 1.442695, %v1136_v26  ;;  %v1376_v44 = vpop.xlane.xlu1 %1375  ;;  %v706_v59 = vmul.f32 %v7625_v12, %v705_v53  ;;  %v716_v20 = vand.u32 2147483647, %v673_v0  ;;  %vm712_vm15 = vweird.f32 %v673_v0 }
 0x467   :  { %v7749_v56 = vpop.eup %6877  ;;  %v1380_v58 = vsub.f32 %v7652_v43, %v1376_v44  ;;  %v725_v23 = vmul.f32 %v7747_v39, %v724_v3  ;;  %v1625_v2 = vmul.f32 1.442695, %v1621_v18  ;;  %v719_v31 = vor.u32 1.1754944e-38, %v718_v6 }
 0x468   :  { %6883 = vpow2.f32 %v1143_v60  ;;  %v1148_v36 = vsel %vm570_vm3, %v7749_v56, 0.0  ;;  %5715 = vmatmul.msk.f32.gmra.mxu2 %vm570_vm3, %v706_v59  ;;  %v7758_v35 = vpop.eup %6879  ;;  %vm717_vm2 = vcmp.eq.f32.partialorder %v716_v20, 8.507059e+37  ;;  %v731_v61 = vand.u32 2147483647, %v7732_v15 }
 0x469   :  { %1149 = vadd.xlane.f32.xlu0 %v1148_v36  ;;  %v1387_v50 = vmul.f32 1.442695, %v1380_v58  ;;  %v1151_v42 = vsel %vm570_vm3, %v7758_v35, 0.0  ;;  %v726_v59 = vadd.f32 %v7747_v39, %v725_v23  ;;  %v733_v36 = vand.u32 2147483648, %v7732_v15 }
 0x46a   :  { %vm732_vm6 = vcmp.eq.f32.partialorder %v731_v61, 8.507059e+37 }
 0x46b   :  { %v6882_v63 = vpop.eup %6881  ;;  %v1373_v46 = vpop.xlane.xlu2 %1372  ;;  %6885 = vpow2.f32 %v1387_v50 }
 0x46c   :  { %v708_v8 = vmul.f32 %v6882_v63, %v673_v0  ;;  %v1379_v43 = vsub.f32 %v7661_v54, %v1373_v46  ;;  %v1614_v12 = vpop.xlane.xlu0 %1613  ;;  %vm713_vm14 = vweird.f32 %v6882_v63 }
 0x46d   :  { %v1622_v16 = vsub.f32 %v7664_v55, %v1614_v12  ;;  %v6669_v55 = vunpack.i.l.bf16 %v7591_v51  ;;  %vm714_vm0 = vmor %vm712_vm15, %vm713_vm14 }
 0x46e   :  { %v7763_v10 = vpop.eup %6883  ;;  %v709_v45 = vsub.f32 1.0, %v708_v8  ;;  %v1385_v5 = vmul.f32 1.442695, %v1379_v43 }
 0x46f   :  { %v1154_v19 = vsel %vm570_vm3, %v7763_v10, 0.0  ;;  %v1627_v26 = vmul.f32 1.442695, %v1622_v16 }
 0x470   :  { %v710_v54 = vmul.f32 %v6882_v63, %v709_v45  ;;  %6887 = vpow2.f32 %v1385_v5  ;;  %1155 = vadd.xlane.f32.xlu1 %v1154_v19 }
 0x471   :  { %1152 = vadd.xlane.f32.xlu0 %v1151_v42  ;;  %v7773_v60 = vpop.eup %6885  ;;  %6889 = vpow2.f32 %v1627_v26 }
 0x472   :  { %v711_v34 = vadd.f32 %v6882_v63, %v710_v54  ;;  %6891 = vpow2.f32 %v1625_v2  ;;  %v1398_v43 = vsel %vm570_vm3, %v7773_v60, 0.0 }
 0x473   :  { %v1855_v9 = vpop.xlane.xlu2 %1854 }
 0x474   :  { %v1865_v44 = vsub.f32 %v7671_v14, %v1855_v9  ;;  %v1617_v53 = vpop.xlane.xlu0 %1616  ;;  %v715_v58 = vsel %vm714_vm0, %v6882_v63, %v711_v34 }
 0x475   :  { %v720_v0 = vsel %vm717_vm2, %v719_v31, %v715_v58  ;;  %v1623_v3 = vsub.f32 %v7674_v40, %v1617_v53  ;;  %v730_v40 = vsel %vm729_vm5, %v7747_v39, %v726_v59 }
 0x476   :  { %v7780_v50 = vpop.eup %6887  ;;  %v1869_v46 = vmul.f32 1.442695, %v1865_v44  ;;  %v1620_v8 = vpop.xlane.xlu1 %1619  ;;  %v721_v14 = vmul.f32 %v7649_v38, %v720_v0  ;;  %v6670_v38 = vunpack.i.h.bf16 %v7591_v51 }
 0x477   :  { %v1624_v63 = vsub.f32 %v7679_v4, %v1620_v8  ;;  %v1395_v12 = vsel %vm570_vm3, %v7780_v50, 0.0  ;;  %v734_v4 = vor.u32 1.1754944e-38, %v733_v36  ;;  %v1629_v15 = vmul.f32 1.442695, %v1623_v3  ;;  %v7794_v5 = vpop.eup %6889 }
 0x478   :  { %6893 = vpow2.f32 %v1869_v46  ;;  %5716 = vmatmul.msk.f32.vlgmr.msrb.gmra.mxu3 %vm570_vm3, %v721_v14  ;;  %1399 = vadd.xlane.f32.xlu1 %v1398_v43  ;;  %v7796_v18 = vpop.eup %6891  ;;  %v1636_v19 = vsel %vm570_vm3, %v7794_v5, 0.0 }
 0x479   :  { %1396 = vadd.xlane.f32.xlu2 %v1395_v12  ;;  %1278 = vmatpush.msrb.mxu3 %v6669_v55  ;;  %v1631_v42 = vmul.f32 1.442695, %v1624_v63  ;;  %v735_v45 = vsel %vm732_vm6, %v734_v4, %v730_v40  ;;  %6895 = vpow2.f32 %v1629_v15  ;;  %v1633_v54 = vsel %vm570_vm3, %v7796_v18, 0.0 }
 0x47a   :  { %v736_v51 = vmul.f32 %v7635_v21, %v735_v45 }
 0x47b   :  { %1279 = vmatpush.msrb.mxu3 %v6670_v38  ;;  %6897 = vpow2.f32 %v1631_v42  ;;  %v6654_v42 = vunpack.i.l.bf16 %v7589_v48 }
 0x47c   :  { %v1858_v16 = vpop.xlane.xlu0 %1857 }
 0x47d   :  { %v1866_v39 = vsub.f32 %v7686_v1, %v1858_v16  ;;  %v6655_v16 = vunpack.i.h.bf16 %v7589_v48 }
 0x47e   :  { %v7798_v6 = vpop.eup %6893 }
 0x47f   :  { %v1877_v20 = vsel %vm570_vm3, %v7798_v6, 0.0  ;;  %v1871_v23 = vmul.f32 1.442695, %v1866_v39  ;;  %v7809_v26 = vpop.eup %6895 }
 0x480   :  { %5717 = vmatmul.msk.f32.gmra.mxu3 %vm570_vm3, %v736_v51  ;;  %1637 = vadd.xlane.f32.xlu1 %v1636_v19  ;;  %v1639_v21 = vsel %vm570_vm3, %v7809_v26, 0.0 }
 0x481   :  { %1634 = vadd.xlane.f32.xlu2 %v1633_v54  ;;  %1878 = vadd.xlane.f32.xlu0 %v1877_v20  ;;  %v7811_v1 = vpop.eup %6897  ;;  %6899 = vpow2.f32 %v1871_v23  ;;  %v1861_v31 = vpop.xlane.xlu1 %1860 }
 0x482   :  { %v1642_v34 = vsel %vm570_vm3, %v7811_v1, 0.0 }
 0x487   :  { %v7817_v55 = vpop.eup %6899 }
 0x488   :  { %1640 = vadd.xlane.f32.xlu1 %v1639_v21  ;;  %v1880_v2 = vsel %vm570_vm3, %v7817_v55, 0.0 }
 0x489   :  { %1643 = vadd.xlane.f32.xlu2 %v1642_v34  ;;  %v1864_v53 = vpop.xlane.xlu0 %1863 }
 0x48a   :  { %v1868_v39 = vsub.f32 %v7696_v17, %v1864_v53 }
 0x48c   :  { %v1875_v21 = vmul.f32 1.442695, %v1868_v39 }
 0x490   :  { %1881 = vadd.xlane.f32.xlu1 %v1880_v2 }
 0x495   :  { %6682 = vrot.lane.b32.xlu0 %v7484_v24, %s7269_s1  ;;  %v1867_v24 = vsub.f32 %v7691_v11, %v1861_v31 }
 0x497   :  { %v1873_v40 = vmul.f32 1.442695, %v1867_v24 }
 0x49f   :  { %v899_v9 = vpop.xlane.xlu2 %898 }
 0x4a0   :  { %6901 = vrcp.f32 %v899_v9  ;;  %v920_v36 = vand.u32 2147483648, %v899_v9  ;;  %v918_v46 = vand.u32 2147483647, %v899_v9  ;;  %vm914_vm8 = vweird.f32 %v899_v9 }
 0x4a1   :  { %6677 = vrot.lane.b32.xlu2 %v7492_v28, %s7258_s16 }
 0x4a2   :  { %v921_v63 = vor.u32 1.1754944e-38, %v920_v36  ;;  %vm919_vm10 = vcmp.eq.f32.partialorder %v918_v46, 8.507059e+37  ;;  %v6659_v36 = vunpack.i.l.bf16 %v7569_v30  ;;  %v6660_v46 = vunpack.i.h.bf16 %v7569_v30 }
 0x4a6   :  { %v6902_v44 = vpop.eup %6901 }
 0x4a7   :  { %v910_v58 = vmul.f32 %v6902_v44, %v899_v9  ;;  %v902_v59 = vpop.xlane.xlu1 %901  ;;  %vm915_vm7 = vweird.f32 %v6902_v44 }
 0x4a8   :  { %6903 = vrcp.f32 %v902_v59  ;;  %vm916_vm9 = vmor %vm914_vm8, %vm915_vm7  ;;  %v935_v15 = vand.u32 2147483648, %v902_v59  ;;  %v933_v11 = vand.u32 2147483647, %v902_v59  ;;  %vm929_vm12 = vweird.f32 %v902_v59 }
 0x4a9   :  { %v911_v0 = vsub.f32 1.0, %v910_v58  ;;  %6687 = vrot.lane.b32.xlu1 %v7492_v28, %s7269_s1 }
 0x4aa   :  { %v936_v20 = vor.u32 1.1754944e-38, %v935_v15  ;;  %vm934_vm14 = vcmp.eq.f32.partialorder %v933_v11, 8.507059e+37 }
 0x4ab   :  { %v912_v61 = vmul.f32 %v6902_v44, %v911_v0 }
 0x4ad   :  { %v913_v3 = vadd.f32 %v6902_v44, %v912_v61 }
 0x4ae   :  { %v6904_v8 = vpop.eup %6903 }
 0x4af   :  { %v917_v14 = vsel %vm916_vm9, %v6902_v44, %v913_v3  ;;  %v925_v43 = vmul.f32 %v6904_v8, %v902_v59  ;;  %v1147_v12 = vpop.xlane.xlu0 %1146  ;;  %vm930_vm11 = vweird.f32 %v6904_v8 }
 0x4b0   :  { %6905 = vrcp.f32 %v1147_v12  ;;  %v922_v4 = vsel %vm919_vm10, %v921_v63, %v917_v14  ;;  %vm931_vm13 = vmor %vm929_vm12, %vm930_vm11  ;;  %v1168_v2 = vand.u32 2147483648, %v1147_v12  ;;  %v1166_v17 = vand.u32 2147483647, %v1147_v12 }
 0x4b1   :  { %v926_v38 = vsub.f32 1.0, %v925_v43  ;;  %v923_v28 = vmul.f32 %v7702_v32, %v922_v4  ;;  %6907 = vpow2.f32 %v1873_v40  ;;  %vm1162_vm0 = vweird.f32 %v1147_v12 }
 0x4b2   :  { %6909 = vpow2.f32 %v1875_v21  ;;  %v1169_v53 = vor.u32 1.1754944e-38, %v1168_v2  ;;  %vm1167_vm2 = vcmp.eq.f32.partialorder %v1166_v17, 8.507059e+37  ;;  %v6675_v21 = vunpack.i.h.bf16 %v7594_v57 }
 0x4b3   :  { %v927_v45 = vmul.f32 %v6904_v8, %v926_v38  ;;  %5726 = vmatmul.msk.f32.vlgmr.msra.gmra.mxu2 %vm570_vm3, %v923_v28 }
 0x4b4   :  { %1487 = vmatpush.msra.mxu2 %v6654_v42 }
 0x4b5   :  { %v928_v51 = vadd.f32 %v6904_v8, %v927_v45 }
 0x4b6   :  { %v6906_v19 = vpop.eup %6905  ;;  %1488 = vmatpush.msra.mxu2 %v6655_v16 }
 0x4b7   :  { %v1158_v32 = vmul.f32 %v6906_v19, %v1147_v12  ;;  %v932_v54 = vsel %vm931_vm13, %v6904_v8, %v928_v51  ;;  %v7834_v31 = vpop.eup %6907  ;;  %vm1163_vm15 = vweird.f32 %v6906_v19 }
 0x4b8   :  { %v937_v23 = vsel %vm934_vm14, %v936_v20, %v932_v54  ;;  %vm1164_vm1 = vmor %vm1162_vm0, %vm1163_vm15  ;;  %v1883_v58 = vsel %vm570_vm3, %v7834_v31, 0.0  ;;  %v7840_v61 = vpop.eup %6909  ;;  %v6674_v20 = vunpack.i.l.bf16 %v7594_v57 }
 0x4b9   :  { %v1159_v34 = vsub.f32 1.0, %v1158_v32  ;;  %v938_v48 = vmul.f32 %v7707_v52, %v937_v23  ;;  %v1886_v24 = vsel %vm570_vm3, %v7840_v61, 0.0 }
 0x4bb   :  { %v1160_v9 = vmul.f32 %v6906_v19, %v1159_v34  ;;  %5727 = vmatmul.msk.f32.gmra.mxu2 %vm570_vm3, %v938_v48 }
 0x4bd   :  { %v1161_v44 = vadd.f32 %v6906_v19, %v1160_v9 }
 0x4bf   :  { %v1165_v59 = vsel %vm1164_vm1, %v6906_v19, %v1161_v44  ;;  %1884 = vadd.xlane.f32.xlu0 %v1883_v58 }
 0x4c0   :  { %v1170_v52 = vsel %vm1167_vm2, %v1169_v53, %v1165_v59 }
 0x4c1   :  { %v1171_v0 = vmul.f32 %v7711_v41, %v1170_v52 }
 0x4c3   :  { %5738 = vmatmul.msk.f32.vlgmr.msrb.gmra.mxu2 %vm570_vm3, %v1171_v0 }
 0x4c4   :  { %1731 = vmatpush.msrb.mxu2 %v6659_v36 }
 0x4c6   :  { %1732 = vmatpush.msrb.mxu2 %v6660_v46 }
 0x4c7   :  { %1887 = vadd.xlane.f32.xlu0 %v1886_v24 }
 0x4cc   :  { %v905_v3 = vpop.xlane.xlu1 %904 }
 0x4cd   :  { %6911 = vrcp.f32 %v905_v3  ;;  %v7847_v8 = vpop.xlane.xlu2 %1390  ;;  %v950_v12 = vand.u32 2147483648, %v905_v3  ;;  %v948_v30 = vand.u32 2147483647, %v905_v3  ;;  %vm944_vm5 = vweird.f32 %v905_v3 }
 0x4ce   :  { %vm1406_vm1 = vweird.f32 %v7847_v8 }
 0x4cf   :  { %v951_v28 = vor.u32 1.1754944e-38, %v950_v12  ;;  %vm949_vm7 = vcmp.eq.f32.partialorder %v948_v30, 8.507059e+37  ;;  %v1410_v12 = vand.u32 2147483647, %v7847_v8 }
 0x4d3   :  { %v6912_v14 = vpop.eup %6911 }
 0x4d4   :  { %v940_v41 = vmul.f32 %v6912_v14, %v905_v3  ;;  %v908_v63 = vpop.xlane.xlu1 %907  ;;  %vm945_vm4 = vweird.f32 %v6912_v14 }
 0x4d5   :  { %6913 = vrcp.f32 %v908_v63  ;;  %vm946_vm6 = vmor %vm944_vm5, %vm945_vm4  ;;  %v7850_v15 = vpop.xlane.xlu2 %1393  ;;  %v965_v23 = vand.u32 2147483648, %v908_v63  ;;  %v963_v34 = vand.u32 2147483647, %v908_v63  ;;  %vm959_vm9 = vweird.f32 %v908_v63 }
 0x4d6   :  { %v941_v43 = vsub.f32 1.0, %v940_v41  ;;  %6915 = vrcp.f32 %v7847_v8  ;;  %vm1411_vm5 = vcmp.eq.f32.partialorder %v1410_v12, 8.507059e+37 }
 0x4d7   :  { %v966_v59 = vor.u32 1.1754944e-38, %v965_v23  ;;  %vm964_vm11 = vcmp.eq.f32.partialorder %v963_v34, 8.507059e+37 }
 0x4d8   :  { %v942_v40 = vmul.f32 %v6912_v14, %v941_v43 }
 0x4da   :  { %v943_v38 = vadd.f32 %v6912_v14, %v942_v40 }
 0x4db   :  { %v6914_v4 = vpop.eup %6913 }
 0x4dc   :  { %v7852_v42 = vpop.eup %6915  ;;  %v947_v45 = vsel %vm946_vm6, %v6912_v14, %v943_v38  ;;  %v955_v11 = vmul.f32 %v6914_v4, %v908_v63  ;;  %v1150_v16 = vpop.xlane.xlu0 %1149  ;;  %vm960_vm8 = vweird.f32 %v6914_v4 }
 0x4dd   :  { %6917 = vrcp.f32 %v1150_v16  ;;  %v952_v39 = vsel %vm949_vm7, %v951_v28, %v947_v45  ;;  %v1402_v32 = vmul.f32 %v7852_v42, %v7847_v8  ;;  %vm961_vm10 = vmor %vm959_vm9, %vm960_vm8  ;;  %v1183_v3 = vand.u32 2147483648, %v1150_v16 }
 0x4de   :  { %v956_v51 = vsub.f32 1.0, %v955_v11  ;;  %6919 = vrcp.f32 %v7850_v15  ;;  %v953_v19 = vmul.f32 %v7720_v47, %v952_v39  ;;  %v1181_v14 = vand.u32 2147483647, %v1150_v16 }
 0x4df   :  { %v1403_v9 = vsub.f32 1.0, %v1402_v32  ;;  %vm1177_vm13 = vweird.f32 %v1150_v16  ;;  %vm1407_vm14 = vweird.f32 %v7852_v42  ;;  %v1184_v11 = vor.u32 1.1754944e-38, %v1183_v3 }
 0x4e0   :  { %5728 = vmatmul.msk.f32.vlgmr.msra.gmra.mxu3 %vm570_vm3, %v953_v19  ;;  %v957_v54 = vmul.f32 %v6914_v4, %v956_v51  ;;  %vm1182_vm0 = vcmp.eq.f32.partialorder %v1181_v14, 8.507059e+37  ;;  %vm7891_vm2 = vmor %vm1406_vm1, %vm1407_vm14  ;;  %vm1421_vm7 = vweird.f32 %v7850_v15  ;;  %v1427_v14 = vand.u32 2147483648, %v7850_v15 }
 0x4e1   :  { %1522 = vmatpush.msra.mxu3 %v6674_v20  ;;  %v1404_v46 = vmul.f32 %v7852_v42, %v1403_v9 }
 0x4e2   :  { %v958_v48 = vadd.f32 %v6914_v4, %v957_v54 }
 0x4e3   :  { %v6918_v2 = vpop.eup %6917  ;;  %1523 = vmatpush.msra.mxu3 %v6675_v21  ;;  %v7861_v47 = vpop.xlane.xlu1 %1155  ;;  %v1405_v38 = vadd.f32 %v7852_v42, %v1404_v46 }
 0x4e4   :  { %v7863_v17 = vpop.eup %6919  ;;  %v1173_v44 = vmul.f32 %v6918_v2, %v1150_v16  ;;  %6921 = vrcp.f32 %v7861_v47  ;;  %v7866_v53 = vpop.xlane.xlu0 %1152  ;;  %v962_v58 = vsel %vm961_vm10, %v6914_v4, %v958_v48  ;;  %vm1178_vm12 = vweird.f32 %v6918_v2 }
 0x4e5   :  { %6923 = vrcp.f32 %v7866_v53  ;;  %v967_v52 = vsel %vm964_vm11, %v966_v59, %v962_v58  ;;  %v1417_v0 = vmul.f32 %v7863_v17, %v7850_v15  ;;  %vm1179_vm15 = vmor %vm1177_vm13, %vm1178_vm12  ;;  %v1412_v16 = vand.u32 2147483648, %v7847_v8 }
 0x4e6   :  { %v1174_v57 = vsub.f32 1.0, %v1173_v44  ;;  %v968_v36 = vmul.f32 %v7734_v7, %v967_v52  ;;  %v1198_v32 = vand.u32 2147483648, %v7866_v53  ;;  %v1409_v8 = vsel %vm7891_vm2, %v7852_v42, %v1405_v38 }
 0x4e7   :  { %v1418_v40 = vsub.f32 1.0, %v1417_v0  ;;  %v1196_v34 = vand.u32 2147483647, %v7866_v53  ;;  %v1413_v48 = vor.u32 1.1754944e-38, %v1412_v16  ;;  %vm1192_vm6 = vweird.f32 %v7866_v53 }
 0x4e8   :  { %v1175_v24 = vmul.f32 %v6918_v2, %v1174_v57  ;;  %5729 = vmatmul.msk.f32.gmra.mxu3 %vm570_vm3, %v968_v36  ;;  %v1199_v42 = vor.u32 1.1754944e-38, %v1198_v32  ;;  %vm1422_vm9 = vweird.f32 %v7863_v17  ;;  %v1213_v12 = vand.u32 2147483648, %v7861_v47 }
 0x4e9   :  { %v1419_v23 = vmul.f32 %v7863_v17, %v1418_v40  ;;  %v1414_v59 = vsel %vm1411_vm5, %v1413_v48, %v1409_v8  ;;  %vm1197_vm10 = vcmp.eq.f32.partialorder %v1196_v34, 8.507059e+37  ;;  %vm1207_vm12 = vweird.f32 %v7861_v47  ;;  %vm7937_vm13 = vmor %vm1421_vm7, %vm1422_vm9 }
 0x4ea   :  { %v7874_v41 = vpop.eup %6921  ;;  %v1176_v63 = vadd.f32 %v6918_v2, %v1175_v24  ;;  %v1214_v16 = vor.u32 1.1754944e-38, %v1213_v12 }
 0x4eb   :  { %v6924_v43 = vpop.eup %6923  ;;  %v1203_v7 = vmul.f32 %v7874_v41, %v7861_v47  ;;  %v7880_v30 = vpop.xlane.xlu1 %1399  ;;  %v1420_v57 = vadd.f32 %v7863_v17, %v1419_v23  ;;  %vm1208_vm11 = vweird.f32 %v7874_v41 }
 0x4ec   :  { %v1188_v4 = vmul.f32 %v6924_v43, %v7866_v53  ;;  %v7884_v28 = vpop.xlane.xlu2 %1396  ;;  %v1180_v45 = vsel %vm1179_vm15, %v6918_v2, %v1176_v63  ;;  %vm1193_vm4 = vweird.f32 %v6924_v43  ;;  %vm7943_vm14 = vmor %vm1207_vm12, %vm1208_vm11 }
 0x4ed   :  { %v1204_v39 = vsub.f32 1.0, %v1203_v7  ;;  %6925 = vrcp.f32 %v7884_v28  ;;  %v1185_v19 = vsel %vm1182_vm0, %v1184_v11, %v1180_v45  ;;  %vm1194_vm8 = vmor %vm1192_vm6, %vm1193_vm4  ;;  %v1211_v7 = vand.u32 2147483647, %v7861_v47 }
 0x4ee   :  { %v1189_v51 = vsub.f32 1.0, %v1188_v4  ;;  %6927 = vrcp.f32 %v7880_v30  ;;  %v1186_v54 = vmul.f32 %v7749_v56, %v1185_v19  ;;  %v1425_v56 = vand.u32 2147483647, %v7850_v15 }
 0x4ef   :  { %v1205_v2 = vmul.f32 %v7874_v41, %v1204_v39  ;;  %v1428_v45 = vor.u32 1.1754944e-38, %v1427_v14  ;;  %vm1212_vm0 = vcmp.eq.f32.partialorder %v1211_v7, 8.507059e+37  ;;  %v1440_v32 = vand.u32 2147483647, %v7884_v28 }
 0x4f0   :  { %v1190_v21 = vmul.f32 %v6924_v43, %v1189_v51  ;;  %5739 = vmatmul.msk.f32.gmra.mxu2 %vm570_vm3, %v1186_v54  ;;  %vm1426_vm15 = vcmp.eq.f32.partialorder %v1425_v56, 8.507059e+37  ;;  %vm1436_vm2 = vweird.f32 %v7884_v28  ;;  %v1442_v48 = vand.u32 2147483648, %v7884_v28 }
 0x4f1   :  { %v1206_v3 = vadd.f32 %v7874_v41, %v1205_v2  ;;  %vm1451_vm4 = vweird.f32 %v7880_v30  ;;  %vm7982_vm6 = vcmp.eq.f32.partialorder %v1440_v32, 8.507059e+37 }
 0x4f2   :  { %v1191_v9 = vadd.f32 %v6924_v43, %v1190_v21  ;;  %v1443_v14 = vor.u32 1.1754944e-38, %v1442_v48 }
 0x4f3   :  { %v7908_v44 = vpop.eup %6925  ;;  %v7910_v58 = vpop.xlane.xlu1 %1637  ;;  %v1210_v15 = vsel %vm7943_vm14, %v7874_v41, %v1206_v3 }
 0x4f4   :  { %v1195_v52 = vsel %vm1194_vm8, %v6924_v43, %v1191_v9  ;;  %v1432_v53 = vmul.f32 %v7908_v44, %v7884_v28  ;;  %6929 = vrcp.f32 %v7910_v58  ;;  %v7917_v0 = vpop.xlane.xlu0 %1878  ;;  %v7919_v36 = vpop.xlane.xlu2 %1634  ;;  %v1415_v43 = vmul.f32 %v7723_v37, %v1414_v59 }
 0x4f5   :  { %v7921_v46 = vpop.eup %6927  ;;  %v1200_v24 = vsel %vm1197_vm10, %v1199_v42, %v1195_v52  ;;  %6931 = vrcp.f32 %v7919_v36  ;;  %v1215_v41 = vsel %vm1212_vm0, %v1214_v16, %v1210_v15  ;;  %vm1437_vm1 = vweird.f32 %v7908_v44 }
 0x4f6   :  { %v1433_v63 = vsub.f32 1.0, %v1432_v53  ;;  %6933 = vrcp.f32 %v7917_v0  ;;  %v1201_v40 = vmul.f32 %v7758_v35, %v1200_v24  ;;  %v1447_v37 = vmul.f32 %v7921_v46, %v7880_v30  ;;  %vm7978_vm5 = vmor %vm1436_vm2, %vm1437_vm1 }
 0x4f7   :  { %v1424_v35 = vsel %vm7937_vm13, %v7863_v17, %v1420_v57  ;;  %v1654_v56 = vand.u32 2147483647, %v7919_v36  ;;  %v1656_v42 = vand.u32 2147483648, %v7919_v36  ;;  %v1216_v59 = vmul.f32 %v7763_v10, %v1215_v41 }
 0x4f8   :  { %v1434_v47 = vmul.f32 %v7908_v44, %v1433_v63  ;;  %5740 = vmatmul.msk.f32.vlgmr.msrb.gmra.mxu3 %vm570_vm3, %v1201_v40  ;;  %5750 = vmatmul.msk.f32.vlgmr.msra.gmra.mxu2 %vm570_vm3, %v1415_v43  ;;  %v1429_v17 = vsel %vm1426_vm15, %v1428_v45, %v1424_v35  ;;  %v1448_v20 = vsub.f32 1.0, %v1447_v37  ;;  %vm1650_vm8 = vweird.f32 %v7919_v36 }
 0x4f9   :  { %v1430_v2 = vmul.f32 %v7740_v13, %v1429_v17  ;;  %vm1452_vm9 = vweird.f32 %v7921_v46  ;;  %v1455_v63 = vand.u32 2147483647, %v7880_v30  ;;  %vm8001_vm10 = vcmp.eq.f32.partialorder %v1654_v56, 8.507059e+37 }
 0x4fa   :  { %v7956_v11 = vpop.eup %6929  ;;  %v1435_v8 = vadd.f32 %v7908_v44, %v1434_v47  ;;  %v1449_v28 = vmul.f32 %v7921_v46, %v1448_v20  ;;  %v1657_v12 = vor.u32 1.1754944e-38, %v1656_v42  ;;  %v1457_v17 = vand.u32 2147483648, %v7880_v30  ;;  %vm8028_vm13 = vmor %vm1451_vm4, %vm1452_vm9 }
 0x4fb   :  { %v1661_v39 = vmul.f32 %v7956_v11, %v7910_v58  ;;  %v7960_v51 = vpop.xlane.xlu1 %1640  ;;  %v6932_v19 = vpop.eup %6931  ;;  %vm1666_vm12 = vweird.f32 %v7956_v11  ;;  %v1671_v20 = vand.u32 2147483648, %v7910_v58  ;;  %vm1665_vm14 = vweird.f32 %v7910_v58 }
 0x4fc   :  { %6935 = vrcp.f32 %v7960_v51  ;;  %v7964_v54 = vpop.xlane.xlu2 %1643  ;;  %v7966_v23 = vpop.eup %6933  ;;  %v1646_v34 = vmul.f32 %v6932_v19, %v7919_v36  ;;  %v1439_v53 = vsel %vm7978_vm5, %v7908_v44, %v1435_v8  ;;  %vm1651_vm7 = vweird.f32 %v6932_v19  ;;  %vm8040_vm15 = vmor %vm1665_vm14, %vm1666_vm12 }
 0x4fd   :  { %v1662_v21 = vsub.f32 1.0, %v1661_v39  ;;  %v1890_v13 = vmul.f32 %v7966_v23, %v7917_v0  ;;  %6937 = vrcp.f32 %v7964_v54  ;;  %vm1652_vm11 = vmor %vm1650_vm8, %vm1651_vm7  ;;  %v1444_v37 = vsel %vm7982_vm6, %v1443_v14, %v1439_v53 }
 0x4fe   :  { %v1647_v9 = vsub.f32 1.0, %v1646_v34  ;;  %v1450_v4 = vadd.f32 %v7921_v46, %v1449_v28  ;;  %v1445_v41 = vmul.f32 %v7780_v50, %v1444_v37  ;;  %v1458_v42 = vor.u32 1.1754944e-38, %v1457_v17 }
 0x4ff   :  { %v1663_v24 = vmul.f32 %v7956_v11, %v1662_v21  ;;  %v1891_v38 = vsub.f32 1.0, %v1890_v13  ;;  %v1669_v21 = vand.u32 2147483647, %v7910_v58  ;;  %vm1456_vm0 = vcmp.eq.f32.partialorder %v1455_v63, 8.507059e+37 }
 0x500   :  { %v1648_v10 = vmul.f32 %v6932_v19, %v1647_v9  ;;  %5741 = vmatmul.msk.f32.gmra.mxu3 %vm570_vm3, %v1216_v59  ;;  %5751 = vmatmul.msk.f32.gmra.mxu2 %vm570_vm3, %v1430_v2  ;;  %v1454_v50 = vsel %vm8028_vm13, %v7921_v46, %v1450_v4  ;;  %v1672_v59 = vor.u32 1.1754944e-38, %v1671_v20  ;;  %vm1895_vm2 = vweird.f32 %v7966_v23 }
 0x501   :  { %v1664_v15 = vadd.f32 %v7956_v11, %v1663_v24  ;;  %v1892_v34 = vmul.f32 %v7966_v23, %v1891_v38  ;;  %vm1670_vm1 = vcmp.eq.f32.partialorder %v1669_v21, 8.507059e+37  ;;  %v1459_v13 = vsel %vm1456_vm0, %v1458_v42, %v1454_v50 }
 0x502   :  { %v7996_v3 = vpop.eup %6935  ;;  %v1649_v43 = vadd.f32 %v6932_v19, %v1648_v10  ;;  %vm1894_vm5 = vweird.f32 %v7917_v0  ;;  %v1898_v24 = vand.u32 2147483647, %v7917_v0  ;;  %v1900_v14 = vand.u32 2147483648, %v7917_v0 }
 0x503   :  { %v1676_v40 = vmul.f32 %v7996_v3, %v7960_v51  ;;  %v8007_v7 = vpop.xlane.xlu1 %1881  ;;  %v8016_v45 = vpop.eup %6937  ;;  %v1668_v9 = vsel %vm8040_vm15, %v7956_v11, %v1664_v15  ;;  %v1893_v52 = vadd.f32 %v7966_v23, %v1892_v34  ;;  %vm1681_vm4 = vweird.f32 %v7996_v3  ;;  %vm8064_vm6 = vmor %vm1894_vm5, %vm1895_vm2 }
 0x504   :  { %6939 = vrcp.f32 %v8007_v7  ;;  %v6678_v36 = vpop.permute.xlu2 %6677  ;;  %v1653_v35 = vsel %vm1652_vm11, %v6932_v19, %v1649_v43  ;;  %v1691_v58 = vmul.f32 %v8016_v45, %v7964_v54  ;;  %v1673_v28 = vsel %vm1670_vm1, %v1672_v59, %v1668_v9 }
 0x505   :  { %v1677_v47 = vsub.f32 1.0, %v1676_v40  ;;  %v6679_v16 = vunpack.i.l.bf16 %v6678_v36  ;;  %v1658_v39 = vsel %vm8001_vm10, %v1657_v12, %v1653_v35  ;;  %v6680_v48 = vunpack.i.h.bf16 %v6678_v36 }
 0x506   :  { %v1659_v19 = vmul.f32 %v7796_v18, %v1658_v39  ;;  %v1692_v53 = vsub.f32 1.0, %v1691_v58  ;;  %v1686_v63 = vand.u32 2147483648, %v7960_v51  ;;  %vm1680_vm7 = vweird.f32 %v7960_v51 }
 0x507   :  { %v6683_v32 = vpop.permute.xlu0 %6682  ;;  %1766 = vmatpush.msrb.mxu3 %v6679_v16  ;;  %v1678_v30 = vmul.f32 %v7996_v3, %v1677_v47  ;;  %v1684_v44 = vand.u32 2147483647, %v7960_v51  ;;  %v1460_v12 = vmul.f32 %v7773_v60, %v1459_v13  ;;  %v1674_v40 = vmul.f32 %v7794_v5, %v1673_v28  ;;  %vm1682_vm8 = vmor %vm1680_vm7, %vm1681_vm4 }
 0x508   :  { %v6684_v2 = vunpack.i.l.bf16 %v6683_v32  ;;  %5752 = vmatmul.msk.f32.vlgmr.msra.gmra.mxu3 %vm570_vm3, %v1445_v41  ;;  %5762 = vmatmul.msk.f32.vlgmr.msrb.gmra.mxu2 %vm570_vm3, %v1659_v19  ;;  %v6685_v56 = vunpack.i.h.bf16 %v6683_v32  ;;  %v1897_v38 = vsel %vm8064_vm6, %v7966_v23, %v1893_v52  ;;  %v1693_v36 = vmul.f32 %v8016_v45, %v1692_v53 }
 0x509   :  { %1767 = vmatpush.msrb.mxu3 %v6680_v48  ;;  %v1679_v11 = vadd.f32 %v7996_v3, %v1678_v30  ;;  %v1901_v51 = vor.u32 1.1754944e-38, %v1900_v14  ;;  %v1687_v4 = vor.u32 1.1754944e-38, %v1686_v63  ;;  %vm1899_vm9 = vcmp.eq.f32.partialorder %v1898_v24, 8.507059e+37 }
 0x50a   :  { %v8052_v46 = vpop.eup %6939  ;;  %1975 = vmatpush.msra.mxu2 %v6684_v2  ;;  %vm1685_vm10 = vcmp.eq.f32.partialorder %v1684_v44, 8.507059e+37  ;;  %vm1696_vm11 = vweird.f32 %v8016_v45  ;;  %v1694_v23 = vadd.f32 %v8016_v45, %v1693_v36  ;;  %vm1695_vm13 = vweird.f32 %v7964_v54 }
 0x50b   :  { %v1905_v57 = vmul.f32 %v8052_v46, %v8007_v7  ;;  %v1683_v0 = vsel %vm1682_vm8, %v7996_v3, %v1679_v11  ;;  %v1902_v60 = vsel %vm1899_vm9, %v1901_v51, %v1897_v38  ;;  %vm1910_vm12 = vweird.f32 %v8052_v46  ;;  %vm1697_vm14 = vmor %vm1695_vm13, %vm1696_vm11 }
 0x50c   :  { %1976 = vmatpush.msra.mxu2 %v6685_v56  ;;  %v1688_v5 = vsel %vm1685_vm10, %v1687_v4, %v1683_v0  ;;  %v1699_v35 = vand.u32 2147483647, %v7964_v54  ;;  %v1701_v47 = vand.u32 2147483648, %v7964_v54  ;;  %v1915_v15 = vand.u32 2147483648, %v8007_v7  ;;  %v8109_v0 = vpop.f32.mrf.mxu3 }
 0x50d   :  { %v1906_v10 = vsub.f32 1.0, %v1905_v57  ;;  %v1689_v16 = vmul.f32 %v7809_v26, %v1688_v5  ;;  %v1903_v39 = vmul.f32 %v7798_v6, %v1902_v60  ;;  %vm1909_vm15 = vweird.f32 %v8007_v7 }
 0x50e   :  { %v1913_v17 = vand.u32 2147483647, %v8007_v7  ;;  %vm1911_vm0 = vmor %vm1909_vm15, %vm1910_vm12  ;;  %v1698_v20 = vsel %vm1697_vm14, %v8016_v45, %v1694_v23  ;;  %v1702_v32 = vor.u32 1.1754944e-38, %v1701_v47  ;;  %v1916_v41 = vor.u32 1.1754944e-38, %v1915_v15  ;;  %v8100_v45 = vpop.f32.mrf.mxu2 }
 0x50f   :  { %v1907_v37 = vmul.f32 %v8052_v46, %v1906_v10  ;;  %vm1700_vm1 = vcmp.eq.f32.partialorder %v1699_v35, 8.507059e+37  ;;  %vm2103_vm12 = vcmask 261120   ;;  %vm2108_vm13 = vcmask 392192  }
 0x510   :  { %5753 = vmatmul.msk.f32.gmra.mxu3 %vm570_vm3, %v1460_v12  ;;  %5763 = vmatmul.msk.f32.gmra.mxu2 %vm570_vm3, %v1674_v40  ;;  %vm1914_vm2 = vcmp.eq.f32.partialorder %v1913_v17, 8.507059e+37  ;;  %v1703_v26 = vsel %vm1700_vm1, %v1702_v32, %v1698_v20  ;;  %vm2113_vm14 = vcmask 523264   ;;  %vm2118_vm15 = vcmask 654336  }
 0x511   :  { %v1908_v3 = vadd.f32 %v8052_v46, %v1907_v37  ;;  %v1704_v7 = vmul.f32 %v7811_v1, %v1703_v26 }
 0x513   :  { %v1912_v54 = vsel %vm1911_vm0, %v8052_v46, %v1908_v3  ;;  %vm2123_vm0 = vcmask 785408  }
 0x514   :  { %v1917_v8 = vsel %vm1914_vm2, %v1916_v41, %v1912_v54  ;;  %vm8134_vm1 = vmpackc.low %vm2123_vm0, %vm2123_vm0 }
 0x515   :  { %v1918_v34 = vmul.f32 %v7817_v55, %v1917_v8 }
 0x516   :  { %v8102_v48 = vpop.f32.mrf.mxu2 }
 0x518   :  { %5764 = vmatmul.msk.f32.vlgmr.msrb.gmra.mxu3 %vm570_vm3, %v1689_v16  ;;  %5774 = vmatmul.msk.f32.vlgmr.msra.gmra.mxu2 %vm570_vm3, %v1903_v39 }
 0x51b   :  { %v6688_v19 = vpop.permute.xlu1 %6687 }
 0x51c   :  { %v6689_v6 = vunpack.i.l.bf16 %v6688_v19  ;;  %v6690_v21 = vunpack.i.h.bf16 %v6688_v19 }
 0x51e   :  { %2010 = vmatpush.msra.mxu3 %v6689_v6 }
 0x520   :  { %2011 = vmatpush.msra.mxu3 %v6690_v21  ;;  %5775 = vmatmul.msk.f32.gmra.mxu2 %vm570_vm3, %v1918_v34 }
 0x521   :  { %5765 = vmatmul.msk.f32.gmra.mxu3 %vm570_vm3, %v1704_v7 }
 0x532   :  { %v1885_v2 = vpop.xlane.xlu0 %1884 }
 0x533   :  { %6941 = vrcp.f32 %v1885_v2  ;;  %v1930_v1 = vand.u32 2147483648, %v1885_v2  ;;  %v1928_v55 = vand.u32 2147483647, %v1885_v2  ;;  %vm1924_vm5 = vweird.f32 %v1885_v2 }
 0x535   :  { %v1931_v52 = vor.u32 1.1754944e-38, %v1930_v1  ;;  %vm1929_vm7 = vcmp.eq.f32.partialorder %v1928_v55, 8.507059e+37  ;;  %v6474_v1 = vld [vmem:[#allocation7 + $0x10] sm:$0xff] }
 0x536   :  { %v1000_v50 = vpop.f32.mrf.mxu2 }
 0x539   :  { %v6942_v18 = vpop.eup %6941 }
 0x53a   :  { %v1920_v30 = vmul.f32 %v6942_v18, %v1885_v2  ;;  %v1888_v58 = vpop.xlane.xlu0 %1887  ;;  %vm1925_vm4 = vweird.f32 %v6942_v18 }
 0x53b   :  { %6943 = vrcp.f32 %v1888_v58  ;;  %vm1926_vm6 = vmor %vm1924_vm5, %vm1925_vm4  ;;  %v1945_v24 = vand.u32 2147483648, %v1888_v58  ;;  %v1943_v63 = vand.u32 2147483647, %v1888_v58  ;;  %vm1939_vm9 = vweird.f32 %v1888_v58 }
 0x53c   :  { %v1921_v9 = vsub.f32 1.0, %v1920_v30  ;;  %v6477_v30 = vld [vmem:[#allocation7 + $0x28] sm:$0xff] }
 0x53d   :  { %v1946_v44 = vor.u32 1.1754944e-38, %v1945_v24  ;;  %vm1944_vm11 = vcmp.eq.f32.partialorder %v1943_v63, 8.507059e+37 }
 0x53e   :  { %v1922_v46 = vmul.f32 %v6942_v18, %v1921_v9  ;;  %v1003_v56 = vpop.f32.mrf.mxu2  ;;  %v6475_v9 = vld [vmem:[#allocation7 + $0x18] sm:$0xff] }
 0x53f   :  { %v6691_v59 = vpack.i.bf16 %v1003_v56, %v1000_v50  ;;  %v6479_v50 = vld [vmem:[#allocation7 + $0x38] sm:$0xff]  ;;  %v6472_v56 = vld [vmem:[#allocation7] sm:$0xff] }
 0x540   :  { %v1923_v42 = vadd.f32 %v6942_v18, %v1922_v46  ;;  %2195 = vmatpush.bf16.msrb.mxu0 %v6479_v50  ;;  %v6473_v46 = vld [vmem:[#allocation7 + $0x8] sm:$0xff] }
 0x541   :  { %v6944_v57 = vpop.eup %6943  ;;  %6692 = vrot.lane.b32.xlu2 %v6691_v59, %s7271_s21 }
 0x542   :  { %v1927_v13 = vsel %vm1926_vm6, %v6942_v18, %v1923_v42  ;;  %v1935_v28 = vmul.f32 %v6944_v57, %v1888_v58  ;;  %vm1940_vm8 = vweird.f32 %v6944_v57  ;;  %v6478_v18 = vld [vmem:[#allocation7 + $0x30] sm:$0xff]  ;;  %v6476_v58 = vld [vmem:[#allocation7 + $0x20] sm:$0xff] }
 0x543   :  { %v1932_v11 = vsel %vm1929_vm7, %v1931_v52, %v1927_v13  ;;  %vm1941_vm10 = vmor %vm1939_vm9, %vm1940_vm8 }
 0x544   :  { %v1936_v53 = vsub.f32 1.0, %v1935_v28  ;;  %v1933_v10 = vmul.f32 %v7834_v31, %v1932_v11  ;;  %v8111_v31 = vpop.f32.mrf.mxu3  ;;  %2196 = vmatpush.bf16.msrb.mxu0 %v6478_v18 }
 0x546   :  { %v1937_v14 = vmul.f32 %v6944_v57, %v1936_v53  ;;  %5776 = vmatmul.msk.f32.vlgmr.msra.gmra.mxu3 %vm570_vm3, %v1933_v10  ;;  %v1246_v37 = vpop.f32.mrf.mxu2 }
 0x548   :  { %v1938_v43 = vadd.f32 %v6944_v57, %v1937_v14  ;;  %2197 = vmatpush.bf16.msrb.mxu0 %v6477_v30 }
 0x54a   :  { %v1942_v12 = vsel %vm1941_vm10, %v6944_v57, %v1938_v43 }
 0x54b   :  { %v1947_v40 = vsel %vm1944_vm11, %v1946_v44, %v1942_v12 }
 0x54c   :  { %v1948_v38 = vmul.f32 %v7840_v61, %v1947_v40  ;;  %2198 = vmatpush.bf16.msrb.mxu0 %v6476_v58 }
 0x54e   :  { %5777 = vmatmul.msk.f32.gmra.mxu3 %vm570_vm3, %v1948_v38 }
 0x550   :  { %2199 = vmatpush.bf16.msrb.mxu0 %v6475_v9  ;;  %v8157_v9 = vld [vmem:[%s8992_s8] sm:$0x3f] }
 0x554   :  { %2200 = vmatpush.bf16.msrb.mxu0 %v6474_v1  ;;  %v2146_v1 = vperm.slane %v8157_v9, 4 }
 0x558   :  { %2201 = vmatpush.bf16.msrb.mxu0 %v6473_v46 }
 0x55c   :  { %2202 = vmatpush.bf16.msrb.mxu0 %v6472_v56 }
 0x563   :  { %v1037_v36 = vpop.f32.mrf.mxu3 }
 0x56b   :  { %v1040_v51 = vpop.f32.mrf.mxu3 }
 0x56c   :  { %v6711_v32 = vpack.i.bf16 %v1040_v51, %v1037_v36 }
 0x573   :  { %v1249_v4 = vpop.f32.mrf.mxu2 }
 0x574   :  { %v6696_v60 = vpack.i.bf16 %v1249_v4, %v1246_v37 }
 0x576   :  { %6697 = vrot.lane.b32.xlu2 %v6696_v60, %s7272_s22 }
 0x57b   :  { %v1281_v5 = vpop.f32.mrf.mxu3  ;;  %v1490_v23 = vpop.f32.mrf.mxu2 }
 0x583   :  { %v1284_v3 = vpop.f32.mrf.mxu3  ;;  %v1493_v35 = vpop.f32.mrf.mxu2 }
 0x584   :  { %v6701_v47 = vpack.i.bf16 %v1493_v35, %v1490_v23  ;;  %v6721_v21 = vpack.i.bf16 %v1284_v3, %v1281_v5 }
 0x586   :  { %6702 = vrot.lane.b32.xlu2 %v6701_v47, %s7269_s1 }
 0x58b   :  { %v1525_v61 = vpop.f32.mrf.mxu3  ;;  %v1734_v15 = vpop.f32.mrf.mxu2 }
 0x593   :  { %v1528_v16 = vpop.f32.mrf.mxu3  ;;  %v1737_v39 = vpop.f32.mrf.mxu2 }
 0x594   :  { %v6726_v17 = vpack.i.bf16 %v1528_v16, %v1525_v61  ;;  %v6706_v20 = vpack.i.bf16 %v1737_v39, %v1734_v15 }
 0x596   :  { %6727 = vrot.lane.b32.xlu0 %v6726_v17, %s7269_s1  ;;  %6707 = vrot.lane.b32.xlu2 %v6706_v20, %s7258_s16 }
 0x59b   :  { %v1769_v54 = vpop.f32.mrf.mxu3  ;;  %v1978_v41 = vpop.f32.mrf.mxu2 }
 0x59c   :  { %v6693_v55 = vpop.permute.xlu2 %6692 }
 0x59d   :  { %v6695_v57 = vunpack.i.h.bf16 %v6693_v55  ;;  %v6694_v52 = vunpack.i.l.bf16 %v6693_v55 }
 0x59e   :  { %6712 = vrot.lane.b32.xlu2 %v6711_v32, %s7271_s21 }
 0x59f   :  { %v2100_v63 = vsel %vm570_vm3, %v8102_v48, %v6695_v57  ;;  %v2099_v43 = vsel %vm570_vm3, %v8100_v45, %v6694_v52 }
 0x5a3   :  { %v1981_v6 = vpop.f32.mrf.mxu2 }
 0x5a4   :  { %v1772_v19 = vpop.f32.mrf.mxu3  ;;  %v6716_v8 = vpack.i.bf16 %v1981_v6, %v1978_v41 }
 0x5a5   :  { %v6731_v26 = vpack.i.bf16 %v1772_v19, %v1769_v54 }
 0x5a6   :  { %6717 = vrot.lane.b32.xlu1 %v6716_v8, %s7268_s20 }
 0x5a7   :  { %6732 = vrot.lane.b32.xlu2 %v6731_v26, %s7258_s16 }
 0x5ae   :  { %6722 = vrot.lane.b32.xlu1 %v6721_v21, %s7272_s22 }
 0x5c9   :  { %v2013_v7 = vpop.f32.mrf.mxu3 }
 0x5d0   :  { %v6698_v42 = vpop.permute.xlu2 %6697 }
 0x5d1   :  { %v2016_v34 = vpop.f32.mrf.mxu3  ;;  %v6700_v28 = vunpack.i.h.bf16 %v6698_v42  ;;  %v6699_v11 = vunpack.i.l.bf16 %v6698_v42 }
 0x5d2   :  { %v6736_v2 = vpack.i.bf16 %v2016_v34, %v2013_v7 }
 0x5d3   :  { %v2105_v44 = vsel %vm2103_vm12, %v2100_v63, %v6700_v28  ;;  %v2104_v12 = vsel %vm2103_vm12, %v2099_v43, %v6699_v11 }
 0x5d4   :  { %6737 = vrot.lane.b32.xlu1 %v6736_v2, %s7268_s20 }
 0x5e0   :  { %v6703_v59 = vpop.permute.xlu2 %6702 }
 0x5e1   :  { %v6705_v53 = vunpack.i.h.bf16 %v6703_v59  ;;  %v6704_v10 = vunpack.i.l.bf16 %v6703_v59 }
 0x5e3   :  { %v2110_v38 = vsel %vm2108_vm13, %v2105_v44, %v6705_v53  ;;  %v2109_v36 = vsel %vm2108_vm13, %v2104_v12, %v6704_v10 }
 0x5f0   :  { %v6708_v13 = vpop.permute.xlu2 %6707 }
 0x5f1   :  { %v6710_v24 = vunpack.i.h.bf16 %v6708_v13  ;;  %v6709_v14 = vunpack.i.l.bf16 %v6708_v13 }
 0x5f3   :  { %v2115_v4 = vsel %vm2113_vm14, %v2110_v38, %v6710_v24  ;;  %v2114_v48 = vsel %vm2113_vm14, %v2109_v36, %v6709_v14 }
 0x5f8   :  { %v6713_v3 = vpop.permute.xlu2 %6712 }
 0x5f9   :  { %v6715_v47 = vunpack.i.h.bf16 %v6713_v3  ;;  %v6714_v61 = vunpack.i.l.bf16 %v6713_v3  ;;  %v5902_v3 = vld [vmem:[#allocation8 + $0xa8] sm:$0xf] }
 0x5fb   :  { %v2102_v17 = vsel %vm570_vm3, %v8111_v31, %v6715_v47  ;;  %v2101_v20 = vsel %vm570_vm3, %v8109_v0, %v6714_v61  ;;  %v6501_v47 = vld [vmem:[#allocation8 + $0xac] sm:$0xf] }
 0x601   :  { %v6733_v41 = vpop.permute.xlu2 %6732 }
 0x602   :  { %v6735_v21 = vunpack.i.h.bf16 %v6733_v41  ;;  %v6734_v7 = vunpack.i.l.bf16 %v6733_v41  ;;  %v6498_v41 = vld [vmem:[#allocation8 + $0x94] sm:$0xf] }
 0x608   :  { %v6728_v39 = vpop.permute.xlu0 %6727 }
 0x609   :  { %v6730_v19 = vunpack.i.h.bf16 %v6728_v39  ;;  %v6729_v6 = vunpack.i.l.bf16 %v6728_v39  ;;  %v6503_v39 = vld [vmem:[#allocation8 + $0xb8] sm:$0xf0] }
 0x618   :  { %v6718_v40 = vpop.permute.xlu1 %6717 }
 0x619   :  { %v6720_v37 = vunpack.i.h.bf16 %v6718_v40  ;;  %v6719_v51 = vunpack.i.l.bf16 %v6718_v40 }
 0x61b   :  { %v2120_v45 = vsel %vm2118_vm15, %v2115_v4, %v6720_v37  ;;  %v2119_v60 = vsel %vm2118_vm15, %v2114_v48, %v6719_v51 }
 0x61c   :  { %v5811_v23 = vpack.c.bf16 %v2120_v45, %v2119_v60 }
 0x61e   :  { %5812 = vmatmul.msk.bf16.vlgmr.msrb.gmra.mxu0 %vm8134_vm1, %v5811_v23 }
 0x620   :  { %v6723_v35 = vpop.permute.xlu1 %6722 }
 0x621   :  { %v6725_v15 = vunpack.i.h.bf16 %v6723_v35  ;;  %v6724_v16 = vunpack.i.l.bf16 %v6723_v35  ;;  %v6502_v35 = vld [vmem:[#allocation8 + $0xb0] sm:$0xf0] }
 0x622   :  { %v5903_v61 = vor.u32 %v6502_v35, %v5902_v3  ;;  %v5850_v3 = vld [vmem:[#allocation8 + $0x38] sm:$0xf] }
 0x623   :  { %v2107_v54 = vsel %vm2103_vm12, %v2102_v17, %v6725_v15  ;;  %v2106_v32 = vsel %vm2103_vm12, %v2101_v20, %v6724_v16  ;;  %v5904_v15 = vld [vmem:[#allocation8 + $0xb4] sm:$0xf0]  ;;  %v5910_v16 = vld [vmem:[#allocation8 + $0xb0] sm:$0xf] }
 0x624   :  { %v2111_v26 = vsel %vm2108_vm13, %v2106_v32, %v6729_v6  ;;  %v2112_v8 = vsel %vm2108_vm13, %v2107_v54, %v6730_v19  ;;  %v5907_v17 = vor.u32 %v6501_v47, %v5904_v15  ;;  %v5911_v20 = vor.u32 %v6503_v39, %v5910_v16  ;;  %2482 = vmatpush.bf16.msrb.mxu1 %v5903_v61  ;;  %v5890_v54 = vld [vmem:[#allocation8 + $0x90] sm:$0xf]  ;;  %v6499_v32 = vld [vmem:[#allocation8 + $0x98] sm:$0xf0]  ;;  %v5892_v6 = vld [vmem:[#allocation8 + $0x9c] sm:$0xf0] }
 0x625   :  { %v2116_v31 = vsel %vm2113_vm14, %v2111_v26, %v6734_v7  ;;  %v2117_v0 = vsel %vm2113_vm14, %v2112_v8, %v6735_v21  ;;  %v5891_v19 = vor.u32 %v6499_v32, %v5890_v54  ;;  %v5898_v26 = vld [vmem:[#allocation8 + $0x98] sm:$0xf]  ;;  %v6500_v8 = vld [vmem:[#allocation8 + $0xa0] sm:$0xf0]  ;;  %v5895_v21 = vor.u32 %v6498_v41, %v5892_v6  ;;  %v5832_v54 = vld [vmem:[#allocation8 + $0x24] sm:$0xf0] }
 0x626   :  { %2501 = vmatpush.bf16.msrb.mxu2 %v5907_v17  ;;  %2520 = vmatpush.bf16.msrb.mxu3 %v5911_v20  ;;  %v5899_v7 = vor.u32 %v6500_v8, %v5898_v26  ;;  %v6488_v61 = vld [vmem:[#allocation8 + $0x40] sm:$0xf0]  ;;  %v5830_v39 = vld [vmem:[#allocation8 + $0x18] sm:$0xf]  ;;  %v6483_v20 = vld [vmem:[#allocation8 + $0x1c] sm:$0xf] }
 0x627   :  { %v5851_v16 = vor.u32 %v6488_v61, %v5850_v3  ;;  %v6484_v17 = vld [vmem:[#allocation8 + $0x20] sm:$0xf0]  ;;  %v5838_v32 = vld [vmem:[#allocation8 + $0x20] sm:$0xf]  ;;  %v6485_v41 = vld [vmem:[#allocation8 + $0x28] sm:$0xf0]  ;;  %v5835_v8 = vor.u32 %v6483_v20, %v5832_v54 }
 0x628   :  { %2483 = vmatpush.bf16.msrb.mxu1 %v5891_v19  ;;  %v5831_v19 = vor.u32 %v6484_v17, %v5830_v39  ;;  %v5818_v6 = vld [vmem:[#allocation8] sm:$0xf]  ;;  %v6519_v61 = vld [vmem:[#allocation10 + $0x78] sm:$0xff]  ;;  %v6518_v39 = vld [vmem:[#allocation10 + $0x70] sm:$0xff] }
 0x629   :  { %v6526_v54 = vld [vmem:[#allocation10 + $0xb0] sm:$0xff] }
 0x62a   :  { %2502 = vmatpush.bf16.msrb.mxu2 %v5895_v21  ;;  %2521 = vmatpush.bf16.msrb.mxu3 %v5899_v7  ;;  %v5839_v21 = vor.u32 %v6485_v41, %v5838_v32  ;;  %v6481_v7 = vld [vmem:[#allocation8 + $0x8] sm:$0xf0] }
 0x646   :  { %v6738_v34 = vpop.permute.xlu1 %6737 }
 0x647   :  { %v6740_v2 = vunpack.i.h.bf16 %v6738_v34  ;;  %v6739_v50 = vunpack.i.l.bf16 %v6738_v34  ;;  %v5878_v34 = vld [vmem:[#allocation8 + $0x78] sm:$0xf] }
 0x649   :  { %v2121_v18 = vsel %vm2118_vm15, %v2116_v31, %v6739_v50  ;;  %v2122_v30 = vsel %vm2118_vm15, %v2117_v0, %v6740_v2  ;;  %v6496_v2 = vld [vmem:[#allocation8 + $0x80] sm:$0xf0]  ;;  %v6495_v50 = vld [vmem:[#allocation8 + $0x7c] sm:$0xf]  ;;  %v5880_v0 = vld [vmem:[#allocation8 + $0x84] sm:$0xf0] }
 0x64a   :  { %v5814_v58 = vpack.c.bf16 %v2122_v30, %v2121_v18  ;;  %v5879_v31 = vor.u32 %v6496_v2, %v5878_v34  ;;  %v5886_v18 = vld [vmem:[#allocation8 + $0x80] sm:$0xf]  ;;  %v6497_v30 = vld [vmem:[#allocation8 + $0x88] sm:$0xf0]  ;;  %v6480_v34 = vld [vmem:[#allocation8 + $0x4] sm:$0xf] }
 0x64b   :  { %v5820_v2 = vld [vmem:[#allocation8 + $0xc] sm:$0xf0] }
 0x64c   :  { %5815 = vmatmul.msk.bf16.gmra.mxu0 %vm8134_vm1, %v5814_v58  ;;  %v5883_v58 = vor.u32 %v6495_v50, %v5880_v0  ;;  %2484 = vmatpush.bf16.msrb.mxu1 %v5879_v31  ;;  %v5826_v31 = vld [vmem:[#allocation8 + $0x8] sm:$0xf]  ;;  %v6482_v0 = vld [vmem:[#allocation8 + $0x10] sm:$0xf0] }
 0x64e   :  { %2503 = vmatpush.bf16.msrb.mxu2 %v5883_v58  ;;  %v5819_v58 = vor.u32 %v6481_v7, %v5818_v6  ;;  %v6517_v6 = vld [vmem:[#allocation10 + $0x68] sm:$0xff]  ;;  %v6508_v7 = vld [vmem:[#allocation10 + $0x20] sm:$0xff] }
 0x69b   :  { %v2204_v46 = vpop.f32.mrf.mxu0 }
 0x69c   :  { %v2205_v55 = vadd.f32 %v2204_v46, %v2146_v1  ;;  %v5866_v46 = vld [vmem:[#allocation8 + $0x60] sm:$0xf] }
 0x69e   :  { %v8161_v56 = vadd.f32 %v2205_v55, %v7384_v22  ;;  %v6493_v55 = vld [vmem:[#allocation8 + $0x68] sm:$0xf0] }
 0x6a0   :  { %2218 = vadd.xlane.f32.xlu2 %v8161_v56 }
 0x6a3   :  { %v2206_v42 = vpop.f32.mrf.mxu0 }
 0x6a4   :  { %v2207_v59 = vadd.f32 %v2206_v42, %v2146_v1  ;;  %v6492_v42 = vld [vmem:[#allocation8 + $0x64] sm:$0xf] }
 0x6a6   :  { %v8165_v57 = vadd.f32 %v2207_v59, %v7390_v25  ;;  %v5867_v59 = vor.u32 %v6493_v55, %v5866_v46  ;;  %v5823_v46 = vor.u32 %v6480_v34, %v5820_v2  ;;  %v5827_v55 = vor.u32 %v6482_v0, %v5826_v31 }
 0x6a8   :  { %2220 = vadd.xlane.f32.xlu1 %v8165_v57  ;;  %2485 = vmatpush.bf16.msrb.mxu1 %v5867_v59 }
 0x6c9   :  { %v2209_v52 = vpop.f32.mrf.mxu0 }
 0x6ca   :  { %v2210_v13 = vadd.f32 %v2209_v52, %v2146_v1  ;;  %v5868_v52 = vld [vmem:[#allocation8 + $0x6c] sm:$0xf0] }
 0x6cc   :  { %v8169_v28 = vadd.f32 %v2210_v13, %v7393_v27  ;;  %v5874_v13 = vld [vmem:[#allocation8 + $0x68] sm:$0xf] }
 0x6ce   :  { %2222 = vadd.xlane.f32.xlu0 %v8169_v28 }
 0x6d1   :  { %v2211_v11 = vpop.f32.mrf.mxu0 }
 0x6d2   :  { %v2212_v53 = vadd.f32 %v2211_v11, %v2146_v1  ;;  %v5887_v1 = vor.u32 %v6497_v30, %v5886_v18  ;;  %v6494_v11 = vld [vmem:[#allocation8 + $0x70] sm:$0xf0] }
 0x6d4   :  { %v8173_v22 = vadd.f32 %v2212_v53, %v7396_v29  ;;  %2522 = vmatpush.bf16.msrb.mxu3 %v5887_v1  ;;  %v5871_v53 = vor.u32 %v6492_v42, %v5868_v52 }
 0x6d6   :  { %2224 = vadd.xlane.f32.xlu2 %v8173_v22  ;;  %2504 = vmatpush.bf16.msrb.mxu2 %v5871_v53 }
 0x713   :  { %v2219_v10 = vpop.xlane.xlu2 %2218 }
 0x714   :  { %v2226_v24 = vmul.f32 0.010416667, %v2219_v10  ;;  %v5875_v10 = vor.u32 %v6494_v11, %v5874_v13 }
 0x716   :  { %v2230_v25 = vsub.f32 %v8161_v56, %v2226_v24  ;;  %v5854_v24 = vld [vmem:[#allocation8 + $0x48] sm:$0xf]  ;;  %2523 = vmatpush.bf16.msrb.mxu3 %v5875_v10 }
 0x718   :  { %v8178_v14 = vmul.f32 %v7400_v33, %v2230_v25  ;;  %v6490_v25 = vld [vmem:[#allocation8 + $0x50] sm:$0xf0] }
 0x71a   :  { %v2238_v27 = vmul.f32 %v8178_v14, %v8178_v14 }
 0x71b   :  { %v2221_v63 = vpop.xlane.xlu1 %2220 }
 0x71c   :  { %v2227_v43 = vmul.f32 0.010416667, %v2221_v63  ;;  %2242 = vadd.xlane.f32.xlu1 %v2238_v27  ;;  %v6489_v27 = vld [vmem:[#allocation8 + $0x4c] sm:$0xf] }
 0x71e   :  { %v2231_v44 = vsub.f32 %v8165_v57, %v2227_v43  ;;  %v5855_v43 = vor.u32 %v6490_v25, %v5854_v24 }
 0x720   :  { %v8184_v29 = vmul.f32 %v7400_v33, %v2231_v44  ;;  %v5856_v44 = vld [vmem:[#allocation8 + $0x54] sm:$0xf0]  ;;  %2486 = vmatpush.bf16.msrb.mxu1 %v5855_v43  ;;  %v8202_v43 = vperm.slane %v8157_v9, 2 }
 0x722   :  { %v2239_v12 = vmul.f32 %v8184_v29, %v8184_v29 }
 0x724   :  { %2244 = vadd.xlane.f32.xlu2 %v2239_v12  ;;  %v5862_v12 = vld [vmem:[#allocation8 + $0x50] sm:$0xf] }
 0x741   :  { %v2223_v40 = vpop.xlane.xlu0 %2222 }
 0x742   :  { %v2228_v38 = vmul.f32 0.010416667, %v2223_v40  ;;  %v6491_v40 = vld [vmem:[#allocation8 + $0x58] sm:$0xf0] }
 0x744   :  { %v2232_v36 = vsub.f32 %v8169_v28, %v2228_v38 }
 0x746   :  { %v8190_v37 = vmul.f32 %v7400_v33, %v2232_v36  ;;  %v5859_v36 = vor.u32 %v6489_v27, %v5856_v44 }
 0x748   :  { %v2240_v51 = vmul.f32 %v8190_v37, %v8190_v37  ;;  %2505 = vmatpush.bf16.msrb.mxu2 %v5859_v36  ;;  %v2307_v36 = vperm.slane %v8157_v9, 3 }
 0x749   :  { %v2225_v4 = vpop.xlane.xlu2 %2224 }
 0x74a   :  { %v2229_v48 = vmul.f32 0.010416667, %v2225_v4  ;;  %2246 = vadd.xlane.f32.xlu1 %v2240_v51  ;;  %v5863_v51 = vor.u32 %v6491_v40, %v5862_v12  ;;  %v5842_v4 = vld [vmem:[#allocation8 + $0x30] sm:$0xf] }
 0x74c   :  { %v2233_v45 = vsub.f32 %v8173_v22, %v2229_v48  ;;  %v6487_v48 = vld [vmem:[#allocation8 + $0x38] sm:$0xf0]  ;;  %2524 = vmatpush.bf16.msrb.mxu3 %v5863_v51 }
 0x74d   :  { %v5843_v47 = vor.u32 %v6487_v48, %v5842_v4 }
 0x74e   :  { %v8196_v60 = vmul.f32 %v7400_v33, %v2233_v45  ;;  %v6486_v45 = vld [vmem:[#allocation8 + $0x34] sm:$0xf] }
 0x74f   :  { %2487 = vmatpush.bf16.msrb.mxu1 %v5843_v47  ;;  %v6511_v47 = vld [vmem:[#allocation10 + $0x38] sm:$0xff] }
 0x750   :  { %v2241_v23 = vmul.f32 %v8196_v60, %v8196_v60  ;;  %2525 = vmatpush.bf16.msrb.mxu3 %v5851_v16  ;;  %2750 = vmatpush.bf16.msra.mxu0 %v6511_v47  ;;  %v6510_v16 = vld [vmem:[#allocation10 + $0x30] sm:$0xff] }
 0x752   :  { %2248 = vadd.xlane.f32.xlu0 %v2241_v23  ;;  %v5844_v23 = vld [vmem:[#allocation8 + $0x3c] sm:$0xf0] }
 0x753   :  { %v5847_v15 = vor.u32 %v6486_v45, %v5844_v23  ;;  %2488 = vmatpush.bf16.msrb.mxu1 %v5831_v19  ;;  %v6509_v19 = vld [vmem:[#allocation10 + $0x28] sm:$0xff] }
 0x754   :  { %2526 = vmatpush.bf16.msrb.mxu3 %v5839_v21  ;;  %2751 = vmatpush.bf16.msra.mxu0 %v6510_v16 }
 0x755   :  { %2506 = vmatpush.bf16.msrb.mxu2 %v5847_v15  ;;  %v6527_v15 = vld [vmem:[#allocation10 + $0xb8] sm:$0xff] }
 0x757   :  { %2489 = vmatpush.bf16.msrb.mxu1 %v5819_v58 }
 0x758   :  { %2527 = vmatpush.bf16.msrb.mxu3 %v5827_v55  ;;  %2752 = vmatpush.bf16.msra.mxu0 %v6509_v19 }
 0x759   :  { %2507 = vmatpush.bf16.msrb.mxu2 %v5835_v8 }
 0x75b   :  { %2769 = vmatpush.bf16.msra.mxu1 %v6519_v61 }
 0x75c   :  { %2753 = vmatpush.bf16.msra.mxu0 %v6508_v7 }
 0x75d   :  { %2508 = vmatpush.bf16.msrb.mxu2 %v5823_v46 }
 0x75f   :  { %2770 = vmatpush.bf16.msra.mxu1 %v6518_v39 }
 0x761   :  { %2788 = vmatpush.bf16.msra.mxu2 %v6527_v15 }
 0x763   :  { %2771 = vmatpush.bf16.msra.mxu1 %v6517_v6 }
 0x765   :  { %2789 = vmatpush.bf16.msra.mxu2 %v6526_v54 }
 0x78f   :  { %v2243_v63 = vpop.xlane.xlu1 %2242 }
 0x790   :  { %v2250_v38 = vmul.f32 0.010416667, %v2243_v63 }
 0x792   :  { %v2254_v35 = vadd.f32 1e-05, %v2250_v38 }
 0x794   :  { %6945 = vrsqrt.f32 %v2254_v35  ;;  %vm2264_vm4 = vweird.f32 %v2254_v35 }
 0x797   :  { %v2245_v26 = vpop.xlane.xlu2 %2244 }
 0x798   :  { %v2251_v50 = vmul.f32 0.010416667, %v2245_v26  ;;  %v6525_v26 = vld [vmem:[#allocation10 + $0xa8] sm:$0xff] }
 0x799   :  { %2790 = vmatpush.bf16.msra.mxu2 %v6525_v26 }
 0x79a   :  { %v6946_v18 = vpop.eup %6945  ;;  %v2255_v30 = vadd.f32 1e-05, %v2251_v50 }
 0x79b   :  { %v2259_v1 = vmul.f32 %v6946_v18, %v2254_v35  ;;  %vm2265_vm2 = vweird.f32 %v6946_v18 }
 0x79c   :  { %6947 = vrsqrt.f32 %v2255_v30  ;;  %vm2266_vm5 = vmor %vm2264_vm4, %vm2265_vm2  ;;  %vm2274_vm7 = vweird.f32 %v2255_v30 }
 0x79d   :  { %v2260_v42 = vmul.f32 %v6946_v18, %v2259_v1 }
 0x79f   :  { %v2261_v59 = vmul.f32 0.5, %v2260_v42 }
 0x7a1   :  { %v2262_v52 = vsub.f32 1.5, %v2261_v59 }
 0x7a2   :  { %v6948_v13 = vpop.eup %6947 }
 0x7a3   :  { %v2263_v11 = vmul.f32 %v6946_v18, %v2262_v52  ;;  %v2269_v53 = vmul.f32 %v6948_v13, %v2255_v30  ;;  %vm2275_vm6 = vweird.f32 %v6948_v13 }
 0x7a4   :  { %vm2276_vm8 = vmor %vm2274_vm7, %vm2275_vm6 }
 0x7a5   :  { %v2270_v10 = vmul.f32 %v6948_v13, %v2269_v53  ;;  %v2267_v24 = vsel %vm2266_vm5, %v6946_v18, %v2263_v11  ;;  %v6507_v53 = vld [vmem:[#allocation10 + $0x18] sm:$0xff] }
 0x7a6   :  { %v2298_v63 = vmul.f32 %v2267_v24, %v8178_v14  ;;  %v6524_v24 = vld [vmem:[#allocation10 + $0xa0] sm:$0xff]  ;;  %2754 = vmatpush.bf16.msra.mxu0 %v6507_v53 }
 0x7a7   :  { %v2271_v25 = vmul.f32 0.5, %v2270_v10  ;;  %v6516_v10 = vld [vmem:[#allocation10 + $0x60] sm:$0xff]  ;;  %2791 = vmatpush.bf16.msra.mxu2 %v6524_v24 }
 0x7a8   :  { %v2303_v38 = vmul.f32 %v8202_v43, %v2298_v63  ;;  %2772 = vmatpush.bf16.msra.mxu1 %v6516_v10  ;;  %v6514_v63 = vld [vmem:[#allocation10 + $0x50] sm:$0xff] }
 0x7a9   :  { %v2272_v27 = vsub.f32 1.5, %v2271_v25  ;;  %v6515_v25 = vld [vmem:[#allocation10 + $0x58] sm:$0xff] }
 0x7aa   :  { %v2308_v4 = vadd.f32 %v2307_v36, %v2303_v38  ;;  %v6512_v38 = vld [vmem:[#allocation10 + $0x40] sm:$0xff] }
 0x7ab   :  { %v2273_v44 = vmul.f32 %v6948_v13, %v2272_v27  ;;  %v6505_v27 = vld [vmem:[#allocation10 + $0x8] sm:$0xff] }
 0x7ac   :  { %2773 = vmatpush.bf16.msra.mxu1 %v6515_v25 }
 0x7ad   :  { %v2277_v12 = vsel %vm2276_vm8, %v6948_v13, %v2273_v44  ;;  %v6504_v44 = vld [vmem:[#allocation10] sm:$0xff] }
 0x7ae   :  { %v2299_v40 = vmul.f32 %v2277_v12, %v8184_v29  ;;  %v6513_v12 = vld [vmem:[#allocation10 + $0x48] sm:$0xff] }
 0x7b0   :  { %v2304_v51 = vmul.f32 %v8202_v43, %v2299_v40  ;;  %2774 = vmatpush.bf16.msra.mxu1 %v6514_v63  ;;  %v6521_v40 = vld [vmem:[#allocation10 + $0x88] sm:$0xff] }
 0x7b2   :  { %v2309_v48 = vadd.f32 %v2307_v36, %v2304_v51  ;;  %v2346_v51 = vld [vmem:[%s8990_s6] sm:$0x7] }
 0x7b3   :  { %v2350_v61 = vperm.slane %v2346_v51, 2 }
 0x7b4   :  { %v2312_v45 = vpack.c.bf16 %v2309_v48, %v2308_v4  ;;  %2775 = vmatpush.bf16.msra.mxu1 %v6513_v12  ;;  %v2348_v48 = vperm.slane %v2346_v51, 0 }
 0x7b6   :  { %2490 = vmatmul.bf16.vlgmr.msrb.gmra.mxu1 %v2312_v45  ;;  %2509 = vmatmul.bf16.vlgmr.msrb.gmra.mxu2 %v2312_v45 }
 0x7b7   :  { %2528 = vmatmul.bf16.vlgmr.msrb.gmra.mxu3 %v2312_v45 }
 0x7b8   :  { %2776 = vmatpush.bf16.msra.mxu1 %v6512_v38 }
 0x7bd   :  { %v2247_v14 = vpop.xlane.xlu1 %2246 }
 0x7be   :  { %v2252_v23 = vmul.f32 0.010416667, %v2247_v14 }
 0x7c0   :  { %v2256_v3 = vadd.f32 1e-05, %v2252_v23 }
 0x7c2   :  { %6949 = vrsqrt.f32 %v2256_v3  ;;  %vm2284_vm10 = vweird.f32 %v2256_v3 }
 0x7c5   :  { %v2249_v35 = vpop.xlane.xlu0 %2248 }
 0x7c6   :  { %v2253_v29 = vmul.f32 0.010416667, %v2249_v35  ;;  %v2349_v35 = vperm.slane %v2346_v51, 1 }
 0x7c8   :  { %v6950_v17 = vpop.eup %6949  ;;  %v2257_v20 = vadd.f32 1e-05, %v2253_v29 }
 0x7c9   :  { %v2279_v32 = vmul.f32 %v6950_v17, %v2256_v3  ;;  %vm2285_vm9 = vweird.f32 %v6950_v17 }
 0x7ca   :  { %6951 = vrsqrt.f32 %v2257_v20  ;;  %vm2286_vm11 = vmor %vm2284_vm10, %vm2285_vm9  ;;  %vm2294_vm2 = vweird.f32 %v2257_v20 }
 0x7cb   :  { %v2280_v41 = vmul.f32 %v6950_v17, %v2279_v32 }
 0x7cd   :  { %v2281_v8 = vmul.f32 0.5, %v2280_v41 }
 0x7cf   :  { %v2282_v21 = vsub.f32 1.5, %v2281_v8 }
 0x7d0   :  { %v6952_v34 = vpop.eup %6951 }
 0x7d1   :  { %v2283_v2 = vmul.f32 %v6950_v17, %v2282_v21  ;;  %v2289_v50 = vmul.f32 %v6952_v34, %v2257_v20  ;;  %vm2295_vm0 = vweird.f32 %v6952_v34 }
 0x7d2   :  { %vm2296_vm4 = vmor %vm2294_vm2, %vm2295_vm0 }
 0x7d3   :  { %v2290_v31 = vmul.f32 %v6952_v34, %v2289_v50  ;;  %v2287_v0 = vsel %vm2286_vm11, %v6950_v17, %v2283_v2 }
 0x7d4   :  { %v2300_v58 = vmul.f32 %v2287_v0, %v8190_v37  ;;  %v6506_v37 = vld [vmem:[#allocation10 + $0x10] sm:$0xff] }
 0x7d5   :  { %v2291_v18 = vmul.f32 0.5, %v2290_v31  ;;  %2755 = vmatpush.bf16.msra.mxu0 %v6506_v37 }
 0x7d6   :  { %v2305_v42 = vmul.f32 %v8202_v43, %v2300_v58 }
 0x7d7   :  { %v2292_v30 = vsub.f32 1.5, %v2291_v18 }
 0x7d8   :  { %v2310_v52 = vadd.f32 %v2307_v36, %v2305_v42 }
 0x7d9   :  { %v2293_v1 = vmul.f32 %v6952_v34, %v2292_v30  ;;  %2756 = vmatpush.bf16.msra.mxu0 %v6505_v27  ;;  %v2605_v27 = vperm.slane %v8157_v9, 5 }
 0x7db   :  { %v2297_v46 = vsel %vm2296_vm4, %v6952_v34, %v2293_v1 }
 0x7dc   :  { %v2301_v55 = vmul.f32 %v2297_v46, %v8196_v60  ;;  %v6523_v60 = vld [vmem:[#allocation10 + $0x98] sm:$0xff] }
 0x7dd   :  { %2792 = vmatpush.bf16.msra.mxu2 %v6523_v60  ;;  %2757 = vmatpush.bf16.msra.mxu0 %v6504_v44 }
 0x7de   :  { %v2306_v59 = vmul.f32 %v8202_v43, %v2301_v55  ;;  %v6522_v43 = vld [vmem:[#allocation10 + $0x90] sm:$0xff] }
 0x7e0   :  { %v2311_v13 = vadd.f32 %v2307_v36, %v2306_v59  ;;  %v6520_v36 = vld [vmem:[#allocation10 + $0x80] sm:$0xff] }
 0x7e1   :  { %2793 = vmatpush.bf16.msra.mxu2 %v6522_v43 }
 0x7e2   :  { %v2313_v11 = vpack.c.bf16 %v2311_v13, %v2310_v52 }
 0x7e4   :  { %2495 = vmatmul.bf16.gmra.mxu1 %v2313_v11  ;;  %2514 = vmatmul.bf16.gmra.mxu2 %v2313_v11 }
 0x7e5   :  { %2533 = vmatmul.bf16.gmra.mxu3 %v2313_v11  ;;  %2794 = vmatpush.bf16.msra.mxu2 %v6521_v40 }
 0x7e9   :  { %2795 = vmatpush.bf16.msra.mxu2 %v6520_v36 }
 0x833   :  { %v2491_v4 = vpop.f32.mrf.mxu1 }
 0x834   :  { %v2492_v14 = vadd.f32 %v2491_v4, %v2348_v48 }
 0x836   :  { %v2539_v29 = vmax.f32 %v2492_v14, 0.0 }
 0x839   :  { %v2510_v45 = vpop.f32.mrf.mxu2 }
 0x83a   :  { %v2529_v23 = vpop.f32.mrf.mxu3  ;;  %v2511_v16 = vadd.f32 %v2510_v45, %v2349_v35 }
 0x83b   :  { %v2493_v3 = vpop.f32.mrf.mxu1  ;;  %v2530_v17 = vadd.f32 %v2529_v23, %v2350_v61 }
 0x83c   :  { %v2494_v47 = vadd.f32 %v2493_v3, %v2348_v48  ;;  %v2540_v19 = vmax.f32 %v2511_v16, 0.0 }
 0x83d   :  { %v2541_v26 = vmax.f32 %v2530_v17, 0.0 }
 0x83e   :  { %v2542_v15 = vmax.f32 %v2494_v47, 0.0 }
 0x840   :  { %v2551_v39 = vpack.c.bf16 %v2542_v15, %v2539_v29 }
 0x841   :  { %v2512_v20 = vpop.f32.mrf.mxu2 }
 0x842   :  { %v2513_v54 = vadd.f32 %v2512_v20, %v2349_v35  ;;  %v2531_v32 = vpop.f32.mrf.mxu3  ;;  %2758 = vmatmul.bf16.vlgmr.msra.gmra.mxu0 %v2551_v39 }
 0x843   :  { %v2532_v41 = vadd.f32 %v2531_v32, %v2350_v61 }
 0x844   :  { %v2543_v6 = vmax.f32 %v2513_v54, 0.0 }
 0x845   :  { %v2544_v8 = vmax.f32 %v2532_v41, 0.0 }
 0x846   :  { %v2552_v21 = vpack.c.bf16 %v2543_v6, %v2540_v19 }
 0x847   :  { %v2553_v7 = vpack.c.bf16 %v2544_v8, %v2541_v26 }
 0x848   :  { %2777 = vmatmul.bf16.vlgmr.msra.gmra.mxu1 %v2552_v21 }
 0x849   :  { %2796 = vmatmul.bf16.vlgmr.msra.gmra.mxu2 %v2553_v7 }
 0x861   :  { %v2496_v34 = vpop.f32.mrf.mxu1 }
 0x862   :  { %v2497_v50 = vadd.f32 %v2496_v34, %v2348_v48 }
 0x864   :  { %v2545_v30 = vmax.f32 %v2497_v50, 0.0 }
 0x867   :  { %v2515_v2 = vpop.f32.mrf.mxu2 }
 0x868   :  { %v2534_v31 = vpop.f32.mrf.mxu3  ;;  %v2516_v1 = vadd.f32 %v2515_v2, %v2349_v35 }
 0x869   :  { %v2498_v0 = vpop.f32.mrf.mxu1  ;;  %v2535_v55 = vadd.f32 %v2534_v31, %v2350_v61 }
 0x86a   :  { %v2499_v18 = vadd.f32 %v2498_v0, %v2348_v48  ;;  %v2546_v11 = vmax.f32 %v2516_v1, 0.0 }
 0x86b   :  { %v2547_v10 = vmax.f32 %v2535_v55, 0.0  ;;  %v6095_v55 = vld [vmem:[#allocation5 + $0x168] sm:$0xf] }
 0x86c   :  { %v2548_v58 = vmax.f32 %v2499_v18, 0.0 }
 0x86e   :  { %v2554_v46 = vpack.c.bf16 %v2548_v58, %v2545_v30 }
 0x86f   :  { %v2517_v42 = vpop.f32.mrf.mxu2 }
 0x870   :  { %v2518_v59 = vadd.f32 %v2517_v42, %v2349_v35  ;;  %v2536_v52 = vpop.f32.mrf.mxu3  ;;  %2763 = vmatmul.bf16.gmra.mxu0 %v2554_v46  ;;  %v6550_v42 = vld [vmem:[#allocation5 + $0x170] sm:$0xf0] }
 0x871   :  { %v2537_v13 = vadd.f32 %v2536_v52, %v2350_v61  ;;  %v6096_v52 = vor.u32 %v6550_v42, %v6095_v55  ;;  %v6043_v55 = vld [vmem:[#allocation5 + $0xf8] sm:$0xf] }
 0x872   :  { %v2549_v53 = vmax.f32 %v2518_v59, 0.0  ;;  %v6549_v59 = vld [vmem:[#allocation5 + $0x16c] sm:$0xf] }
 0x873   :  { %v2550_v24 = vmax.f32 %v2537_v13, 0.0  ;;  %v6097_v13 = vld [vmem:[#allocation5 + $0x174] sm:$0xf0]  ;;  %3070 = vmatpush.bf16.msra.mxu3 %v6096_v52  ;;  %v6536_v52 = vld [vmem:[#allocation5 + $0x100] sm:$0xf0] }
 0x874   :  { %v2555_v37 = vpack.c.bf16 %v2549_v53, %v2546_v11  ;;  %v6103_v11 = vld [vmem:[#allocation5 + $0x170] sm:$0xf]  ;;  %v6551_v53 = vld [vmem:[#allocation5 + $0x178] sm:$0xf0] }
 0x875   :  { %v2556_v25 = vpack.c.bf16 %v2550_v24, %v2547_v10  ;;  %v6100_v10 = vor.u32 %v6549_v59, %v6097_v13  ;;  %v6104_v24 = vor.u32 %v6551_v53, %v6103_v11  ;;  %v6023_v13 = vld [vmem:[#allocation5 + $0xd8] sm:$0xf]  ;;  %v6044_v11 = vor.u32 %v6536_v52, %v6043_v55  ;;  %v6532_v53 = vld [vmem:[#allocation5 + $0xe0] sm:$0xf0] }
 0x876   :  { %2782 = vmatmul.bf16.gmra.mxu1 %v2555_v37  ;;  %v6083_v37 = vld [vmem:[#allocation5 + $0x150] sm:$0xf] }
 0x877   :  { %2801 = vmatmul.bf16.gmra.mxu2 %v2556_v25  ;;  %3089 = vmatpush.bf16.msrb.mxu0 %v6100_v10  ;;  %v6547_v25 = vld [vmem:[#allocation5 + $0x158] sm:$0xf0] }
 0x878   :  { %3108 = vmatpush.bf16.msrb.mxu1 %v6104_v24  ;;  %v6531_v10 = vld [vmem:[#allocation5 + $0xdc] sm:$0xf]  ;;  %v6025_v24 = vld [vmem:[#allocation5 + $0xe4] sm:$0xf0] }
 0x8bf   :  { %v2759_v60 = vpop.f32.mrf.mxu0 }
 0x8c0   :  { %v2760_v43 = vadd.f32 %v2759_v60, %v2605_v27  ;;  %v6546_v60 = vld [vmem:[#allocation5 + $0x154] sm:$0xf] }
 0x8c5   :  { %v2778_v63 = vpop.f32.mrf.mxu1 }
 0x8c6   :  { %v2779_v44 = vadd.f32 %v2778_v63, %v2760_v43  ;;  %v6085_v63 = vld [vmem:[#allocation5 + $0x15c] sm:$0xf0]  ;;  %v6091_v43 = vld [vmem:[#allocation5 + $0x158] sm:$0xf] }
 0x8c7   :  { %v2761_v38 = vpop.f32.mrf.mxu0 }
 0x8c8   :  { %v2762_v4 = vadd.f32 %v2761_v38, %v2605_v27  ;;  %v6071_v38 = vld [vmem:[#allocation5 + $0x138] sm:$0xf] }
 0x8cc   :  { %v2797_v12 = vpop.f32.mrf.mxu2 }
 0x8cd   :  { %v2798_v40 = vadd.f32 %v2797_v12, %v2779_v44  ;;  %v2780_v51 = vpop.f32.mrf.mxu1  ;;  %v6548_v44 = vld [vmem:[#allocation5 + $0x160] sm:$0xf0]  ;;  %v6088_v12 = vor.u32 %v6546_v60, %v6085_v63  ;;  %v6024_v60 = vor.u32 %v6532_v53, %v6023_v13 }
 0x8ce   :  { %v2781_v48 = vadd.f32 %v2780_v51, %v2762_v4  ;;  %v6544_v51 = vld [vmem:[#allocation5 + $0x140] sm:$0xf0]  ;;  %v6543_v4 = vld [vmem:[#allocation5 + $0x13c] sm:$0xf] }
 0x8cf   :  { %v8217_v36 = vadd.f32 %v2798_v40, %v8161_v56  ;;  %v6092_v40 = vor.u32 %v6548_v44, %v6091_v43  ;;  %3090 = vmatpush.bf16.msrb.mxu0 %v6088_v12  ;;  %v6011_v43 = vld [vmem:[#allocation5 + $0xc0] sm:$0xf]  ;;  %v6529_v44 = vld [vmem:[#allocation5 + $0xc8] sm:$0xf0]  ;;  %v6528_v12 = vld [vmem:[#allocation5 + $0xc4] sm:$0xf] }
 0x8d1   :  { %2813 = vadd.xlane.f32.xlu2 %v8217_v36  ;;  %3109 = vmatpush.bf16.msrb.mxu1 %v6092_v40 }
 0x8d4   :  { %v2799_v45 = vpop.f32.mrf.mxu2 }
 0x8d5   :  { %v2800_v14 = vadd.f32 %v2799_v45, %v2781_v48  ;;  %v6072_v48 = vor.u32 %v6544_v51, %v6071_v38  ;;  %v6073_v45 = vld [vmem:[#allocation5 + $0x144] sm:$0xf0]  ;;  %v6013_v38 = vld [vmem:[#allocation5 + $0xcc] sm:$0xf0] }
 0x8d6   :  { %v6019_v51 = vld [vmem:[#allocation5 + $0xc8] sm:$0xf] }
 0x8d7   :  { %v8221_v23 = vadd.f32 %v2800_v14, %v8165_v57  ;;  %v6079_v14 = vld [vmem:[#allocation5 + $0x140] sm:$0xf] }
 0x8d9   :  { %2815 = vadd.xlane.f32.xlu1 %v8221_v23 }
 0x8ed   :  { %v2764_v9 = vpop.f32.mrf.mxu0 }
 0x8ee   :  { %v2765_v35 = vadd.f32 %v2764_v9, %v2605_v27  ;;  %v6545_v9 = vld [vmem:[#allocation5 + $0x148] sm:$0xf0] }
 0x8f3   :  { %v2783_v3 = vpop.f32.mrf.mxu1 }
 0x8f4   :  { %v2784_v47 = vadd.f32 %v2783_v3, %v2765_v35  ;;  %v6076_v3 = vor.u32 %v6543_v4, %v6073_v45  ;;  %v6080_v35 = vor.u32 %v6545_v9, %v6079_v14  ;;  %v6530_v4 = vld [vmem:[#allocation5 + $0xd0] sm:$0xf0]  ;;  %v6012_v45 = vor.u32 %v6529_v44, %v6011_v43 }
 0x8f5   :  { %v2766_v56 = vpop.f32.mrf.mxu0 }
 0x8f6   :  { %v2767_v39 = vadd.f32 %v2766_v56, %v2605_v27  ;;  %v6084_v27 = vor.u32 %v6547_v25, %v6083_v37  ;;  %3091 = vmatpush.bf16.msrb.mxu0 %v6076_v3  ;;  %3110 = vmatpush.bf16.msrb.mxu1 %v6080_v35  ;;  %v6031_v37 = vld [vmem:[#allocation5 + $0xe0] sm:$0xf]  ;;  %v6533_v25 = vld [vmem:[#allocation5 + $0xe8] sm:$0xf0]  ;;  %v6016_v3 = vor.u32 %v6528_v12, %v6013_v38 }
 0x8f7   :  { %v6032_v63 = vor.u32 %v6533_v25, %v6031_v37  ;;  %v6020_v35 = vor.u32 %v6530_v4, %v6019_v51 }
 0x8f8   :  { %3071 = vmatpush.bf16.msra.mxu3 %v6084_v27  ;;  %v6028_v27 = vor.u32 %v6531_v10, %v6025_v24 }
 0x8fa   :  { %v2802_v61 = vpop.f32.mrf.mxu2 }
 0x8fb   :  { %v2803_v29 = vadd.f32 %v2802_v61, %v2784_v47  ;;  %v2785_v16 = vpop.f32.mrf.mxu1  ;;  %v6059_v47 = vld [vmem:[#allocation5 + $0x120] sm:$0xf]  ;;  %v6541_v61 = vld [vmem:[#allocation5 + $0x128] sm:$0xf0] }
 0x8fc   :  { %v2786_v17 = vadd.f32 %v2785_v16, %v2767_v39  ;;  %3072 = vmatpush.bf16.msra.mxu3 %v6072_v48  ;;  %v6060_v56 = vor.u32 %v6541_v61, %v6059_v47  ;;  %v6061_v16 = vld [vmem:[#allocation5 + $0x12c] sm:$0xf0]  ;;  %v6067_v39 = vld [vmem:[#allocation5 + $0x128] sm:$0xf] }
 0x8fd   :  { %v8225_v15 = vadd.f32 %v2803_v29, %v8169_v28  ;;  %v6540_v29 = vld [vmem:[#allocation5 + $0x124] sm:$0xf] }
 0x8ff   :  { %2817 = vadd.xlane.f32.xlu0 %v8225_v15 }
 0x900   :  { %3073 = vmatpush.bf16.msra.mxu3 %v6060_v56 }
 0x902   :  { %v2804_v20 = vpop.f32.mrf.mxu2 }
 0x903   :  { %v2805_v57 = vadd.f32 %v2804_v20, %v2786_v17  ;;  %v6542_v17 = vld [vmem:[#allocation5 + $0x130] sm:$0xf0]  ;;  %v6064_v20 = vor.u32 %v6540_v29, %v6061_v16 }
 0x905   :  { %v8229_v54 = vadd.f32 %v2805_v57, %v8173_v22  ;;  %v6068_v57 = vor.u32 %v6542_v17, %v6067_v39  ;;  %3092 = vmatpush.bf16.msrb.mxu0 %v6064_v20 }
 0x907   :  { %2819 = vadd.xlane.f32.xlu2 %v8229_v54  ;;  %3111 = vmatpush.bf16.msrb.mxu1 %v6068_v57 }
 0x944   :  { %v2814_v32 = vpop.xlane.xlu2 %2813 }
 0x945   :  { %v2821_v41 = vmul.f32 0.010416667, %v2814_v32  ;;  %v6047_v32 = vld [vmem:[#allocation5 + $0x108] sm:$0xf] }
 0x947   :  { %v2825_v19 = vsub.f32 %v8217_v36, %v2821_v41  ;;  %v6538_v41 = vld [vmem:[#allocation5 + $0x110] sm:$0xf0] }
 0x949   :  { %v8234_v6 = vmul.f32 %v7400_v33, %v2825_v19  ;;  %v6537_v19 = vld [vmem:[#allocation5 + $0x10c] sm:$0xf] }
 0x94b   :  { %v2833_v28 = vmul.f32 %v8234_v6, %v8234_v6 }
 0x94c   :  { %v2816_v26 = vpop.xlane.xlu1 %2815 }
 0x94d   :  { %v2822_v8 = vmul.f32 0.010416667, %v2816_v26  ;;  %2837 = vadd.xlane.f32.xlu1 %v2833_v28  ;;  %v6048_v26 = vor.u32 %v6538_v41, %v6047_v32  ;;  %v6008_v41 = vld [vmem:[%s8992_s8 + $0x8] sm:$0x3f] }
 0x94f   :  { %v2826_v21 = vsub.f32 %v8221_v23, %v2822_v8  ;;  %v6049_v8 = vld [vmem:[#allocation5 + $0x114] sm:$0xf0]  ;;  %3074 = vmatpush.bf16.msra.mxu3 %v6048_v26  ;;  %v2897_v26 = vperm.slane %v6008_v41, 0 }
 0x951   :  { %v8240_v22 = vmul.f32 %v7400_v33, %v2826_v21  ;;  %v6055_v21 = vld [vmem:[#allocation5 + $0x110] sm:$0xf] }
 0x953   :  { %v2834_v7 = vmul.f32 %v8240_v22, %v8240_v22 }
 0x955   :  { %2839 = vadd.xlane.f32.xlu0 %v2834_v7  ;;  %v6539_v7 = vld [vmem:[#allocation5 + $0x118] sm:$0xf0] }
 0x972   :  { %v2818_v34 = vpop.xlane.xlu0 %2817 }
 0x973   :  { %v2823_v2 = vmul.f32 0.010416667, %v2818_v34 }
 0x975   :  { %v2827_v50 = vsub.f32 %v8225_v15, %v2823_v2  ;;  %v6052_v2 = vor.u32 %v6537_v19, %v6049_v8 }
 0x977   :  { %v8246_v31 = vmul.f32 %v7400_v33, %v2827_v50  ;;  %v6056_v50 = vor.u32 %v6539_v7, %v6055_v21  ;;  %3093 = vmatpush.bf16.msrb.mxu0 %v6052_v2  ;;  %v2902_v2 = vperm.slane %v6008_v41, 1 }
 0x979   :  { %v2835_v0 = vmul.f32 %v8246_v31, %v8246_v31  ;;  %3112 = vmatpush.bf16.msrb.mxu1 %v6056_v50 }
 0x97a   :  { %v2820_v18 = vpop.xlane.xlu2 %2819 }
 0x97b   :  { %v2824_v30 = vmul.f32 0.010416667, %v2820_v18  ;;  %2841 = vadd.xlane.f32.xlu2 %v2835_v0  ;;  %v6035_v0 = vld [vmem:[#allocation5 + $0xf0] sm:$0xf]  ;;  %v6535_v18 = vld [vmem:[#allocation5 + $0xf8] sm:$0xf0] }
 0x97d   :  { %v2828_v58 = vsub.f32 %v8229_v54, %v2824_v30  ;;  %v6036_v30 = vor.u32 %v6535_v18, %v6035_v0  ;;  %3113 = vmatpush.bf16.msrb.mxu1 %v6044_v11 }
 0x97f   :  { %v8252_v1 = vmul.f32 %v7400_v33, %v2828_v58  ;;  %v6534_v58 = vld [vmem:[#allocation5 + $0xf4] sm:$0xf]  ;;  %3075 = vmatpush.bf16.msra.mxu3 %v6036_v30 }
 0x981   :  { %v2836_v46 = vmul.f32 %v8252_v1, %v8252_v1  ;;  %3114 = vmatpush.bf16.msrb.mxu1 %v6032_v63 }
 0x983   :  { %2843 = vadd.xlane.f32.xlu1 %v2836_v46  ;;  %v6037_v46 = vld [vmem:[#allocation5 + $0xfc] sm:$0xf0]  ;;  %3076 = vmatpush.bf16.msra.mxu3 %v6024_v60 }
 0x984   :  { %v6040_v59 = vor.u32 %v6534_v58, %v6037_v46 }
 0x985   :  { %3115 = vmatpush.bf16.msrb.mxu1 %v6020_v35 }
 0x986   :  { %3094 = vmatpush.bf16.msrb.mxu0 %v6040_v59 }
 0x987   :  { %3077 = vmatpush.bf16.msra.mxu3 %v6012_v45 }
 0x98a   :  { %3095 = vmatpush.bf16.msrb.mxu0 %v6028_v27 }
 0x98e   :  { %3096 = vmatpush.bf16.msrb.mxu0 %v6016_v3 }
 0x9c0   :  { %v2838_v28 = vpop.xlane.xlu1 %2837 }
 0x9c1   :  { %v2845_v34 = vmul.f32 0.010416667, %v2838_v28 }
 0x9c3   :  { %v2849_v42 = vadd.f32 1e-05, %v2845_v34 }
 0x9c5   :  { %6953 = vrsqrt.f32 %v2849_v42  ;;  %vm2859_vm6 = vweird.f32 %v2849_v42 }
 0x9c8   :  { %v2840_v40 = vpop.xlane.xlu0 %2839 }
 0x9c9   :  { %v2846_v48 = vmul.f32 0.010416667, %v2840_v40 }
 0x9cb   :  { %v6954_v14 = vpop.eup %6953  ;;  %v2850_v9 = vadd.f32 1e-05, %v2846_v48 }
 0x9cc   :  { %v2854_v47 = vmul.f32 %v6954_v14, %v2849_v42  ;;  %vm2860_vm5 = vweird.f32 %v6954_v14 }
 0x9cd   :  { %6955 = vrsqrt.f32 %v2850_v9  ;;  %vm2861_vm7 = vmor %vm2859_vm6, %vm2860_vm5  ;;  %vm2869_vm9 = vweird.f32 %v2850_v9 }
 0x9ce   :  { %v2855_v61 = vmul.f32 %v6954_v14, %v2854_v47 }
 0x9d0   :  { %v2856_v29 = vmul.f32 0.5, %v2855_v61 }
 0x9d2   :  { %v2857_v56 = vsub.f32 1.5, %v2856_v29 }
 0x9d3   :  { %v6956_v16 = vpop.eup %6955 }
 0x9d4   :  { %v2858_v39 = vmul.f32 %v6954_v14, %v2857_v56  ;;  %v2864_v17 = vmul.f32 %v6956_v16, %v2850_v9  ;;  %vm2870_vm8 = vweird.f32 %v6956_v16 }
 0x9d5   :  { %vm2871_vm10 = vmor %vm2869_vm9, %vm2870_vm8 }
 0x9d6   :  { %v2865_v20 = vmul.f32 %v6956_v16, %v2864_v17  ;;  %v2862_v57 = vsel %vm2861_vm7, %v6954_v14, %v2858_v39 }
 0x9d7   :  { %v2893_v28 = vmul.f32 %v2862_v57, %v8234_v6 }
 0x9d8   :  { %v2866_v32 = vmul.f32 0.5, %v2865_v20 }
 0x9d9   :  { %v2898_v34 = vmul.f32 %v2897_v26, %v2893_v28 }
 0x9da   :  { %v2867_v19 = vsub.f32 1.5, %v2866_v32 }
 0x9db   :  { %v2903_v0 = vadd.f32 %v2902_v2, %v2898_v34 }
 0x9dc   :  { %v2868_v8 = vmul.f32 %v6956_v16, %v2867_v19 }
 0x9de   :  { %v2872_v21 = vsel %vm2871_vm10, %v6956_v16, %v2868_v8 }
 0x9df   :  { %v2894_v7 = vmul.f32 %v2872_v21, %v8240_v22 }
 0x9e1   :  { %v2899_v50 = vmul.f32 %v2897_v26, %v2894_v7 }
 0x9e3   :  { %v2904_v18 = vadd.f32 %v2902_v2, %v2899_v50 }
 0x9e5   :  { %v2907_v30 = vpack.c.bf16 %v2904_v18, %v2903_v0 }
 0x9e7   :  { %3078 = vmatmul.bf16.vlgmr.msra.gmra.mxu3 %v2907_v30  ;;  %3097 = vmatmul.bf16.vlgmr.msrb.gmra.mxu0 %v2907_v30 }
 0x9e8   :  { %3116 = vmatmul.bf16.vlgmr.msrb.gmra.mxu1 %v2907_v30 }
 0x9ee   :  { %v2842_v58 = vpop.xlane.xlu2 %2841 }
 0x9ef   :  { %v2847_v46 = vmul.f32 0.010416667, %v2842_v58 }
 0x9f1   :  { %v2851_v55 = vadd.f32 1e-05, %v2847_v46 }
 0x9f3   :  { %6957 = vrsqrt.f32 %v2851_v55  ;;  %vm2879_vm0 = vweird.f32 %v2851_v55 }
 0x9f6   :  { %v2844_v6 = vpop.xlane.xlu1 %2843 }
 0x9f7   :  { %v2848_v42 = vmul.f32 0.010416667, %v2844_v6 }
 0x9f9   :  { %v6958_v59 = vpop.eup %6957  ;;  %v2852_v52 = vadd.f32 1e-05, %v2848_v42 }
 0x9fa   :  { %v2874_v13 = vmul.f32 %v6958_v59, %v2851_v55  ;;  %vm2880_vm11 = vweird.f32 %v6958_v59 }
 0x9fb   :  { %6959 = vrsqrt.f32 %v2852_v52  ;;  %vm2881_vm2 = vmor %vm2879_vm0, %vm2880_vm11  ;;  %vm2889_vm5 = vweird.f32 %v2852_v52 }
 0x9fc   :  { %v2875_v22 = vmul.f32 %v6958_v59, %v2874_v13 }
 0x9fe   :  { %v2876_v11 = vmul.f32 0.5, %v2875_v22 }
 0xa00   :  { %v2877_v53 = vsub.f32 1.5, %v2876_v11 }
 0xa01   :  { %v6960_v10 = vpop.eup %6959 }
 0xa02   :  { %v2878_v24 = vmul.f32 %v6958_v59, %v2877_v53  ;;  %v2884_v37 = vmul.f32 %v6960_v10, %v2852_v52  ;;  %vm2890_vm4 = vweird.f32 %v6960_v10 }
 0xa03   :  { %vm2891_vm6 = vmor %vm2889_vm5, %vm2890_vm4 }
 0xa04   :  { %v2885_v25 = vmul.f32 %v6960_v10, %v2884_v37  ;;  %v2882_v60 = vsel %vm2881_vm2, %v6958_v59, %v2878_v24 }
 0xa05   :  { %v2895_v43 = vmul.f32 %v2882_v60, %v8246_v31 }
 0xa06   :  { %v2886_v27 = vmul.f32 0.5, %v2885_v25 }
 0xa07   :  { %v2900_v38 = vmul.f32 %v2897_v26, %v2895_v43 }
 0xa08   :  { %v2887_v63 = vsub.f32 1.5, %v2886_v27 }
 0xa09   :  { %v2905_v4 = vadd.f32 %v2902_v2, %v2900_v38 }
 0xa0a   :  { %v2888_v44 = vmul.f32 %v6960_v10, %v2887_v63 }
 0xa0c   :  { %v2892_v12 = vsel %vm2891_vm6, %v6960_v10, %v2888_v44 }
 0xa0d   :  { %v2896_v40 = vmul.f32 %v2892_v12, %v8252_v1 }
 0xa0f   :  { %v2901_v51 = vmul.f32 %v2897_v26, %v2896_v40 }
 0xa11   :  { %v2906_v48 = vadd.f32 %v2902_v2, %v2901_v51 }
 0xa13   :  { %v2908_v45 = vpack.c.bf16 %v2906_v48, %v2905_v4 }
 0xa15   :  { %3083 = vmatmul.bf16.gmra.mxu3 %v2908_v45  ;;  %3102 = vmatmul.bf16.gmra.mxu0 %v2908_v45 }
 0xa16   :  { %3121 = vmatmul.bf16.gmra.mxu1 %v2908_v45 }
 0xa64   :  { %v3098_v14 = vpop.f32.mrf.mxu0 }
 0xa65   :  { %v3117_v9 = vpop.f32.mrf.mxu1  ;;  %3603 = vrot.lane.b32.xlu0 %v3098_v14, %s7267_s19  ;;  %3355 = vrot.lane.b32.xlu2 %v3098_v14, %s7266_s18 }
 0xa66   :  { %3847 = vrot.lane.b32.xlu1 %v3098_v14, %s7268_s20 }
 0xa6a   :  { %v3079_v31 = vpop.f32.mrf.mxu3 }
 0xa6c   :  { %v3100_v3 = vpop.f32.mrf.mxu0 }
 0xa6d   :  { %v3119_v35 = vpop.f32.mrf.mxu1  ;;  %3605 = vrot.lane.b32.xlu2 %v3100_v3, %s7267_s19  ;;  %3357 = vrot.lane.b32.xlu0 %v3100_v3, %s7266_s18 }
 0xa6e   :  { %6105 = vmatpush.xpose.msk.msrb.mxu2 %vm570_vm3, %v3100_v3  ;;  %3351 = vrot.lane.b32.xlu1 %v3079_v31, %s7266_s18  ;;  %v8270_v1 = vpack.i.bf16 %v3117_v9, %v3119_v35 }
 0xa72   :  { %6106 = vmatpush.xpose.msk.msrb.mxu2 %vm570_vm3, %v3098_v14  ;;  %v3081_v47 = vpop.f32.mrf.mxu3 }
 0xa75   :  { %6107 = vmatmul.msk.f32.vlgmr.msrb.gmra.mxu2 %vm570_vm3, %v3079_v31  ;;  %3849 = vrot.lane.b32.xlu0 %v3100_v3, %s7268_s20 }
 0xa76   :  { %3313 = vmatpush.msra.mxu2 %v3119_v35  ;;  %3601 = vrot.lane.b32.xlu2 %v3081_v47, %s7267_s19 }
 0xa77   :  { %3599 = vrot.lane.b32.xlu1 %v3079_v31, %s7267_s19 }
 0xa78   :  { %3314 = vmatpush.msra.mxu2 %v3117_v9 }
 0xa7d   :  { %6108 = vmatmul.msk.f32.gmra.mxu2 %vm570_vm3, %v3081_v47  ;;  %3353 = vrot.lane.b32.xlu0 %v3081_v47, %s7266_s18 }
 0xa92   :  { %v3103_v61 = vpop.f32.mrf.mxu0 }
 0xa93   :  { %3642 = vrot.lane.b32.xlu2 %v3103_v61, %s7267_s19  ;;  %3394 = vrot.lane.b32.xlu1 %v3103_v61, %s7266_s18  ;;  %v3122_v29 = vpop.f32.mrf.mxu1 }
 0xa98   :  { %v3084_v16 = vpop.f32.mrf.mxu3 }
 0xa9a   :  { %v3105_v56 = vpop.f32.mrf.mxu0 }
 0xa9b   :  { %3644 = vrot.lane.b32.xlu1 %v3105_v56, %s7267_s19  ;;  %3396 = vrot.lane.b32.xlu0 %v3105_v56, %s7266_s18  ;;  %v3124_v39 = vpop.f32.mrf.mxu1 }
 0xa9c   :  { %6109 = vmatpush.xpose.msk.msrb.mxu3 %vm570_vm3, %v3105_v56  ;;  %3390 = vrot.lane.b32.xlu2 %v3084_v16, %s7266_s18  ;;  %v8309_v32 = vpack.i.bf16 %v3122_v29, %v3124_v39 }
 0xaa0   :  { %6110 = vmatpush.xpose.msk.msrb.mxu3 %vm570_vm3, %v3103_v61  ;;  %v3086_v17 = vpop.f32.mrf.mxu3 }
 0xaa3   :  { %6111 = vmatmul.msk.f32.vlgmr.msrb.gmra.mxu3 %vm570_vm3, %v3084_v16  ;;  %4093 = vrot.lane.b32.xlu1 %v3100_v3, %s7258_s16 }
 0xaa4   :  { %3342 = vmatpush.msra.mxu3 %v3124_v39  ;;  %3638 = vrot.lane.b32.xlu0 %v3084_v16, %s7267_s19 }
 0xaa5   :  { %3843 = vrot.lane.b32.xlu2 %v3079_v31, %s7268_s20 }
 0xaa6   :  { %3343 = vmatpush.msra.mxu3 %v3122_v29 }
 0xaab   :  { %6112 = vmatmul.msk.f32.gmra.mxu3 %vm570_vm3, %v3086_v17  ;;  %3882 = vrot.lane.b32.xlu1 %v3084_v16, %s7268_s20 }
 0xaac   :  { %3392 = vrot.lane.b32.xlu0 %v3086_v17, %s7266_s18 }
 0xaad   :  { %3888 = vrot.lane.b32.xlu2 %v3105_v56, %s7268_s20 }
 0xab3   :  { %4089 = vrot.lane.b32.xlu1 %v3081_v47, %s7258_s16 }
 0xab4   :  { %3845 = vrot.lane.b32.xlu0 %v3081_v47, %s7268_s20 }
 0xab5   :  { %4091 = vrot.lane.b32.xlu2 %v3098_v14, %s7258_s16 }
 0xabb   :  { %4130 = vrot.lane.b32.xlu1 %v3103_v61, %s7258_s16 }
 0xabc   :  { %3886 = vrot.lane.b32.xlu0 %v3103_v61, %s7268_s20 }
 0xabd   :  { %4337 = vrot.lane.b32.xlu2 %v3100_v3, %s7269_s1 }
 0xabf   :  { %v3356_v20 = vpop.permute.xlu2 %3355 }
 0xac3   :  { %4331 = vrot.lane.b32.xlu1 %v3079_v31, %s7269_s1 }
 0xac4   :  { %4087 = vrot.lane.b32.xlu0 %v3079_v31, %s7258_s16 }
 0xac5   :  { %4126 = vrot.lane.b32.xlu2 %v3084_v16, %s7258_s16 }
 0xac7   :  { %v3606_v41 = vpop.permute.xlu2 %3605 }
 0xacb   :  { %3640 = vrot.lane.b32.xlu1 %v3086_v17, %s7267_s19 }
 0xacc   :  { %4132 = vrot.lane.b32.xlu0 %v3105_v56, %s7258_s16 }
 0xacd   :  { %4333 = vrot.lane.b32.xlu2 %v3081_v47, %s7269_s1 }
 0xad0   :  { %v3602_v26 = vpop.permute.xlu2 %3601 }
 0xad3   :  { %4376 = vrot.lane.b32.xlu1 %v3105_v56, %s7269_s1 }
 0xad4   :  { %4335 = vrot.lane.b32.xlu0 %v3098_v14, %s7269_s1 }
 0xad5   :  { %3884 = vrot.lane.b32.xlu2 %v3086_v17, %s7268_s20 }
 0xad7   :  { %v3604_v57 = vpop.permute.xlu0 %3603 }
 0xad8   :  { %v3848_v19 = vpop.permute.xlu1 %3847 }
 0xadb   :  { %6747 = vrot.lane.b32.xlu1 %v8309_v32, %s7266_s18 }
 0xadc   :  { %4128 = vrot.lane.b32.xlu0 %v3086_v17, %s7258_s16 }
 0xadd   :  { %4370 = vrot.lane.b32.xlu2 %v3084_v16, %s7269_s1 }
 0xadf   :  { %v3358_v28 = vpop.permute.xlu0 %3357 }
 0xae0   :  { %6117 = vmatpush.xpose.msk.msra.mxu0 %vm570_vm3, %v3358_v28  ;;  %v3352_v8 = vpop.permute.xlu1 %3351 }
 0xae3   :  { %6762 = vrot.lane.b32.xlu1 %v8270_v1, %s7268_s20 }
 0xae4   :  { %4374 = vrot.lane.b32.xlu0 %v3103_v61, %s7269_s1  ;;  %6118 = vmatpush.xpose.msk.msra.mxu0 %vm570_vm3, %v3356_v20 }
 0xae5   :  { %6752 = vrot.lane.b32.xlu2 %v8270_v1, %s7267_s19 }
 0xae7   :  { %v3850_v21 = vpop.permute.xlu0 %3849  ;;  %6119 = vmatmul.msk.f32.vlgmr.msra.gmra.mxu0 %vm570_vm3, %v3352_v8 }
 0xae8   :  { %6129 = vmatpush.xpose.msk.msrb.mxu0 %vm570_vm3, %v3606_v41 }
 0xae9   :  { %v3600_v50 = vpop.permute.xlu1 %3599 }
 0xaeb   :  { %4372 = vrot.lane.b32.xlu1 %v3086_v17, %s7269_s1 }
 0xaec   :  { %6130 = vmatpush.xpose.msk.msrb.mxu0 %vm570_vm3, %v3604_v57  ;;  %6742 = vrot.lane.b32.xlu0 %v8270_v1, %s7266_s18 }
 0xaed   :  { %v3643_v7 = vpop.permute.xlu2 %3642 }
 0xaef   :  { %v3354_v34 = vpop.permute.xlu0 %3353 }
 0xaf0   :  { %6141 = vmatpush.xpose.msk.msra.mxu0 %vm570_vm3, %v3850_v21 }
 0xaf1   :  { %6120 = vmatmul.msk.f32.gmra.mxu0 %vm570_vm3, %v3354_v34 }
 0xaf4   :  { %6142 = vmatpush.xpose.msk.msra.mxu0 %vm570_vm3, %v3848_v19  ;;  %6757 = vrot.lane.b32.xlu0 %v8309_v32, %s7267_s19 }
 0xaf6   :  { %v3391_v2 = vpop.permute.xlu2 %3390 }
 0xaf8   :  { %v3156_v0 = vpop.f32.mrf.mxu2 }
 0xaf9   :  { %6131 = vmatmul.msk.f32.vlgmr.msrb.gmra.mxu0 %vm570_vm3, %v3600_v50  ;;  %v8349_v11 = vadd.f32 %v3156_v0, %v7515_v49 }
 0xafb   :  { %v3197_v24 = vsel %vm570_vm3, %v8349_v11, -inf }
 0xaff   :  { %v3844_v18 = vpop.permute.xlu2 %3843 }
 0xb00   :  { %v3159_v58 = vpop.f32.mrf.mxu2 }
 0xb01   :  { %6132 = vmatmul.msk.f32.gmra.mxu0 %vm570_vm3, %v3602_v26  ;;  %v8336_v55 = vadd.f32 %v3159_v58, %v7536_v62 }
 0xb03   :  { %v3200_v6 = vsel %vm570_vm3, %v8336_v55, -inf }
 0xb05   :  { %v3395_v30 = vpop.permute.xlu1 %3394 }
 0xb07   :  { %v3889_v46 = vpop.permute.xlu2 %3888 }
 0xb09   :  { %6143 = vmatmul.msk.f32.vlgmr.msra.gmra.mxu0 %vm570_vm3, %v3844_v18 }
 0xb0d   :  { %v3645_v42 = vpop.permute.xlu1 %3644  ;;  %v3397_v59 = vpop.permute.xlu0 %3396 }
 0xb0e   :  { %3201 = vmax.xlane.f32.xlu2 %v3200_v6  ;;  %6121 = vmatpush.xpose.msk.msra.mxu1 %vm570_vm3, %v3397_v59 }
 0xb0f   :  { %v4092_v52 = vpop.permute.xlu2 %4091 }
 0xb12   :  { %6122 = vmatpush.xpose.msk.msra.mxu1 %vm570_vm3, %v3395_v30 }
 0xb15   :  { %v4094_v13 = vpop.permute.xlu1 %4093  ;;  %6123 = vmatmul.msk.f32.vlgmr.msra.gmra.mxu1 %vm570_vm3, %v3391_v2 }
 0xb16   :  { %6133 = vmatpush.xpose.msk.msrb.mxu1 %vm570_vm3, %v3645_v42  ;;  %v3639_v22 = vpop.permute.xlu0 %3638  ;;  %6153 = vmatpush.xpose.msk.msrb.mxu0 %vm570_vm3, %v4094_v13 }
 0xb17   :  { %v4338_v53 = vpop.permute.xlu2 %4337 }
 0xb1a   :  { %6134 = vmatpush.xpose.msk.msrb.mxu1 %vm570_vm3, %v3643_v7  ;;  %6154 = vmatpush.xpose.msk.msrb.mxu0 %vm570_vm3, %v4092_v52 }
 0xb1d   :  { %v3883_v10 = vpop.permute.xlu1 %3882 }
 0xb1e   :  { %6145 = vmatpush.xpose.msk.msra.mxu1 %vm570_vm3, %v3889_v46  ;;  %6165 = vmatpush.xpose.msk.msra.mxu0 %vm570_vm3, %v4338_v53  ;;  %v3393_v37 = vpop.permute.xlu0 %3392 }
 0xb1f   :  { %3198 = vmax.xlane.f32.xlu0 %v3197_v24  ;;  %6124 = vmatmul.msk.f32.gmra.mxu1 %vm570_vm3, %v3393_v37  ;;  %v4127_v45 = vpop.permute.xlu2 %4126 }
 0xb25   :  { %v4090_v25 = vpop.permute.xlu1 %4089 }
 0xb26   :  { %v3846_v60 = vpop.permute.xlu0 %3845  ;;  %v3191_v27 = vpop.f32.mrf.mxu3 }
 0xb27   :  { %v8357_v63 = vadd.f32 %v3191_v27, %v7515_v49  ;;  %6135 = vmatmul.msk.f32.vlgmr.msrb.gmra.mxu1 %vm570_vm3, %v3639_v22  ;;  %6144 = vmatmul.msk.f32.gmra.mxu0 %vm570_vm3, %v3846_v60  ;;  %v4334_v31 = vpop.permute.xlu2 %4333 }
 0xb29   :  { %v3203_v43 = vsel %vm570_vm3, %v8357_v63, -inf }
 0xb2a   :  { %3204 = vmax.xlane.f32.xlu1 %v3203_v43 }
 0xb2d   :  { %v4131_v44 = vpop.permute.xlu1 %4130 }
 0xb2e   :  { %v3887_v12 = vpop.permute.xlu0 %3886  ;;  %v3194_v40 = vpop.f32.mrf.mxu3 }
 0xb2f   :  { %v8364_v38 = vadd.f32 %v3194_v40, %v7536_v62  ;;  %6146 = vmatpush.xpose.msk.msra.mxu1 %vm570_vm3, %v3887_v12  ;;  %v3885_v47 = vpop.permute.xlu2 %3884 }
 0xb31   :  { %v3206_v51 = vsel %vm570_vm3, %v8364_v38, -inf }
 0xb32   :  { %3207 = vmax.xlane.f32.xlu0 %v3206_v51 }
 0xb35   :  { %v4332_v4 = vpop.permute.xlu1 %4331 }
 0xb36   :  { %v4088_v48 = vpop.permute.xlu0 %4087 }
 0xb37   :  { %6155 = vmatmul.msk.f32.vlgmr.msrb.gmra.mxu0 %vm570_vm3, %v4088_v48  ;;  %v4371_v19 = vpop.permute.xlu2 %4370 }
 0xb3d   :  { %v3641_v14 = vpop.permute.xlu1 %3640 }
 0xb3e   :  { %v4133_v9 = vpop.permute.xlu0 %4132  ;;  %6136 = vmatmul.msk.f32.gmra.mxu1 %vm570_vm3, %v3641_v14 }
 0xb3f   :  { %6156 = vmatmul.msk.f32.gmra.mxu0 %vm570_vm3, %v4090_v25  ;;  %6157 = vmatpush.xpose.msk.msrb.mxu1 %vm570_vm3, %v4133_v9  ;;  %v8404_v58 = vpop.permute.xlu2 %6752 }
 0xb43   :  { %6158 = vmatpush.xpose.msk.msrb.mxu1 %vm570_vm3, %v4131_v44 }
 0xb45   :  { %v4377_v3 = vpop.permute.xlu1 %4376 }
 0xb46   :  { %v4336_v35 = vpop.permute.xlu0 %4335  ;;  %6147 = vmatmul.msk.f32.vlgmr.msra.gmra.mxu1 %vm570_vm3, %v3883_v10 }
 0xb47   :  { %6166 = vmatpush.xpose.msk.msra.mxu0 %vm570_vm3, %v4336_v35  ;;  %6169 = vmatpush.xpose.msk.msra.mxu1 %vm570_vm3, %v4377_v3 }
 0xb4a   :  { %6167 = vmatmul.msk.f32.vlgmr.msra.gmra.mxu0 %vm570_vm3, %v4332_v4 }
 0xb4d   :  { %v6748_v61 = vpop.permute.xlu1 %6747 }
 0xb4e   :  { %v6749_v29 = vunpack.i.l.bf16 %v6748_v61  ;;  %v4129_v56 = vpop.permute.xlu0 %4128  ;;  %6148 = vmatmul.msk.f32.gmra.mxu1 %vm570_vm3, %v3885_v47  ;;  %v6750_v16 = vunpack.i.h.bf16 %v6748_v61 }
 0xb50   :  { %3590 = vmatpush.msrb.mxu3 %v6749_v29 }
 0xb52   :  { %6168 = vmatmul.msk.f32.gmra.mxu0 %vm570_vm3, %v4334_v31  ;;  %3591 = vmatpush.msrb.mxu3 %v6750_v16 }
 0xb55   :  { %v8383_v41 = vpop.permute.xlu1 %6762 }
 0xb56   :  { %v4375_v39 = vpop.permute.xlu0 %4374  ;;  %6159 = vmatmul.msk.f32.vlgmr.msrb.gmra.mxu1 %vm570_vm3, %v4127_v45 }
 0xb57   :  { %6170 = vmatpush.xpose.msk.msra.mxu1 %vm570_vm3, %v4375_v39 }
 0xb5d   :  { %v4373_v21 = vpop.permute.xlu1 %4372 }
 0xb5e   :  { %v6743_v17 = vpop.permute.xlu0 %6742  ;;  %6160 = vmatmul.msk.f32.gmra.mxu1 %vm570_vm3, %v4129_v56 }
 0xb5f   :  { %v6744_v20 = vunpack.i.l.bf16 %v6743_v17  ;;  %v6745_v57 = vunpack.i.h.bf16 %v6743_v17 }
 0xb61   :  { %3553 = vmatpush.msrb.mxu2 %v6744_v20 }
 0xb63   :  { %3554 = vmatpush.msrb.mxu2 %v6745_v57 }
 0xb64   :  { %v3384_v28 = vpop.f32.mrf.mxu0 }
 0xb65   :  { %v8387_v26 = vadd.f32 %v3384_v28, %v7515_v49 }
 0xb66   :  { %6171 = vmatmul.msk.f32.vlgmr.msra.gmra.mxu1 %vm570_vm3, %v4371_v19  ;;  %v8402_v30 = vpop.permute.xlu0 %6757 }
 0xb67   :  { %v3429_v8 = vsel %vm570_vm3, %v8387_v26, -inf }
 0xb68   :  { %3430 = vmax.xlane.f32.xlu2 %v3429_v8 }
 0xb6e   :  { %6172 = vmatmul.msk.f32.gmra.mxu1 %vm570_vm3, %v4373_v21  ;;  %v3387_v7 = vpop.f32.mrf.mxu0 }
 0xb6f   :  { %v8393_v34 = vadd.f32 %v3387_v7, %v7536_v62 }
 0xb71   :  { %v3432_v2 = vsel %vm570_vm3, %v8393_v34, -inf }
 0xb72   :  { %3433 = vmax.xlane.f32.xlu1 %v3432_v2 }
 0xb76   :  { %v3632_v50 = vpop.f32.mrf.mxu0 }
 0xb77   :  { %v8398_v0 = vadd.f32 %v3632_v50, %v7515_v49 }
 0xb79   :  { %v3677_v18 = vsel %vm570_vm3, %v8398_v0, -inf }
 0xb7a   :  { %3678 = vmax.xlane.f32.xlu0 %v3677_v18 }
 0xb7e   :  { %v3635_v22 = vpop.f32.mrf.mxu0 }
 0xb7f   :  { %v8423_v44 = vadd.f32 %v3635_v22, %v7536_v62 }
 0xb81   :  { %v3202_v53 = vpop.xlane.xlu2 %3201  ;;  %v3680_v48 = vsel %vm570_vm3, %v8423_v44, -inf }
 0xb82   :  { %v3210_v24 = vsub.f32 %v8336_v55, %v3202_v53 }
 0xb84   :  { %v3215_v27 = vmul.f32 1.442695, %v3210_v24 }
 0xb86   :  { %v3876_v43 = vpop.f32.mrf.mxu0 }
 0xb87   :  { %v8426_v55 = vadd.f32 %v3876_v43, %v7515_v49 }
 0xb89   :  { %v3921_v14 = vsel %vm570_vm3, %v8426_v55, -inf }
 0xb92   :  { %v3199_v46 = vpop.xlane.xlu0 %3198  ;;  %v3423_v42 = vpop.f32.mrf.mxu1 }
 0xb93   :  { %v3209_v6 = vsub.f32 %v8349_v11, %v3199_v46  ;;  %v8408_v59 = vadd.f32 %v3423_v42, %v7515_v49 }
 0xb95   :  { %v3213_v52 = vmul.f32 1.442695, %v3209_v6  ;;  %v3435_v13 = vsel %vm570_vm3, %v8408_v59, -inf }
 0xb96   :  { %3436 = vmax.xlane.f32.xlu2 %v3435_v13 }
 0xb97   :  { %6961 = vpow2.f32 %v3213_v52 }
 0xb98   :  { %6963 = vpow2.f32 %v3215_v27 }
 0xb9c   :  { %v3426_v37 = vpop.f32.mrf.mxu1 }
 0xb9d   :  { %v8412_v10 = vpop.eup %6961  ;;  %v8416_v25 = vadd.f32 %v3426_v37, %v7536_v62  ;;  %v3205_v12 = vpop.xlane.xlu1 %3204 }
 0xb9e   :  { %v3221_v11 = vsel %vm570_vm3, %v8412_v10, 0.0  ;;  %v3211_v40 = vsub.f32 %v8357_v63, %v3205_v12  ;;  %v8438_v3 = vpop.eup %6963 }
 0xb9f   :  { %3222 = vadd.xlane.f32.xlu2 %v3221_v11  ;;  %v3438_v60 = vsel %vm570_vm3, %v8416_v25, -inf  ;;  %v3224_v35 = vsel %vm570_vm3, %v8438_v3, 0.0 }
 0xba0   :  { %3439 = vmax.xlane.f32.xlu1 %v3438_v60  ;;  %v3217_v9 = vmul.f32 1.442695, %v3211_v40 }
 0xba2   :  { %6965 = vpow2.f32 %v3217_v9 }
 0xba4   :  { %v3671_v51 = vpop.f32.mrf.mxu1  ;;  %v3879_v31 = vpop.f32.mrf.mxu0 }
 0xba5   :  { %v8430_v4 = vadd.f32 %v3671_v51, %v7515_v49  ;;  %v8441_v63 = vadd.f32 %v3879_v31, %v7536_v62  ;;  %v3208_v29 = vpop.xlane.xlu0 %3207 }
 0xba6   :  { %v3212_v16 = vsub.f32 %v8364_v38, %v3208_v29 }
 0xba7   :  { %3681 = vmax.xlane.f32.xlu2 %v3680_v48  ;;  %v3683_v45 = vsel %vm570_vm3, %v8430_v4, -inf  ;;  %v3924_v47 = vsel %vm570_vm3, %v8441_v63, -inf }
 0xba8   :  { %3684 = vmax.xlane.f32.xlu0 %v3683_v45  ;;  %3922 = vmax.xlane.f32.xlu1 %v3921_v14  ;;  %v8447_v61 = vpop.eup %6965  ;;  %v3219_v57 = vmul.f32 1.442695, %v3212_v16 }
 0xba9   :  { %v3227_v17 = vsel %vm570_vm3, %v8447_v61, 0.0 }
 0xbaa   :  { %6967 = vpow2.f32 %v3219_v57 }
 0xbaf   :  { %3225 = vadd.xlane.f32.xlu2 %v3224_v35 }
 0xbb0   :  { %3925 = vmax.xlane.f32.xlu1 %v3924_v47  ;;  %v8467_v2 = vpop.eup %6967 }
 0xbb1   :  { %v3230_v18 = vsel %vm570_vm3, %v8467_v2, 0.0 }
 0xbb4   :  { %v4120_v56 = vpop.f32.mrf.mxu0 }
 0xbb5   :  { %v8451_v39 = vadd.f32 %v4120_v56, %v7515_v49 }
 0xbb7   :  { %3228 = vadd.xlane.f32.xlu2 %v3227_v17  ;;  %v4165_v20 = vsel %vm570_vm3, %v8451_v39, -inf }
 0xbb8   :  { %4166 = vmax.xlane.f32.xlu1 %v4165_v20 }
 0xbbb   :  { %v3674_v19 = vpop.f32.mrf.mxu1 }
 0xbbc   :  { %v8458_v28 = vadd.f32 %v3674_v19, %v7536_v62  ;;  %v4123_v8 = vpop.f32.mrf.mxu0 }
 0xbbd   :  { %v8461_v38 = vadd.f32 %v4123_v8, %v7536_v62 }
 0xbbe   :  { %v3686_v21 = vsel %vm570_vm3, %v8458_v28, -inf }
 0xbbf   :  { %3687 = vmax.xlane.f32.xlu0 %v3686_v21  ;;  %v4168_v7 = vsel %vm570_vm3, %v8461_v38, -inf }
 0xbc0   :  { %4169 = vmax.xlane.f32.xlu2 %v4168_v7 }
 0xbc3   :  { %v3915_v50 = vpop.f32.mrf.mxu1 }
 0xbc4   :  { %v8472_v46 = vadd.f32 %v3915_v50, %v7515_v49 }
 0xbc6   :  { %v3927_v13 = vsel %vm570_vm3, %v8472_v46, -inf }
 0xbc7   :  { %3231 = vadd.xlane.f32.xlu0 %v3230_v18  ;;  %v4364_v52 = vpop.f32.mrf.mxu0 }
 0xbc8   :  { %v8482_v53 = vadd.f32 %v4364_v52, %v7515_v49 }
 0xbca   :  { %v4409_v11 = vsel %vm570_vm3, %v8482_v53, -inf }
 0xbcb   :  { %v3918_v6 = vpop.f32.mrf.mxu1 }
 0xbcc   :  { %v8475_v42 = vadd.f32 %v3918_v6, %v7536_v62 }
 0xbce   :  { %v3930_v22 = vsel %vm570_vm3, %v8475_v42, -inf }
 0xbcf   :  { %3928 = vmax.xlane.f32.xlu0 %v3927_v13  ;;  %3931 = vmax.xlane.f32.xlu1 %v3930_v22  ;;  %v4367_v27 = vpop.f32.mrf.mxu0 }
 0xbd0   :  { %v8492_v43 = vadd.f32 %v4367_v27, %v7536_v62 }
 0xbd2   :  { %v4412_v14 = vsel %vm570_vm3, %v8492_v43, -inf }
 0xbd3   :  { %v4159_v24 = vpop.f32.mrf.mxu1 }
 0xbd4   :  { %v8485_v37 = vadd.f32 %v4159_v24, %v7515_v49 }
 0xbd6   :  { %v4171_v60 = vsel %vm570_vm3, %v8485_v37, -inf }
 0xbd7   :  { %4410 = vmax.xlane.f32.xlu0 %v4409_v11  ;;  %4172 = vmax.xlane.f32.xlu2 %v4171_v60 }
 0xbdb   :  { %v4162_v12 = vpop.f32.mrf.mxu1  ;;  %v3431_v51 = vpop.xlane.xlu2 %3430 }
 0xbdc   :  { %v8495_v40 = vadd.f32 %v4162_v12, %v7536_v62  ;;  %v3441_v48 = vsub.f32 %v8387_v26, %v3431_v51 }
 0xbde   :  { %v4174_v45 = vsel %vm570_vm3, %v8495_v40, -inf  ;;  %v3445_v9 = vmul.f32 1.442695, %v3441_v48 }
 0xbdf   :  { %4175 = vmax.xlane.f32.xlu1 %v4174_v45  ;;  %4413 = vmax.xlane.f32.xlu2 %v4412_v14 }
 0xbe0   :  { %6969 = vpow2.f32 %v3445_v9 }
 0xbe3   :  { %v4403_v31 = vpop.f32.mrf.mxu1 }
 0xbe4   :  { %v8503_v35 = vadd.f32 %v4403_v31, %v7515_v49 }
 0xbe5   :  { %v3434_v47 = vpop.xlane.xlu1 %3433 }
 0xbe6   :  { %v4415_v29 = vsel %vm570_vm3, %v8503_v35, -inf  ;;  %v3442_v26 = vsub.f32 %v8393_v34, %v3434_v47  ;;  %v8508_v56 = vpop.eup %6969 }
 0xbe7   :  { %4416 = vmax.xlane.f32.xlu1 %v4415_v29  ;;  %v3453_v17 = vsel %vm570_vm3, %v8508_v56, 0.0 }
 0xbe8   :  { %v3447_v16 = vmul.f32 1.442695, %v3442_v26  ;;  %3454 = vadd.xlane.f32.xlu0 %v3453_v17 }
 0xbea   :  { %6971 = vpow2.f32 %v3447_v16 }
 0xbeb   :  { %v4406_v20 = vpop.f32.mrf.mxu1 }
 0xbec   :  { %v8513_v57 = vadd.f32 %v4406_v20, %v7536_v62 }
 0xbed   :  { %v3679_v49 = vpop.xlane.xlu0 %3678 }
 0xbee   :  { %v4418_v19 = vsel %vm570_vm3, %v8513_v57, -inf  ;;  %v3689_v8 = vsub.f32 %v8398_v0, %v3679_v49 }
 0xbef   :  { %4419 = vmax.xlane.f32.xlu1 %v4418_v19 }
 0xbf0   :  { %v3693_v34 = vmul.f32 1.442695, %v3689_v8  ;;  %v8518_v21 = vpop.eup %6971 }
 0xbf1   :  { %v3456_v7 = vsel %vm570_vm3, %v8518_v21, 0.0 }
 0xbf2   :  { %6973 = vpow2.f32 %v3693_v34  ;;  %v6754_v34 = vunpack.i.l.bf16 %v8404_v58 }
 0xbf7   :  { %3457 = vadd.xlane.f32.xlu1 %v3456_v7 }
 0xbf8   :  { %v8522_v50 = vpop.eup %6973 }
 0xbf9   :  { %v3701_v62 = vsel %vm570_vm3, %v8522_v50, 0.0 }
 0xbfa   :  { %3702 = vadd.xlane.f32.xlu2 %v3701_v62 }
 0xc09   :  { %v3437_v18 = vpop.xlane.xlu2 %3436 }
 0xc0a   :  { %v3443_v6 = vsub.f32 %v8408_v59, %v3437_v18  ;;  %v6755_v18 = vunpack.i.h.bf16 %v8404_v58 }
 0xc0c   :  { %v3449_v52 = vmul.f32 1.442695, %v3443_v6 }
 0xc0e   :  { %6975 = vpow2.f32 %v3449_v52 }
 0xc12   :  { %v3223_v0 = vpop.xlane.xlu2 %3222  ;;  %6772 = vrot.lane.b32.xlu2 %v8270_v1, %s7258_s16 }
 0xc13   :  { %6977 = vrcp.f32 %v3223_v0  ;;  %v3440_v13 = vpop.xlane.xlu1 %3439  ;;  %v3244_v14 = vand.u32 2147483648, %v3223_v0  ;;  %v3242_v47 = vand.u32 2147483647, %v3223_v0  ;;  %vm3238_vm8 = vweird.f32 %v3223_v0 }
 0xc14   :  { %v8529_v22 = vpop.eup %6975  ;;  %v3444_v24 = vsub.f32 %v8416_v25, %v3440_v13 }
 0xc15   :  { %v3459_v11 = vsel %vm570_vm3, %v8529_v22, 0.0  ;;  %v3245_v17 = vor.u32 1.1754944e-38, %v3244_v14  ;;  %vm3243_vm10 = vcmp.eq.f32.partialorder %v3242_v47, 8.507059e+37 }
 0xc16   :  { %v3451_v60 = vmul.f32 1.442695, %v3444_v24  ;;  %3460 = vadd.xlane.f32.xlu1 %v3459_v11 }
 0xc18   :  { %6979 = vpow2.f32 %v3451_v60 }
 0xc19   :  { %v6978_v27 = vpop.eup %6977 }
 0xc1a   :  { %v3234_v59 = vmul.f32 %v6978_v27, %v3223_v0  ;;  %v3682_v12 = vpop.xlane.xlu2 %3681  ;;  %vm3239_vm7 = vweird.f32 %v6978_v27 }
 0xc1b   :  { %v3685_v48 = vpop.xlane.xlu0 %3684  ;;  %v8534_v45 = vpop.xlane.xlu1 %3922  ;;  %vm3240_vm9 = vmor %vm3238_vm8, %vm3239_vm7  ;;  %v3690_v24 = vsub.f32 %v8423_v44, %v3682_v12 }
 0xc1c   :  { %v3235_v51 = vsub.f32 1.0, %v3234_v59  ;;  %v3691_v9 = vsub.f32 %v8430_v4, %v3685_v48 }
 0xc1d   :  { %v3695_v59 = vmul.f32 1.442695, %v3690_v24 }
 0xc1e   :  { %v3236_v31 = vmul.f32 %v6978_v27, %v3235_v51  ;;  %v8537_v25 = vpop.eup %6979  ;;  %v3697_v29 = vmul.f32 1.442695, %v3691_v9 }
 0xc1f   :  { %v3462_v16 = vsel %vm570_vm3, %v8537_v25, 0.0 }
 0xc20   :  { %v3237_v26 = vadd.f32 %v6978_v27, %v3236_v31  ;;  %6981 = vpow2.f32 %v3697_v29  ;;  %3463 = vadd.xlane.f32.xlu1 %v3462_v16  ;;  %v3933_v31 = vsub.f32 %v8426_v55, %v8534_v45 }
 0xc22   :  { %v3241_v20 = vsel %vm3240_vm9, %v6978_v27, %v3237_v26  ;;  %v3226_v49 = vpop.xlane.xlu2 %3225 }
 0xc23   :  { %v3246_v19 = vsel %vm3243_vm10, %v3245_v17, %v3241_v20  ;;  %6983 = vrcp.f32 %v3226_v49  ;;  %v3926_v8 = vpop.xlane.xlu1 %3925  ;;  %v3259_v11 = vand.u32 2147483648, %v3226_v49  ;;  %v3257_v27 = vand.u32 2147483647, %v3226_v49 }
 0xc24   :  { %v3247_v4 = vmul.f32 %v8412_v10, %v3246_v19  ;;  %v3934_v7 = vsub.f32 %v8441_v63, %v3926_v8  ;;  %vm3253_vm0 = vweird.f32 %v3226_v49  ;;  %v3937_v19 = vmul.f32 1.442695, %v3933_v31 }
 0xc25   :  { %v3260_v9 = vor.u32 1.1754944e-38, %v3259_v11  ;;  %vm3258_vm4 = vcmp.eq.f32.partialorder %v3257_v27, 8.507059e+37 }
 0xc26   :  { %6113 = vmatmul.msk.f32.vlgmr.msra.gmra.mxu2 %vm570_vm3, %v3247_v4  ;;  %v8545_v62 = vpop.eup %6981  ;;  %v3939_v6 = vmul.f32 1.442695, %v3934_v7 }
 0xc27   :  { %3799 = vmatpush.msra.mxu2 %v6754_v34  ;;  %v3707_v52 = vsel %vm570_vm3, %v8545_v62, 0.0 }
 0xc28   :  { %6985 = vpow2.f32 %v3939_v6  ;;  %3708 = vadd.xlane.f32.xlu0 %v3707_v52 }
 0xc29   :  { %v6984_v0 = vpop.eup %6983  ;;  %3800 = vmatpush.msra.mxu2 %v6755_v18 }
 0xc2a   :  { %v3249_v10 = vmul.f32 %v6984_v0, %v3226_v49  ;;  %v3229_v13 = vpop.xlane.xlu2 %3228  ;;  %vm3254_vm11 = vweird.f32 %v6984_v0 }
 0xc2b   :  { %6987 = vrcp.f32 %v3229_v13  ;;  %vm3255_vm2 = vmor %vm3253_vm0, %vm3254_vm11  ;;  %v3274_v17 = vand.u32 2147483648, %v3229_v13  ;;  %v3272_v49 = vand.u32 2147483647, %v3229_v13  ;;  %vm3268_vm6 = vweird.f32 %v3229_v13 }
 0xc2c   :  { %v3250_v63 = vsub.f32 1.0, %v3249_v10  ;;  %6989 = vpow2.f32 %v3695_v59  ;;  %v6760_v10 = vunpack.i.h.bf16 %v8402_v30 }
 0xc2d   :  { %v3275_v34 = vor.u32 1.1754944e-38, %v3274_v17  ;;  %vm3273_vm8 = vcmp.eq.f32.partialorder %v3272_v49, 8.507059e+37  ;;  %6991 = vpow2.f32 %v3937_v19 }
 0xc2e   :  { %v3251_v60 = vmul.f32 %v6984_v0, %v3250_v63  ;;  %v8551_v58 = vpop.eup %6985 }
 0xc2f   :  { %v3948_v48 = vsel %vm570_vm3, %v8551_v58, 0.0 }
 0xc30   :  { %v3252_v51 = vadd.f32 %v6984_v0, %v3251_v60  ;;  %3949 = vadd.xlane.f32.xlu0 %v3948_v48 }
 0xc31   :  { %v6988_v14 = vpop.eup %6987 }
 0xc32   :  { %v3264_v44 = vmul.f32 %v6988_v14, %v3229_v13  ;;  %v3256_v12 = vsel %vm3255_vm2, %v6984_v0, %v3252_v51  ;;  %v3688_v47 = vpop.xlane.xlu0 %3687  ;;  %vm3269_vm5 = vweird.f32 %v6988_v14  ;;  %v8559_v8 = vpop.eup %6989  ;;  %v6759_v0 = vunpack.i.l.bf16 %v8402_v30 }
 0xc33   :  { %v3261_v29 = vsel %vm3258_vm4, %v3260_v9, %v3256_v12  ;;  %vm3270_vm7 = vmor %vm3268_vm6, %vm3269_vm5  ;;  %v3692_v45 = vsub.f32 %v8458_v28, %v3688_v47  ;;  %v3704_v52 = vsel %vm570_vm3, %v8559_v8, 0.0  ;;  %v8570_v24 = vpop.eup %6991  ;;  %v4170_v63 = vpop.xlane.xlu2 %4169 }
 0xc34   :  { %v3265_v26 = vsub.f32 1.0, %v3264_v44  ;;  %v3262_v16 = vmul.f32 %v8438_v3, %v3261_v29  ;;  %v4167_v3 = vpop.xlane.xlu1 %4166  ;;  %v3945_v51 = vsel %vm570_vm3, %v8570_v24, 0.0 }
 0xc35   :  { %v3699_v13 = vmul.f32 1.442695, %v3692_v45  ;;  %v4177_v30 = vsub.f32 %v8451_v39, %v4167_v3 }
 0xc36   :  { %v3266_v20 = vmul.f32 %v6988_v14, %v3265_v26  ;;  %6114 = vmatmul.msk.f32.gmra.mxu2 %vm570_vm3, %v3262_v16  ;;  %v4178_v26 = vsub.f32 %v8461_v38, %v4170_v63 }
 0xc38   :  { %v3267_v4 = vadd.f32 %v6988_v14, %v3266_v20 }
 0xc39   :  { %6767 = vrot.lane.b32.xlu1 %v8309_v32, %s7268_s20 }
 0xc3a   :  { %v3271_v7 = vsel %vm3270_vm7, %v6988_v14, %v3267_v4  ;;  %v3232_v18 = vpop.xlane.xlu0 %3231 }
 0xc3b   :  { %v3276_v55 = vsel %vm3273_vm8, %v3275_v34, %v3271_v7  ;;  %6993 = vrcp.f32 %v3232_v18  ;;  %3705 = vadd.xlane.f32.xlu2 %v3704_v52  ;;  %v3289_v14 = vand.u32 2147483648, %v3232_v18  ;;  %v3287_v12 = vand.u32 2147483647, %v3232_v18 }
 0xc3c   :  { %v3277_v6 = vmul.f32 %v8447_v61, %v3276_v55  ;;  %6995 = vpow2.f32 %v3699_v13  ;;  %vm3283_vm10 = vweird.f32 %v3232_v18  ;;  %v4183_v34 = vmul.f32 1.442695, %v4178_v26 }
 0xc3d   :  { %vm3288_vm0 = vcmp.eq.f32.partialorder %v3287_v12, 8.507059e+37 }
 0xc3e   :  { %6115 = vmatmul.msk.f32.vlgmr.msra.gmra.mxu3 %vm570_vm3, %v3277_v6 }
 0xc3f   :  { %3834 = vmatpush.msra.mxu3 %v6759_v0 }
 0xc41   :  { %3835 = vmatpush.msra.mxu3 %v6760_v10  ;;  %v6994_v28 = vpop.eup %6993 }
 0xc42   :  { %v3279_v61 = vmul.f32 %v6994_v28, %v3232_v18  ;;  %v3929_v11 = vpop.xlane.xlu0 %3928  ;;  %v3932_v60 = vpop.xlane.xlu1 %3931  ;;  %vm3284_vm9 = vweird.f32 %v6994_v28 }
 0xc43   :  { %v3935_v27 = vsub.f32 %v8472_v46, %v3929_v11  ;;  %v3936_v59 = vsub.f32 %v8475_v42, %v3932_v60  ;;  %3946 = vadd.xlane.f32.xlu2 %v3945_v51  ;;  %v8577_v47 = vpop.eup %6995  ;;  %v4181_v46 = vmul.f32 1.442695, %v4177_v30  ;;  %vm3285_vm11 = vmor %vm3283_vm10, %vm3284_vm9  ;;  %v3290_v42 = vor.u32 1.1754944e-38, %v3289_v14 }
 0xc44   :  { %v3280_v48 = vsub.f32 1.0, %v3279_v61  ;;  %v3710_v17 = vsel %vm570_vm3, %v8577_v47, 0.0 }
 0xc45   :  { %v3941_v9 = vmul.f32 1.442695, %v3935_v27  ;;  %v3943_v31 = vmul.f32 1.442695, %v3936_v59 }
 0xc46   :  { %v3281_v44 = vmul.f32 %v6994_v28, %v3280_v48 }
 0xc47   :  { %6997 = vpow2.f32 %v3941_v9 }
 0xc48   :  { %v3282_v29 = vadd.f32 %v6994_v28, %v3281_v44  ;;  %6999 = vpow2.f32 %v3943_v31 }
 0xc49   :  { %7001 = vpow2.f32 %v4181_v46 }
 0xc4a   :  { %v4173_v16 = vpop.xlane.xlu2 %4172  ;;  %v3286_v39 = vsel %vm3285_vm11, %v6994_v28, %v3282_v29  ;;  %v4411_v7 = vpop.xlane.xlu0 %4410  ;;  %7003 = vpow2.f32 %v4183_v34  ;;  %v6764_v34 = vunpack.i.l.bf16 %v8383_v41 }
 0xc4b   :  { %v3291_v20 = vsel %vm3288_vm0, %v3290_v42, %v3286_v39  ;;  %3711 = vadd.xlane.f32.xlu2 %v3710_v17  ;;  %v4179_v4 = vsub.f32 %v8485_v37, %v4173_v16  ;;  %v4421_v45 = vsub.f32 %v8482_v53, %v4411_v7  ;;  %v6765_v7 = vunpack.i.h.bf16 %v8383_v41 }
 0xc4c   :  { %v3292_v49 = vmul.f32 %v8467_v2, %v3291_v20 }
 0xc4d   :  { %v8583_v19 = vpop.eup %6997  ;;  %v4185_v3 = vmul.f32 1.442695, %v4179_v4  ;;  %v4425_v0 = vmul.f32 1.442695, %v4421_v45 }
 0xc4e   :  { %6116 = vmatmul.msk.f32.gmra.mxu3 %vm570_vm3, %v3292_v49  ;;  %v3951_v38 = vsel %vm570_vm3, %v8583_v19, 0.0  ;;  %v8589_v55 = vpop.eup %6999 }
 0xc4f   :  { %3952 = vadd.xlane.f32.xlu0 %v3951_v38  ;;  %v8592_v18 = vpop.eup %7001  ;;  %v3954_v37 = vsel %vm570_vm3, %v8589_v55, 0.0  ;;  %7005 = vpow2.f32 %v4185_v3 }
 0xc50   :  { %v4189_v10 = vsel %vm570_vm3, %v8592_v18, 0.0  ;;  %v8599_v28 = vpop.eup %7003 }
 0xc51   :  { %v4192_v61 = vsel %vm570_vm3, %v8599_v28, 0.0 }
 0xc52   :  { %v4176_v2 = vpop.xlane.xlu1 %4175  ;;  %v4414_v13 = vpop.xlane.xlu2 %4413 }
 0xc53   :  { %v4180_v6 = vsub.f32 %v8495_v40, %v4176_v2  ;;  %3955 = vadd.xlane.f32.xlu2 %v3954_v37  ;;  %v4422_v53 = vsub.f32 %v8492_v43, %v4414_v13 }
 0xc55   :  { %v4187_v52 = vmul.f32 1.442695, %v4180_v6  ;;  %v8604_v40 = vpop.eup %7005  ;;  %v4427_v60 = vmul.f32 1.442695, %v4422_v53 }
 0xc56   :  { %v4195_v27 = vsel %vm570_vm3, %v8604_v40, 0.0 }
 0xc57   :  { %4190 = vadd.xlane.f32.xlu0 %v4189_v10  ;;  %7007 = vpow2.f32 %v4187_v52 }
 0xc58   :  { %7009 = vpow2.f32 %v4425_v0 }
 0xc5a   :  { %v8602_v63 = vpop.xlane.xlu1 %4416 }
 0xc5b   :  { %4193 = vadd.xlane.f32.xlu2 %v4192_v61  ;;  %v3455_v11 = vpop.xlane.xlu0 %3454 }
 0xc5c   :  { %7011 = vrcp.f32 %v3455_v11  ;;  %v3476_v31 = vand.u32 2147483648, %v3455_v11  ;;  %v3474_v46 = vand.u32 2147483647, %v3455_v11  ;;  %vm3470_vm4 = vweird.f32 %v3455_v11 }
 0xc5d   :  { %v8610_v59 = vpop.eup %7007  ;;  %7013 = vpow2.f32 %v4427_v60 }
 0xc5e   :  { %v8612_v51 = vpop.eup %7009  ;;  %v4198_v48 = vsel %vm570_vm3, %v8610_v59, 0.0  ;;  %v3477_v39 = vor.u32 1.1754944e-38, %v3476_v31  ;;  %vm3475_vm6 = vcmp.eq.f32.partialorder %v3474_v46, 8.507059e+37 }
 0xc5f   :  { %4196 = vadd.xlane.f32.xlu0 %v4195_v27  ;;  %v4433_v30 = vsel %vm570_vm3, %v8612_v51, 0.0 }
 0xc62   :  { %v8614_v43 = vpop.xlane.xlu1 %4419  ;;  %v7012_v14 = vpop.eup %7011 }
 0xc63   :  { %4199 = vadd.xlane.f32.xlu1 %v4198_v48  ;;  %4434 = vadd.xlane.f32.xlu2 %v4433_v30  ;;  %v3466_v9 = vmul.f32 %v7012_v14, %v3455_v11  ;;  %v8620_v12 = vpop.eup %7013  ;;  %vm3471_vm2 = vweird.f32 %v7012_v14 }
 0xc64   :  { %v4436_v16 = vsel %vm570_vm3, %v8620_v12, 0.0  ;;  %vm3472_vm5 = vmor %vm3470_vm4, %vm3471_vm2 }
 0xc65   :  { %v3467_v44 = vsub.f32 1.0, %v3466_v9 }
 0xc67   :  { %v3468_v29 = vmul.f32 %v7012_v14, %v3467_v44 }
 0xc69   :  { %v3469_v26 = vadd.f32 %v7012_v14, %v3468_v29 }
 0xc6a   :  { %v3458_v42 = vpop.xlane.xlu1 %3457 }
 0xc6b   :  { %7015 = vrcp.f32 %v3458_v42  ;;  %4437 = vadd.xlane.f32.xlu2 %v4436_v16  ;;  %v3473_v17 = vsel %vm3472_vm5, %v7012_v14, %v3469_v26  ;;  %v3491_v6 = vand.u32 2147483648, %v3458_v42  ;;  %vm3485_vm8 = vweird.f32 %v3458_v42 }
 0xc6c   :  { %v3478_v20 = vsel %vm3475_vm6, %v3477_v39, %v3473_v17 }
 0xc6d   :  { %v3703_v49 = vpop.xlane.xlu2 %3702  ;;  %v3479_v4 = vmul.f32 %v8508_v56, %v3478_v20  ;;  %v3489_v56 = vand.u32 2147483647, %v3458_v42  ;;  %v3492_v13 = vor.u32 1.1754944e-38, %v3491_v6 }
 0xc6e   :  { %7017 = vrcp.f32 %v3703_v49  ;;  %v3724_v61 = vand.u32 2147483648, %v3703_v49  ;;  %vm3718_vm0 = vweird.f32 %v3703_v49  ;;  %v3722_v27 = vand.u32 2147483647, %v3703_v49 }
 0xc6f   :  { %6125 = vmatmul.msk.f32.vlgmr.msrb.gmra.mxu2 %vm570_vm3, %v3479_v4  ;;  %vm3490_vm10 = vcmp.eq.f32.partialorder %v3489_v56, 8.507059e+37 }
 0xc70   :  { %4043 = vmatpush.msrb.mxu2 %v6764_v34  ;;  %v3725_v14 = vor.u32 1.1754944e-38, %v3724_v61  ;;  %vm3723_vm4 = vcmp.eq.f32.partialorder %v3722_v27, 8.507059e+37 }
 0xc71   :  { %v7016_v38 = vpop.eup %7015 }
 0xc72   :  { %v3481_v3 = vmul.f32 %v7016_v38, %v3458_v42  ;;  %4044 = vmatpush.msrb.mxu2 %v6765_v7  ;;  %vm3486_vm7 = vweird.f32 %v7016_v38 }
 0xc73   :  { %6777 = vrot.lane.b32.xlu0 %v8309_v32, %s7258_s16  ;;  %vm3487_vm9 = vmor %vm3485_vm8, %vm3486_vm7 }
 0xc74   :  { %v3482_v45 = vsub.f32 1.0, %v3481_v3  ;;  %v7018_v2 = vpop.eup %7017 }
 0xc75   :  { %v3714_v52 = vmul.f32 %v7018_v2, %v3703_v49  ;;  %vm3719_vm11 = vweird.f32 %v7018_v2  ;;  %v6773_v44 = vpop.permute.xlu2 %6772 }
 0xc76   :  { %v3483_v37 = vmul.f32 %v7016_v38, %v3482_v45  ;;  %vm3720_vm2 = vmor %vm3718_vm0, %vm3719_vm11  ;;  %v6774_v29 = vunpack.i.l.bf16 %v6773_v44  ;;  %v6775_v46 = vunpack.i.h.bf16 %v6773_v44 }
 0xc77   :  { %v3715_v10 = vsub.f32 1.0, %v3714_v52 }
 0xc78   :  { %v3484_v0 = vadd.f32 %v7016_v38, %v3483_v37 }
 0xc79   :  { %v3716_v41 = vmul.f32 %v7018_v2, %v3715_v10 }
 0xc7a   :  { %v3488_v53 = vsel %vm3487_vm9, %v7016_v38, %v3484_v0 }
 0xc7b   :  { %v3493_v11 = vsel %vm3490_vm10, %v3492_v13, %v3488_v53  ;;  %v3717_v60 = vadd.f32 %v7018_v2, %v3716_v41 }
 0xc7c   :  { %6782 = vrot.lane.b32.xlu1 %v8270_v1, %s7269_s1  ;;  %v3494_v48 = vmul.f32 %v8518_v21, %v3493_v11  ;;  %v4423_v21 = vsub.f32 %v8503_v35, %v8602_v63 }
 0xc7d   :  { %v3721_v30 = vsel %vm3720_vm2, %v7018_v2, %v3717_v60 }
 0xc7e   :  { %6126 = vmatmul.msk.f32.gmra.mxu2 %vm570_vm3, %v3494_v48  ;;  %v3726_v9 = vsel %vm3723_vm4, %v3725_v14, %v3721_v30  ;;  %v4429_v42 = vmul.f32 1.442695, %v4423_v21 }
 0xc7f   :  { %v3727_v31 = vmul.f32 %v8522_v50, %v3726_v9  ;;  %v4424_v50 = vsub.f32 %v8513_v57, %v8614_v43 }
 0xc81   :  { %v4431_v4 = vmul.f32 1.442695, %v4424_v50 }
 0xc83   :  { %6787 = vrot.lane.b32.xlu2 %v8309_v32, %s7269_s1 }
 0xc86   :  { %6137 = vmatmul.msk.f32.vlgmr.msra.gmra.mxu2 %vm570_vm3, %v3727_v31 }
 0xc87   :  { %4287 = vmatpush.msra.mxu2 %v6774_v29 }
 0xc89   :  { %4288 = vmatpush.msra.mxu2 %v6775_v46  ;;  %v3461_v1 = vpop.xlane.xlu1 %3460 }
 0xc8a   :  { %7019 = vrcp.f32 %v3461_v1  ;;  %v3506_v17 = vand.u32 2147483648, %v3461_v1  ;;  %v3504_v49 = vand.u32 2147483647, %v3461_v1  ;;  %vm3500_vm6 = vweird.f32 %v3461_v1 }
 0xc8b   :  { %7021 = vpow2.f32 %v4429_v42 }
 0xc8c   :  { %v3507_v38 = vor.u32 1.1754944e-38, %v3506_v17  ;;  %vm3505_vm8 = vcmp.eq.f32.partialorder %v3504_v49, 8.507059e+37 }
 0xc90   :  { %v7020_v26 = vpop.eup %7019 }
 0xc91   :  { %v3496_v16 = vmul.f32 %v7020_v26, %v3461_v1  ;;  %vm3501_vm5 = vweird.f32 %v7020_v26  ;;  %v8642_v35 = vpop.eup %7021 }
 0xc92   :  { %vm3502_vm7 = vmor %vm3500_vm6, %vm3501_vm5  ;;  %v4439_v2 = vsel %vm570_vm3, %v8642_v35, 0.0 }
 0xc93   :  { %v3497_v39 = vsub.f32 1.0, %v3496_v16  ;;  %v3464_v32 = vpop.xlane.xlu1 %3463 }
 0xc94   :  { %7023 = vrcp.f32 %v3464_v32  ;;  %v3521_v56 = vand.u32 2147483648, %v3464_v32  ;;  %v3519_v52 = vand.u32 2147483647, %v3464_v32  ;;  %vm3515_vm10 = vweird.f32 %v3464_v32 }
 0xc95   :  { %v3498_v20 = vmul.f32 %v7020_v26, %v3497_v39  ;;  %7025 = vpow2.f32 %v4431_v4 }
 0xc96   :  { %vm3520_vm0 = vcmp.eq.f32.partialorder %v3519_v52, 8.507059e+37 }
 0xc97   :  { %v3499_v34 = vadd.f32 %v7020_v26, %v3498_v20 }
 0xc99   :  { %v3503_v63 = vsel %vm3502_vm7, %v7020_v26, %v3499_v34 }
 0xc9a   :  { %v7024_v7 = vpop.eup %7023  ;;  %v3508_v3 = vsel %vm3505_vm8, %v3507_v38, %v3503_v63 }
 0xc9b   :  { %v3509_v57 = vmul.f32 %v8529_v22, %v3508_v3  ;;  %v3511_v43 = vmul.f32 %v7024_v7, %v3464_v32  ;;  %v3709_v45 = vpop.xlane.xlu0 %3708  ;;  %vm3516_vm9 = vweird.f32 %v7024_v7  ;;  %v8648_v0 = vpop.eup %7025  ;;  %v3522_v22 = vor.u32 1.1754944e-38, %v3521_v56 }
 0xc9c   :  { %7027 = vrcp.f32 %v3709_v45  ;;  %vm3517_vm11 = vmor %vm3515_vm10, %vm3516_vm9  ;;  %v4442_v61 = vsel %vm570_vm3, %v8648_v0, 0.0  ;;  %v3754_v27 = vand.u32 2147483648, %v3709_v45  ;;  %v3752_v14 = vand.u32 2147483647, %v3709_v45 }
 0xc9d   :  { %v3512_v6 = vsub.f32 1.0, %v3511_v43  ;;  %6127 = vmatmul.msk.f32.vlgmr.msrb.gmra.mxu3 %vm570_vm3, %v3509_v57  ;;  %4440 = vadd.xlane.f32.xlu0 %v4439_v2  ;;  %vm3748_vm4 = vweird.f32 %v3709_v45 }
 0xc9e   :  { %v3755_v44 = vor.u32 1.1754944e-38, %v3754_v27  ;;  %vm3753_vm6 = vcmp.eq.f32.partialorder %v3752_v14, 8.507059e+37 }
 0xc9f   :  { %v3513_v37 = vmul.f32 %v7024_v7, %v3512_v6 }
 0xca1   :  { %v3514_v10 = vadd.f32 %v7024_v7, %v3513_v37 }
 0xca2   :  { %v7028_v13 = vpop.eup %7027 }
 0xca3   :  { %v3744_v41 = vmul.f32 %v7028_v13, %v3709_v45  ;;  %v3518_v53 = vsel %vm3517_vm11, %v7024_v7, %v3514_v10  ;;  %vm3749_vm2 = vweird.f32 %v7028_v13  ;;  %v8655_v42 = vpop.xlane.xlu0 %3949 }
 0xca4   :  { %v3523_v60 = vsel %vm3520_vm0, %v3522_v22, %v3518_v53  ;;  %vm3750_vm5 = vmor %vm3748_vm4, %vm3749_vm2  ;;  %v3983_v27 = vand.u32 2147483648, %v8655_v42  ;;  %v3981_v14 = vand.u32 2147483647, %v8655_v42 }
 0xca5   :  { %v3745_v11 = vsub.f32 1.0, %v3744_v41  ;;  %4443 = vadd.xlane.f32.xlu0 %v4442_v61  ;;  %v3524_v48 = vmul.f32 %v8537_v25, %v3523_v60 }
 0xca7   :  { %v3746_v30 = vmul.f32 %v7028_v13, %v3745_v11  ;;  %6128 = vmatmul.msk.f32.gmra.mxu3 %vm570_vm3, %v3524_v48 }
 0xca9   :  { %v3747_v9 = vadd.f32 %v7028_v13, %v3746_v30 }
 0xcab   :  { %v3751_v31 = vsel %vm3750_vm5, %v7028_v13, %v3747_v9  ;;  %v6768_v29 = vpop.permute.xlu1 %6767 }
 0xcac   :  { %v3756_v46 = vsel %vm3753_vm6, %v3755_v44, %v3751_v31  ;;  %v6769_v1 = vunpack.i.l.bf16 %v6768_v29  ;;  %v6770_v25 = vunpack.i.h.bf16 %v6768_v29  ;;  %vm3977_vm6 = vweird.f32 %v8655_v42 }
 0xcad   :  { %v3757_v21 = vmul.f32 %v8545_v62, %v3756_v46 }
 0xcae   :  { %4078 = vmatpush.msrb.mxu3 %v6769_v1  ;;  %v3706_v26 = vpop.xlane.xlu2 %3705 }
 0xcaf   :  { %6139 = vmatmul.msk.f32.vlgmr.msra.gmra.mxu3 %vm570_vm3, %v3757_v21  ;;  %7029 = vrcp.f32 %v3706_v26  ;;  %v3739_v49 = vand.u32 2147483648, %v3706_v26  ;;  %v3737_v4 = vand.u32 2147483647, %v3706_v26  ;;  %vm3733_vm8 = vweird.f32 %v3706_v26 }
 0xcb0   :  { %7031 = vrcp.f32 %v8655_v42  ;;  %4079 = vmatpush.msrb.mxu3 %v6770_v25 }
 0xcb1   :  { %v3740_v7 = vor.u32 1.1754944e-38, %v3739_v49  ;;  %vm3738_vm10 = vcmp.eq.f32.partialorder %v3737_v4, 8.507059e+37 }
 0xcb5   :  { %v7030_v16 = vpop.eup %7029 }
 0xcb6   :  { %v8659_v50 = vpop.eup %7031  ;;  %v3729_v39 = vmul.f32 %v7030_v16, %v3706_v26  ;;  %v3947_v32 = vpop.xlane.xlu2 %3946  ;;  %vm3734_vm7 = vweird.f32 %v7030_v16 }
 0xcb7   :  { %7033 = vrcp.f32 %v3947_v32  ;;  %v3973_v62 = vmul.f32 %v8659_v50, %v8655_v42  ;;  %vm3735_vm9 = vmor %vm3733_vm8, %vm3734_vm7  ;;  %v3968_v37 = vand.u32 2147483648, %v3947_v32  ;;  %v3966_v13 = vand.u32 2147483647, %v3947_v32 }
 0xcb8   :  { %v3730_v17 = vsub.f32 1.0, %v3729_v39  ;;  %vm3962_vm0 = vweird.f32 %v3947_v32  ;;  %vm3978_vm2 = vweird.f32 %v8659_v50  ;;  %v3984_v42 = vor.u32 1.1754944e-38, %v3983_v27 }
 0xcb9   :  { %v3974_v63 = vsub.f32 1.0, %v3973_v62  ;;  %v3969_v53 = vor.u32 1.1754944e-38, %v3968_v37  ;;  %vm3967_vm5 = vcmp.eq.f32.partialorder %v3966_v13, 8.507059e+37  ;;  %vm8682_vm7 = vmor %vm3977_vm6, %vm3978_vm2 }
 0xcba   :  { %v3731_v20 = vmul.f32 %v7030_v16, %v3730_v17 }
 0xcbb   :  { %v3975_v6 = vmul.f32 %v8659_v50, %v3974_v63 }
 0xcbc   :  { %v3732_v34 = vadd.f32 %v7030_v16, %v3731_v20 }
 0xcbd   :  { %v7034_v38 = vpop.eup %7033  ;;  %v3976_v61 = vadd.f32 %v8659_v50, %v3975_v6 }
 0xcbe   :  { %v3958_v3 = vmul.f32 %v7034_v38, %v3947_v32  ;;  %v3712_v57 = vpop.xlane.xlu2 %3711  ;;  %v3736_v43 = vsel %vm3735_vm9, %v7030_v16, %v3732_v34  ;;  %vm3963_vm11 = vweird.f32 %v7034_v38  ;;  %vm3982_vm9 = vcmp.eq.f32.partialorder %v3981_v14, 8.507059e+37 }
 0xcbf   :  { %7035 = vrcp.f32 %v3712_v57  ;;  %v3741_v2 = vsel %vm3738_vm10, %v3740_v7, %v3736_v43  ;;  %vm3964_vm4 = vmor %vm3962_vm0, %vm3963_vm11  ;;  %v3980_v21 = vsel %vm8682_vm7, %v8659_v50, %v3976_v61  ;;  %vm3763_vm10 = vweird.f32 %v3712_v57 }
 0xcc0   :  { %v3959_v45 = vsub.f32 1.0, %v3958_v3  ;;  %v3742_v52 = vmul.f32 %v8559_v8, %v3741_v2  ;;  %v3767_v16 = vand.u32 2147483647, %v3712_v57  ;;  %v3985_v17 = vsel %vm3982_vm9, %v3984_v42, %v3980_v21 }
 0xcc2   :  { %v8664_v56 = vpop.xlane.xlu0 %3952  ;;  %v3960_v10 = vmul.f32 %v7034_v38, %v3959_v45  ;;  %6138 = vmatmul.msk.f32.gmra.mxu2 %vm570_vm3, %v3742_v52  ;;  %vm3768_vm0 = vcmp.eq.f32.partialorder %v3767_v16, 8.507059e+37 }
 0xcc3   :  { %7037 = vrcp.f32 %v8664_v56  ;;  %v3996_v63 = vand.u32 2147483647, %v8664_v56  ;;  %v3998_v7 = vand.u32 2147483648, %v8664_v56 }
 0xcc4   :  { %v3961_v22 = vadd.f32 %v7034_v38, %v3960_v10 }
 0xcc5   :  { %v7036_v41 = vpop.eup %7035  ;;  %vm8721_vm6 = vcmp.eq.f32.partialorder %v3996_v63, 8.507059e+37 }
 0xcc6   :  { %v3965_v11 = vsel %vm3964_vm4, %v7034_v38, %v3961_v22  ;;  %v3759_v60 = vmul.f32 %v7036_v41, %v3712_v57  ;;  %v8671_v8 = vpop.xlane.xlu2 %3955  ;;  %vm3764_vm8 = vweird.f32 %v7036_v41  ;;  %v3986_v38 = vmul.f32 %v8551_v58, %v3985_v17 }
 0xcc7   :  { %v3970_v48 = vsel %vm3967_vm5, %v3969_v53, %v3965_v11  ;;  %7039 = vrcp.f32 %v8671_v8  ;;  %vm8694_vm11 = vmor %vm3763_vm10, %vm3764_vm8  ;;  %vm3992_vm4 = vweird.f32 %v8664_v56  ;;  %vm4007_vm8 = vweird.f32 %v8671_v8 }
 0xcc8   :  { %v3971_v9 = vmul.f32 %v8570_v24, %v3970_v48  ;;  %v3760_v44 = vsub.f32 1.0, %v3759_v60  ;;  %v3769_v24 = vand.u32 2147483648, %v3712_v57  ;;  %v4011_v27 = vand.u32 2147483647, %v8671_v8 }
 0xcc9   :  { %v8675_v30 = vpop.eup %7037  ;;  %v4013_v42 = vand.u32 2147483648, %v8671_v8 }
 0xcca   :  { %v3988_v29 = vmul.f32 %v8675_v30, %v8664_v56  ;;  %v4191_v46 = vpop.xlane.xlu0 %4190  ;;  %v3761_v1 = vmul.f32 %v7036_v41, %v3760_v44  ;;  %6149 = vmatmul.msk.f32.vlgmr.msrb.gmra.mxu2 %vm570_vm3, %v3971_v9  ;;  %v3770_v4 = vor.u32 1.1754944e-38, %v3769_v24  ;;  %vm3993_vm2 = vweird.f32 %v8675_v30 }
 0xccb   :  { %7041 = vrcp.f32 %v4191_v46  ;;  %v4210_v58 = vand.u32 2147483647, %v4191_v46  ;;  %v4212_v37 = vand.u32 2147483648, %v4191_v46  ;;  %vm8717_vm5 = vmor %vm3992_vm4, %vm3993_vm2  ;;  %vm4206_vm9 = vweird.f32 %v4191_v46 }
 0xccc   :  { %v3989_v25 = vsub.f32 1.0, %v3988_v29  ;;  %v3762_v26 = vadd.f32 %v7036_v41, %v3761_v1 }
 0xccd   :  { %v8692_v39 = vpop.eup %7039 }
 0xcce   :  { %v3990_v62 = vmul.f32 %v8675_v30, %v3989_v25  ;;  %v4003_v50 = vmul.f32 %v8692_v39, %v8671_v8  ;;  %v8701_v20 = vpop.xlane.xlu2 %4193  ;;  %v3766_v49 = vsel %vm8694_vm11, %v7036_v41, %v3762_v26  ;;  %v3999_v41 = vor.u32 1.1754944e-38, %v3998_v7 }
 0xccf   :  { %7043 = vrcp.f32 %v8701_v20  ;;  %v3771_v43 = vsel %vm3768_vm0, %v3770_v4, %v3766_v49  ;;  %vm4211_vm11 = vcmp.eq.f32.partialorder %v4210_v58, 8.507059e+37  ;;  %vm4008_vm0 = vweird.f32 %v8692_v39 }
 0xcd0   :  { %v3991_v45 = vadd.f32 %v8675_v30, %v3990_v62  ;;  %v4004_v2 = vsub.f32 1.0, %v4003_v50  ;;  %v3772_v52 = vmul.f32 %v8577_v47, %v3771_v43  ;;  %v4227_v25 = vand.u32 2147483648, %v8701_v20  ;;  %vm8755_vm4 = vmor %vm4007_vm8, %vm4008_vm0 }
 0xcd1   :  { %v7042_v34 = vpop.eup %7041  ;;  %v4225_v50 = vand.u32 2147483647, %v8701_v20 }
 0xcd2   :  { %v4202_v3 = vmul.f32 %v7042_v34, %v4191_v46  ;;  %v8709_v57 = vpop.xlane.xlu0 %4196  ;;  %6150 = vmatmul.msk.f32.gmra.mxu2 %vm570_vm3, %v3986_v38  ;;  %vm4207_vm7 = vweird.f32 %v7042_v34  ;;  %v3995_v56 = vsel %vm8717_vm5, %v8675_v30, %v3991_v45  ;;  %v4005_v47 = vmul.f32 %v8692_v39, %v4004_v2  ;;  %6140 = vmatmul.msk.f32.gmra.mxu3 %vm570_vm3, %v3772_v52 }
 0xcd3   :  { %7045 = vrcp.f32 %v8709_v57  ;;  %vm4208_vm10 = vmor %vm4206_vm9, %vm4207_vm7  ;;  %v4213_v30 = vor.u32 1.1754944e-38, %v4212_v37  ;;  %v4000_v44 = vsel %vm8721_vm6, %v3999_v41, %v3995_v56  ;;  %vm4221_vm5 = vweird.f32 %v8701_v20 }
 0xcd4   :  { %v4203_v6 = vsub.f32 1.0, %v4202_v3  ;;  %v4006_v1 = vadd.f32 %v8692_v39, %v4005_v47  ;;  %v4001_v32 = vmul.f32 %v8583_v19, %v4000_v44  ;;  %v4014_v38 = vor.u32 1.1754944e-38, %v4013_v42 }
 0xcd5   :  { %v7044_v10 = vpop.eup %7043  ;;  %v4228_v63 = vor.u32 1.1754944e-38, %v4227_v25  ;;  %vm4012_vm7 = vcmp.eq.f32.partialorder %v4011_v27, 8.507059e+37  ;;  %vm4226_vm8 = vcmp.eq.f32.partialorder %v4225_v50, 8.507059e+37  ;;  %v4240_v52 = vand.u32 2147483647, %v8709_v57 }
 0xcd6   :  { %v4204_v53 = vmul.f32 %v7042_v34, %v4203_v6  ;;  %v8725_v61 = vpop.xlane.xlu1 %4199  ;;  %v4217_v11 = vmul.f32 %v7044_v10, %v8701_v20  ;;  %v8734_v60 = vpop.xlane.xlu2 %4434  ;;  %vm4222_vm2 = vweird.f32 %v7044_v10  ;;  %v4010_v20 = vsel %vm8755_vm4, %v8692_v39, %v4006_v1 }
 0xcd7   :  { %7047 = vrcp.f32 %v8725_v61  ;;  %vm8761_vm6 = vmor %vm4221_vm5, %vm4222_vm2  ;;  %v4015_v43 = vsel %vm4012_vm7, %v4014_v38, %v4010_v20  ;;  %v4242_v39 = vand.u32 2147483648, %v8709_v57  ;;  %vm4241_vm2 = vcmp.eq.f32.partialorder %v4240_v52, 8.507059e+37 }
 0xcd8   :  { %v4205_v48 = vadd.f32 %v7042_v34, %v4204_v53  ;;  %v4218_v9 = vsub.f32 1.0, %v4217_v11  ;;  %7049 = vrcp.f32 %v8734_v60  ;;  %vm4450_vm4 = vweird.f32 %v8734_v60 }
 0xcd9   :  { %v8738_v14 = vpop.eup %7045  ;;  %v4454_v44 = vand.u32 2147483647, %v8734_v60  ;;  %vm4251_vm7 = vweird.f32 %v8725_v61 }
 0xcda   :  { %v4209_v31 = vsel %vm4208_vm10, %v7042_v34, %v4205_v48  ;;  %v4232_v29 = vmul.f32 %v8738_v14, %v8709_v57  ;;  %v4219_v21 = vmul.f32 %v7044_v10, %v4218_v9  ;;  %6151 = vmatmul.msk.f32.vlgmr.msrb.gmra.mxu3 %vm570_vm3, %v4001_v32  ;;  %vm4237_vm9 = vweird.f32 %v8738_v14  ;;  %v8803_v48 = vpop.f32.mrf.mxu2 }
 0xcdb   :  { %v4214_v46 = vsel %vm4211_vm11, %v4213_v30, %v4209_v31  ;;  %vm4236_vm10 = vweird.f32 %v8709_v57  ;;  %v4456_v30 = vand.u32 2147483648, %v8734_v60 }
 0xcdc   :  { %v4215_v24 = vmul.f32 %v8592_v18, %v4214_v46  ;;  %v4233_v26 = vsub.f32 1.0, %v4232_v29  ;;  %v4220_v62 = vadd.f32 %v7044_v10, %v4219_v21  ;;  %vm8790_vm11 = vmor %vm4236_vm10, %vm4237_vm9  ;;  %v4257_v46 = vand.u32 2147483648, %v8725_v61 }
 0xcdd   :  { %v8750_v16 = vpop.eup %7047  ;;  %v4457_v25 = vor.u32 1.1754944e-38, %v4456_v30  ;;  %vm4455_vm9 = vcmp.eq.f32.partialorder %v4454_v44, 8.507059e+37 }
 0xcde   :  { %6161 = vmatmul.msk.f32.vlgmr.msra.gmra.mxu2 %vm570_vm3, %v4215_v24  ;;  %v8766_v49 = vpop.eup %7049  ;;  %v4234_v19 = vmul.f32 %v8738_v14, %v4233_v26  ;;  %v4247_v8 = vmul.f32 %v8750_v16, %v8725_v61  ;;  %v8772_v4 = vpop.xlane.xlu2 %4437  ;;  %v4224_v34 = vsel %vm8761_vm6, %v7044_v10, %v4220_v62  ;;  %v4016_v10 = vmul.f32 %v8589_v55, %v4015_v43 }
 0xcdf   :  { %v4446_v7 = vmul.f32 %v8766_v49, %v8734_v60  ;;  %7051 = vrcp.f32 %v8772_v4  ;;  %v4229_v45 = vsel %vm4226_vm8, %v4228_v63, %v4224_v34  ;;  %vm4451_vm0 = vweird.f32 %v8766_v49 }
 0xce0   :  { %v4235_v2 = vadd.f32 %v8738_v14, %v4234_v19  ;;  %v4248_v6 = vsub.f32 1.0, %v4247_v8  ;;  %v4230_v37 = vmul.f32 %v8599_v28, %v4229_v45  ;;  %v4243_v28 = vor.u32 1.1754944e-38, %v4242_v39  ;;  %vm4452_vm6 = vmor %vm4450_vm4, %vm4451_vm0 }
 0xce1   :  { %v4447_v3 = vsub.f32 1.0, %v4446_v7  ;;  %vm4252_vm5 = vweird.f32 %v8750_v16  ;;  %v4255_v60 = vand.u32 2147483647, %v8725_v61  ;;  %v4258_v50 = vor.u32 1.1754944e-38, %v4257_v46 }
 0xce2   :  { %v4239_v56 = vsel %vm8790_vm11, %v8738_v14, %v4235_v2  ;;  %v4249_v47 = vmul.f32 %v8750_v16, %v4248_v6  ;;  %6152 = vmatmul.msk.f32.gmra.mxu3 %vm570_vm3, %v4016_v10  ;;  %vm8817_vm8 = vmor %vm4251_vm7, %vm4252_vm5  ;;  %v8825_v61 = vpop.f32.mrf.mxu2  ;;  %vm4465_vm0 = vweird.f32 %v8772_v4  ;;  %v4469_v20 = vand.u32 2147483647, %v8772_v4  ;;  %v8837_v2 = vpop.f32.mrf.mxu3 }
 0xce3   :  { %v4448_v58 = vmul.f32 %v8766_v49, %v4447_v3  ;;  %v4244_v9 = vsel %vm4241_vm2, %v4243_v28, %v4239_v56  ;;  %vm4256_vm11 = vcmp.eq.f32.partialorder %v4255_v60, 8.507059e+37 }
 0xce4   :  { %v4250_v29 = vadd.f32 %v8750_v16, %v4249_v47  ;;  %v4245_v24 = vmul.f32 %v8604_v40, %v4244_v9  ;;  %vm4470_vm4 = vcmp.eq.f32.partialorder %v4469_v20, 8.507059e+37 }
 0xce5   :  { %v6778_v13 = vpop.permute.xlu0 %6777  ;;  %v7052_v53 = vpop.eup %7051  ;;  %v4449_v55 = vadd.f32 %v8766_v49, %v4448_v58 }
 0xce6   :  { %v6779_v41 = vunpack.i.l.bf16 %v6778_v13  ;;  %6162 = vmatmul.msk.f32.gmra.mxu2 %vm570_vm3, %v4230_v37  ;;  %v6788_v57 = vpop.permute.xlu2 %6787  ;;  %v4461_v11 = vmul.f32 %v7052_v53, %v8772_v4  ;;  %v6780_v27 = vunpack.i.h.bf16 %v6778_v13  ;;  %v4254_v40 = vsel %vm8817_vm8, %v8750_v16, %v4250_v29 }
 0xce7   :  { %v6789_v14 = vunpack.i.l.bf16 %v6788_v57  ;;  %v6790_v1 = vunpack.i.h.bf16 %v6788_v57  ;;  %v4453_v21 = vsel %vm4452_vm6, %v8766_v49, %v4449_v55  ;;  %vm4466_vm10 = vweird.f32 %v7052_v53 }
 0xce8   :  { %4322 = vmatpush.msra.mxu3 %v6779_v41  ;;  %v4462_v31 = vsub.f32 1.0, %v4461_v11  ;;  %v4458_v17 = vsel %vm4455_vm9, %v4457_v25, %v4453_v21  ;;  %v4471_v49 = vand.u32 2147483648, %v8772_v4  ;;  %v4259_v34 = vsel %vm4256_vm11, %v4258_v50, %v4254_v40  ;;  %vm4467_vm2 = vmor %vm4465_vm0, %vm4466_vm10 }
 0xce9   :  { %v4459_v8 = vmul.f32 %v8612_v51, %v4458_v17  ;;  %v4260_v63 = vmul.f32 %v8610_v59, %v4259_v34 }
 0xcea   :  { %4323 = vmatpush.msra.mxu3 %v6780_v27  ;;  %v4463_v42 = vmul.f32 %v7052_v53, %v4462_v31  ;;  %v4472_v38 = vor.u32 1.1754944e-38, %v4471_v49  ;;  %v8839_v58 = vpop.f32.mrf.mxu3 }
 0xceb   :  { %6163 = vmatmul.msk.f32.vlgmr.msra.gmra.mxu3 %vm570_vm3, %v4245_v24 }
 0xcec   :  { %4566 = vmatpush.msrb.mxu3 %v6789_v14  ;;  %v4464_v18 = vadd.f32 %v7052_v53, %v4463_v42 }
 0xcee   :  { %4567 = vmatpush.msrb.mxu3 %v6790_v1  ;;  %v6783_v32 = vpop.permute.xlu1 %6782  ;;  %v4468_v16 = vsel %vm4467_vm2, %v7052_v53, %v4464_v18 }
 0xcef   :  { %v6784_v62 = vunpack.i.l.bf16 %v6783_v32  ;;  %v6785_v19 = vunpack.i.h.bf16 %v6783_v32  ;;  %v4473_v7 = vsel %vm4470_vm4, %v4472_v38, %v4468_v16 }
 0xcf0   :  { %v4474_v51 = vmul.f32 %v8620_v12, %v4473_v7  ;;  %v6558_v7 = vld [vmem:[#allocation7 + $0x70] sm:$0xff] }
 0xcf1   :  { %4531 = vmatpush.msrb.mxu2 %v6784_v62 }
 0xcf2   :  { %v3556_v3 = vpop.f32.mrf.mxu2 }
 0xcf3   :  { %4532 = vmatpush.msrb.mxu2 %v6785_v19  ;;  %6164 = vmatmul.msk.f32.gmra.mxu3 %vm570_vm3, %v4260_v63  ;;  %v6559_v63 = vld [vmem:[#allocation7 + $0x78] sm:$0xff] }
 0xcf4   :  { %6173 = vmatmul.msk.f32.vlgmr.msrb.gmra.mxu2 %vm570_vm3, %v4459_v8  ;;  %4747 = vmatpush.bf16.msrb.mxu0 %v6559_v63 }
 0xcf8   :  { %4748 = vmatpush.bf16.msrb.mxu0 %v6558_v7 }
 0xcfc   :  { %6174 = vmatmul.msk.f32.gmra.mxu2 %vm570_vm3, %v4474_v51 }
 0xd01   :  { %v3559_v43 = vpop.f32.mrf.mxu2 }
 0xd02   :  { %v6791_v4 = vpack.i.bf16 %v3559_v43, %v3556_v3  ;;  %v6557_v3 = vld [vmem:[#allocation7 + $0x68] sm:$0xff]  ;;  %v6556_v43 = vld [vmem:[#allocation7 + $0x60] sm:$0xff] }
 0xd03   :  { %4749 = vmatpush.bf16.msrb.mxu0 %v6557_v3 }
 0xd04   :  { %6792 = vrot.lane.b32.xlu1 %v6791_v4, %s7271_s21  ;;  %v6555_v4 = vld [vmem:[#allocation7 + $0x58] sm:$0xff] }
 0xd07   :  { %4750 = vmatpush.bf16.msrb.mxu0 %v6556_v43 }
 0xd0b   :  { %4751 = vmatpush.bf16.msrb.mxu0 %v6555_v4  ;;  %v8885_v4 = vld [vmem:[%s8992_s8 + $0x8] sm:$0x3f] }
 0xd10   :  { %v4441_v45 = vpop.xlane.xlu0 %4440 }
 0xd11   :  { %7053 = vrcp.f32 %v4441_v45  ;;  %v4486_v52 = vand.u32 2147483648, %v4441_v45  ;;  %v4484_v12 = vand.u32 2147483647, %v4441_v45  ;;  %vm4480_vm6 = vweird.f32 %v4441_v45 }
 0xd13   :  { %v4487_v41 = vor.u32 1.1754944e-38, %v4486_v52  ;;  %vm4485_vm8 = vcmp.eq.f32.partialorder %v4484_v12, 8.507059e+37 }
 0xd17   :  { %v7054_v39 = vpop.eup %7053 }
 0xd18   :  { %v4476_v6 = vmul.f32 %v7054_v39, %v4441_v45  ;;  %v4444_v59 = vpop.xlane.xlu0 %4443  ;;  %vm4481_vm5 = vweird.f32 %v7054_v39 }
 0xd19   :  { %7055 = vrcp.f32 %v4444_v59  ;;  %vm4482_vm7 = vmor %vm4480_vm6, %vm4481_vm5  ;;  %v4501_v11 = vand.u32 2147483648, %v4444_v59  ;;  %v4499_v30 = vand.u32 2147483647, %v4444_v59  ;;  %vm4495_vm10 = vweird.f32 %v4444_v59 }
 0xd1a   :  { %v4477_v37 = vsub.f32 1.0, %v4476_v6  ;;  %v6554_v6 = vld [vmem:[#allocation7 + $0x50] sm:$0xff] }
 0xd1b   :  { %v4502_v9 = vor.u32 1.1754944e-38, %v4501_v11  ;;  %vm4500_vm0 = vcmp.eq.f32.partialorder %v4499_v30, 8.507059e+37  ;;  %4752 = vmatpush.bf16.msrb.mxu0 %v6554_v6 }
 0xd1c   :  { %v4478_v10 = vmul.f32 %v7054_v39, %v4477_v37  ;;  %v6552_v37 = vld [vmem:[#allocation7 + $0x40] sm:$0xff] }
 0xd1e   :  { %v4479_v13 = vadd.f32 %v7054_v39, %v4478_v10 }
 0xd1f   :  { %v7056_v22 = vpop.eup %7055 }
 0xd20   :  { %v4483_v53 = vsel %vm4482_vm7, %v7054_v39, %v4479_v13  ;;  %v4491_v56 = vmul.f32 %v7056_v22, %v4444_v59  ;;  %v3593_v47 = vpop.f32.mrf.mxu3  ;;  %vm4496_vm9 = vweird.f32 %v7056_v22  ;;  %v6553_v59 = vld [vmem:[#allocation7 + $0x48] sm:$0xff] }
 0xd21   :  { %v4488_v28 = vsel %vm4485_vm8, %v4487_v41, %v4483_v53  ;;  %vm4497_vm11 = vmor %vm4495_vm10, %vm4496_vm9  ;;  %4753 = vmatpush.bf16.msrb.mxu0 %v6553_v59 }
 0xd22   :  { %v4489_v57 = vmul.f32 %v8642_v35, %v4488_v28  ;;  %v4492_v55 = vsub.f32 1.0, %v4491_v56  ;;  %v3802_v35 = vpop.f32.mrf.mxu2 }
 0xd24   :  { %v4493_v27 = vmul.f32 %v7056_v22, %v4492_v55  ;;  %6175 = vmatmul.msk.f32.vlgmr.msrb.gmra.mxu3 %vm570_vm3, %v4489_v57 }
 0xd25   :  { %4754 = vmatpush.bf16.msrb.mxu0 %v6552_v37 }
 0xd26   :  { %v4494_v14 = vadd.f32 %v7056_v22, %v4493_v27 }
 0xd28   :  { %v4498_v44 = vsel %vm4497_vm11, %v7056_v22, %v4494_v14 }
 0xd29   :  { %v4503_v31 = vsel %vm4500_vm0, %v4502_v9, %v4498_v44 }
 0xd2a   :  { %v4504_v29 = vmul.f32 %v8648_v0, %v4503_v31  ;;  %v3596_v1 = vpop.f32.mrf.mxu3 }
 0xd2b   :  { %v6801_v46 = vpack.i.bf16 %v3596_v1, %v3593_v47 }
 0xd2c   :  { %6176 = vmatmul.msk.f32.gmra.mxu3 %vm570_vm3, %v4504_v29 }
 0xd2d   :  { %6802 = vrot.lane.b32.xlu0 %v6801_v46, %s7271_s21 }
 0xd32   :  { %v3837_v60 = vpop.f32.mrf.mxu3 }
 0xd45   :  { %v3805_v21 = vpop.f32.mrf.mxu2 }
 0xd46   :  { %v6796_v42 = vpack.i.bf16 %v3805_v21, %v3802_v35 }
 0xd48   :  { %6797 = vrot.lane.b32.xlu1 %v6796_v42, %s7272_s22 }
 0xd4d   :  { %v4046_v24 = vpop.f32.mrf.mxu2 }
 0xd55   :  { %v4049_v25 = vpop.f32.mrf.mxu2  ;;  %v3840_v32 = vpop.f32.mrf.mxu3 }
 0xd56   :  { %v6806_v26 = vpack.i.bf16 %v4049_v25, %v4046_v24  ;;  %v6816_v18 = vpack.i.bf16 %v3840_v32, %v3837_v60 }
 0xd58   :  { %6807 = vrot.lane.b32.xlu2 %v6806_v26, %s7269_s1 }
 0xd5d   :  { %v4081_v0 = vpop.f32.mrf.mxu3 }
 0xd61   :  { %v4290_v17 = vpop.f32.mrf.mxu2 }
 0xd65   :  { %v4084_v40 = vpop.f32.mrf.mxu3 }
 0xd66   :  { %v6826_v38 = vpack.i.bf16 %v4084_v40, %v4081_v0 }
 0xd69   :  { %v4293_v62 = vpop.f32.mrf.mxu2 }
 0xd6a   :  { %v6811_v50 = vpack.i.bf16 %v4293_v62, %v4290_v17 }
 0xd6c   :  { %6812 = vrot.lane.b32.xlu1 %v6811_v50, %s7258_s16 }
 0xd6e   :  { %v4325_v49 = vpop.f32.mrf.mxu3 }
 0xd74   :  { %6817 = vrot.lane.b32.xlu1 %v6816_v18, %s7272_s22 }
 0xd76   :  { %v4328_v8 = vpop.f32.mrf.mxu3  ;;  %v6793_v52 = vpop.permute.xlu1 %6792 }
 0xd77   :  { %v4534_v19 = vpop.f32.mrf.mxu2  ;;  %v6831_v20 = vpack.i.bf16 %v4328_v8, %v4325_v49  ;;  %v6795_v13 = vunpack.i.h.bf16 %v6793_v52  ;;  %v6794_v22 = vunpack.i.l.bf16 %v6793_v52 }
 0xd79   :  { %v4656_v56 = vsel %vm570_vm3, %v8825_v61, %v6795_v13  ;;  %v4655_v28 = vsel %vm570_vm3, %v8803_v48, %v6794_v22 }
 0xd7c   :  { %6832 = vrot.lane.b32.xlu1 %v6831_v20, %s7258_s16 }
 0xd7f   :  { %v4537_v34 = vpop.f32.mrf.mxu2 }
 0xd80   :  { %v6821_v16 = vpack.i.bf16 %v4537_v34, %v4534_v19 }
 0xd82   :  { %6822 = vrot.lane.b32.xlu2 %v6821_v16, %s7268_s20 }
 0xd8a   :  { %6827 = vrot.lane.b32.xlu2 %v6826_v38, %s7269_s1 }
 0xd9f   :  { %v6803_v24 = vpop.permute.xlu0 %6802 }
 0xda0   :  { %v6805_v25 = vunpack.i.h.bf16 %v6803_v24  ;;  %v6804_v26 = vunpack.i.l.bf16 %v6803_v24  ;;  %v6304_v24 = vld [vmem:[#allocation8 + $0x174] sm:$0xf0] }
 0xda2   :  { %v4658_v62 = vsel %vm570_vm3, %v8839_v58, %v6805_v25  ;;  %v4657_v40 = vsel %vm570_vm3, %v8837_v2, %v6804_v26  ;;  %v6583_v25 = vld [vmem:[#allocation8 + $0x178] sm:$0xf0] }
 0xda7   :  { %v4569_v51 = vpop.f32.mrf.mxu3 }
 0xdaf   :  { %v4572_v45 = vpop.f32.mrf.mxu3 }
 0xdb0   :  { %v6836_v39 = vpack.i.bf16 %v4572_v45, %v4569_v51  ;;  %v4698_v45 = vperm.slane %v8885_v4, 4 }
 0xdb2   :  { %6837 = vrot.lane.b32.xlu2 %v6836_v39, %s7268_s20  ;;  %v6808_v10 = vpop.permute.xlu2 %6807 }
 0xdb3   :  { %v6810_v11 = vunpack.i.h.bf16 %v6808_v10  ;;  %v6809_v27 = vunpack.i.l.bf16 %v6808_v10 }
 0xdba   :  { %v6798_v12 = vpop.permute.xlu1 %6797 }
 0xdbb   :  { %v6800_v41 = vunpack.i.h.bf16 %v6798_v12  ;;  %v6799_v53 = vunpack.i.l.bf16 %v6798_v12 }
 0xdbd   :  { %v4660_v47 = vsel %vm2103_vm12, %v4656_v56, %v6800_v41  ;;  %v4659_v57 = vsel %vm2103_vm12, %v4655_v28, %v6799_v53 }
 0xdbe   :  { %v4663_v29 = vsel %vm2108_vm13, %v4659_v57, %v6809_v27  ;;  %v4664_v1 = vsel %vm2108_vm13, %v4660_v47, %v6810_v11 }
 0xddc   :  { %v6823_v55 = vpop.permute.xlu2 %6822 }
 0xddd   :  { %v6825_v44 = vunpack.i.h.bf16 %v6823_v55  ;;  %v6824_v31 = vunpack.i.l.bf16 %v6823_v55 }
 0xdde   :  { %v6813_v30 = vpop.permute.xlu1 %6812 }
 0xddf   :  { %v6815_v14 = vunpack.i.h.bf16 %v6813_v30  ;;  %v6814_v9 = vunpack.i.l.bf16 %v6813_v30 }
 0xde1   :  { %v4668_v61 = vsel %vm2113_vm14, %v4664_v1, %v6815_v14  ;;  %v4667_v48 = vsel %vm2113_vm14, %v4663_v29, %v6814_v9 }
 0xde2   :  { %v4671_v46 = vsel %vm2118_vm15, %v4667_v48, %v6824_v31  ;;  %v4672_v35 = vsel %vm2118_vm15, %v4668_v61, %v6825_v44 }
 0xde3   :  { %v6210_v21 = vpack.c.bf16 %v4672_v35, %v4671_v46  ;;  %v6302_v46 = vld [vmem:[#allocation8 + $0x168] sm:$0xf]  ;;  %v6582_v35 = vld [vmem:[#allocation8 + $0x170] sm:$0xf0] }
 0xde4   :  { %v6828_v60 = vpop.permute.xlu2 %6827 }
 0xde5   :  { %6211 = vmatmul.msk.bf16.vlgmr.msrb.gmra.mxu0 %vm8134_vm1, %v6210_v21  ;;  %v6830_v8 = vunpack.i.h.bf16 %v6828_v60  ;;  %v6829_v20 = vunpack.i.l.bf16 %v6828_v60  ;;  %v6581_v21 = vld [vmem:[#allocation8 + $0x16c] sm:$0xf]  ;;  %v6310_v60 = vld [vmem:[#allocation8 + $0x170] sm:$0xf] }
 0xde6   :  { %v6818_v42 = vpop.permute.xlu1 %6817  ;;  %v6307_v26 = vor.u32 %v6581_v21, %v6304_v24  ;;  %v6230_v21 = vld [vmem:[#allocation8 + $0xd8] sm:$0xf] }
 0xde7   :  { %v6820_v32 = vunpack.i.h.bf16 %v6818_v42  ;;  %v6819_v17 = vunpack.i.l.bf16 %v6818_v42  ;;  %v6303_v42 = vor.u32 %v6582_v35, %v6302_v46  ;;  %v6568_v35 = vld [vmem:[#allocation8 + $0x100] sm:$0xf0] }
 0xde8   :  { %5055 = vmatpush.bf16.msra.mxu2 %v6307_v26  ;;  %v6238_v26 = vld [vmem:[#allocation8 + $0xe0] sm:$0xf] }
 0xde9   :  { %v4662_v50 = vsel %vm2103_vm12, %v4658_v62, %v6820_v32  ;;  %v4661_v18 = vsel %vm2103_vm12, %v4657_v40, %v6819_v17  ;;  %v6311_v32 = vor.u32 %v6583_v25, %v6310_v60  ;;  %5036 = vmatpush.bf16.msrb.mxu1 %v6303_v42  ;;  %v6290_v17 = vld [vmem:[#allocation8 + $0x150] sm:$0xf]  ;;  %v6578_v62 = vld [vmem:[#allocation8 + $0x154] sm:$0xf]  ;;  %v6564_v42 = vld [vmem:[#allocation8 + $0xe0] sm:$0xf0] }
 0xdea   :  { %v4665_v16 = vsel %vm2108_vm13, %v4661_v18, %v6829_v20  ;;  %v4666_v38 = vsel %vm2108_vm13, %v4662_v50, %v6830_v8  ;;  %v6292_v50 = vld [vmem:[#allocation8 + $0x15c] sm:$0xf0]  ;;  %v6298_v18 = vld [vmem:[#allocation8 + $0x158] sm:$0xf]  ;;  %v6563_v60 = vld [vmem:[#allocation8 + $0xdc] sm:$0xf] }
 0xdeb   :  { %5074 = vmatpush.bf16.msra.mxu3 %v6311_v32  ;;  %v6278_v20 = vld [vmem:[#allocation8 + $0x138] sm:$0xf]  ;;  %v6232_v25 = vld [vmem:[#allocation8 + $0xe4] sm:$0xf0]  ;;  %v6231_v32 = vor.u32 %v6564_v42, %v6230_v21  ;;  %v6606_v42 = vld [vmem:[#allocation10 + $0x170] sm:$0xff] }
 0xdee   :  { %v6833_v0 = vpop.permute.xlu1 %6832 }
 0xdef   :  { %v6835_v49 = vunpack.i.h.bf16 %v6833_v0  ;;  %v6834_v19 = vunpack.i.l.bf16 %v6833_v0  ;;  %v6579_v0 = vld [vmem:[#allocation8 + $0x158] sm:$0xf0] }
 0xdf0   :  { %v6291_v40 = vor.u32 %v6579_v0, %v6290_v17  ;;  %v6565_v17 = vld [vmem:[#allocation8 + $0xe8] sm:$0xf0] }
 0xdf1   :  { %v4669_v58 = vsel %vm2113_vm14, %v4665_v16, %v6834_v19  ;;  %v4670_v3 = vsel %vm2113_vm14, %v4666_v38, %v6835_v49  ;;  %v6580_v49 = vld [vmem:[#allocation8 + $0x160] sm:$0xf0]  ;;  %v6295_v19 = vor.u32 %v6578_v62, %v6292_v50  ;;  %v6575_v16 = vld [vmem:[#allocation8 + $0x13c] sm:$0xf]  ;;  %v6235_v62 = vor.u32 %v6563_v60, %v6232_v25  ;;  %v6561_v50 = vld [vmem:[#allocation8 + $0xc8] sm:$0xf0] }
 0xdf2   :  { %v6299_v8 = vor.u32 %v6580_v49, %v6298_v18  ;;  %5037 = vmatpush.bf16.msrb.mxu1 %v6291_v40  ;;  %v6218_v40 = vld [vmem:[#allocation8 + $0xc0] sm:$0xf]  ;;  %v6239_v49 = vor.u32 %v6565_v17, %v6238_v26  ;;  %v6589_v25 = vld [vmem:[#allocation10 + $0xe8] sm:$0xff] }
 0xdf3   :  { %5056 = vmatpush.bf16.msra.mxu2 %v6295_v19  ;;  %v6560_v19 = vld [vmem:[#allocation8 + $0xc4] sm:$0xf]  ;;  %v6597_v26 = vld [vmem:[#allocation10 + $0x128] sm:$0xff] }
 0xdf4   :  { %5075 = vmatpush.bf16.msra.mxu3 %v6299_v8  ;;  %v6220_v8 = vld [vmem:[#allocation8 + $0xcc] sm:$0xf0] }
 0xe0c   :  { %v6838_v34 = vpop.permute.xlu2 %6837 }
 0xe0d   :  { %v6840_v63 = vunpack.i.h.bf16 %v6838_v34  ;;  %v6839_v7 = vunpack.i.l.bf16 %v6838_v34  ;;  %v6576_v34 = vld [vmem:[#allocation8 + $0x140] sm:$0xf0] }
 0xe0e   :  { %v6279_v38 = vor.u32 %v6576_v34, %v6278_v20  ;;  %v6226_v20 = vld [vmem:[#allocation8 + $0xc8] sm:$0xf]  ;;  %v6562_v34 = vld [vmem:[#allocation8 + $0xd0] sm:$0xf0] }
 0xe0f   :  { %v4673_v2 = vsel %vm2118_vm15, %v4669_v58, %v6839_v7  ;;  %v4674_v51 = vsel %vm2118_vm15, %v4670_v3, %v6840_v63  ;;  %v6280_v63 = vld [vmem:[#allocation8 + $0x144] sm:$0xf0]  ;;  %v6286_v7 = vld [vmem:[#allocation8 + $0x140] sm:$0xf]  ;;  %v6577_v58 = vld [vmem:[#allocation8 + $0x148] sm:$0xf0] }
 0xe10   :  { %v6213_v43 = vpack.c.bf16 %v4674_v51, %v4673_v2  ;;  %v6283_v3 = vor.u32 %v6575_v16, %v6280_v63  ;;  %v6287_v2 = vor.u32 %v6577_v58, %v6286_v7  ;;  %5038 = vmatpush.bf16.msrb.mxu1 %v6279_v38  ;;  %v6266_v51 = vld [vmem:[#allocation8 + $0x120] sm:$0xf]  ;;  %v6219_v63 = vor.u32 %v6561_v50, %v6218_v40 }
 0xe11   :  { %v6223_v58 = vor.u32 %v6560_v19, %v6220_v8 }
 0xe12   :  { %6214 = vmatmul.msk.bf16.gmra.mxu0 %vm8134_vm1, %v6213_v43  ;;  %5057 = vmatpush.bf16.msra.mxu2 %v6283_v3  ;;  %v6573_v43 = vld [vmem:[#allocation8 + $0x128] sm:$0xf0]  ;;  %v6227_v3 = vor.u32 %v6562_v34, %v6226_v20 }
 0xe13   :  { %5076 = vmatpush.bf16.msra.mxu3 %v6287_v2 }
 0xe62   :  { %v4756_v39 = vpop.f32.mrf.mxu0 }
 0xe63   :  { %v4757_v6 = vadd.f32 %v4756_v39, %v4698_v45  ;;  %v6267_v39 = vor.u32 %v6573_v43, %v6266_v51 }
 0xe65   :  { %v8889_v59 = vadd.f32 %v4757_v6, %v8217_v36  ;;  %v6268_v6 = vld [vmem:[#allocation8 + $0x12c] sm:$0xf0]  ;;  %5039 = vmatpush.bf16.msrb.mxu1 %v6267_v39 }
 0xe67   :  { %4770 = vadd.xlane.f32.xlu1 %v8889_v59 }
 0xe6a   :  { %v4758_v37 = vpop.f32.mrf.mxu0 }
 0xe6b   :  { %v4759_v52 = vadd.f32 %v4758_v37, %v4698_v45  ;;  %v6274_v37 = vld [vmem:[#allocation8 + $0x128] sm:$0xf] }
 0xe6d   :  { %v8893_v10 = vadd.f32 %v4759_v52, %v8221_v23  ;;  %v6574_v52 = vld [vmem:[#allocation8 + $0x130] sm:$0xf0] }
 0xe6f   :  { %4772 = vadd.xlane.f32.xlu0 %v8893_v10 }
 0xe8f   :  { %v4761_v5 = vpop.f32.mrf.mxu0 }
 0xe90   :  { %v4762_v12 = vadd.f32 %v4761_v5, %v4698_v45 }
 0xe92   :  { %v8897_v13 = vadd.f32 %v4762_v12, %v8225_v15  ;;  %v6275_v12 = vor.u32 %v6574_v52, %v6274_v37 }
 0xe94   :  { %4774 = vadd.xlane.f32.xlu2 %v8897_v13  ;;  %5077 = vmatpush.bf16.msra.mxu3 %v6275_v12 }
 0xe97   :  { %v4763_v22 = vpop.f32.mrf.mxu0 }
 0xe98   :  { %v4764_v41 = vadd.f32 %v4763_v22, %v4698_v45  ;;  %v6572_v45 = vld [vmem:[#allocation8 + $0x124] sm:$0xf] }
 0xe99   :  { %v6271_v5 = vor.u32 %v6572_v45, %v6268_v6 }
 0xe9a   :  { %v8901_v36 = vadd.f32 %v4764_v41, %v8229_v54  ;;  %v6254_v41 = vld [vmem:[#allocation8 + $0x108] sm:$0xf] }
 0xe9b   :  { %5058 = vmatpush.bf16.msra.mxu2 %v6271_v5 }
 0xe9c   :  { %4776 = vadd.xlane.f32.xlu1 %v8901_v36 }
 0xeda   :  { %v4771_v53 = vpop.xlane.xlu1 %4770 }
 0xedb   :  { %v4778_v56 = vmul.f32 0.010416667, %v4771_v53  ;;  %v6570_v53 = vld [vmem:[#allocation8 + $0x110] sm:$0xf0] }
 0xedd   :  { %v4782_v23 = vsub.f32 %v8889_v59, %v4778_v56  ;;  %v6569_v56 = vld [vmem:[#allocation8 + $0x10c] sm:$0xf] }
 0xedf   :  { %v8906_v28 = vmul.f32 %v7400_v33, %v4782_v23 }
 0xee1   :  { %v4790_v15 = vmul.f32 %v8906_v28, %v8906_v28 }
 0xee2   :  { %v4773_v47 = vpop.xlane.xlu0 %4772 }
 0xee3   :  { %v4779_v57 = vmul.f32 0.010416667, %v4773_v47  ;;  %4794 = vadd.xlane.f32.xlu0 %v4790_v15  ;;  %v6255_v15 = vor.u32 %v6570_v53, %v6254_v41  ;;  %v6256_v47 = vld [vmem:[#allocation8 + $0x114] sm:$0xf0] }
 0xee5   :  { %v4783_v55 = vsub.f32 %v8893_v10, %v4779_v57  ;;  %v6262_v57 = vld [vmem:[#allocation8 + $0x110] sm:$0xf]  ;;  %5040 = vmatpush.bf16.msrb.mxu1 %v6255_v15 }
 0xee7   :  { %v8912_v54 = vmul.f32 %v7400_v33, %v4783_v55  ;;  %v6259_v55 = vor.u32 %v6569_v56, %v6256_v47 }
 0xee9   :  { %v4791_v11 = vmul.f32 %v8912_v54, %v8912_v54  ;;  %5059 = vmatpush.bf16.msra.mxu2 %v6259_v55 }
 0xeeb   :  { %4796 = vadd.xlane.f32.xlu2 %v4791_v11  ;;  %v6571_v11 = vld [vmem:[#allocation8 + $0x118] sm:$0xf0] }
 0xf07   :  { %v4775_v27 = vpop.xlane.xlu2 %4774 }
 0xf08   :  { %v4780_v30 = vmul.f32 0.010416667, %v4775_v27 }
 0xf0a   :  { %v4784_v14 = vsub.f32 %v8897_v13, %v4780_v30  ;;  %v6263_v30 = vor.u32 %v6571_v11, %v6262_v57 }
 0xf0c   :  { %v8918_v9 = vmul.f32 %v7400_v33, %v4784_v14  ;;  %v6242_v14 = vld [vmem:[#allocation8 + $0xf0] sm:$0xf]  ;;  %5078 = vmatpush.bf16.msra.mxu3 %v6263_v30 }
 0xf0e   :  { %v4792_v44 = vmul.f32 %v8918_v9, %v8918_v9 }
 0xf0f   :  { %v4777_v31 = vpop.xlane.xlu1 %4776 }
 0xf10   :  { %v4781_v29 = vmul.f32 0.010416667, %v4777_v31  ;;  %4798 = vadd.xlane.f32.xlu1 %v4792_v44  ;;  %v6567_v44 = vld [vmem:[#allocation8 + $0xf8] sm:$0xf0] }
 0xf11   :  { %v6243_v31 = vor.u32 %v6567_v44, %v6242_v14 }
 0xf12   :  { %v4785_v1 = vsub.f32 %v8901_v36, %v4781_v29  ;;  %v6566_v29 = vld [vmem:[#allocation8 + $0xf4] sm:$0xf] }
 0xf13   :  { %5041 = vmatpush.bf16.msrb.mxu1 %v6243_v31  ;;  %v6591_v31 = vld [vmem:[#allocation10 + $0xf8] sm:$0xff] }
 0xf14   :  { %v8924_v61 = vmul.f32 %v7400_v33, %v4785_v1  ;;  %v6244_v1 = vld [vmem:[#allocation8 + $0xfc] sm:$0xf0]  ;;  %5305 = vmatpush.bf16.msra.mxu0 %v6591_v31 }
 0xf15   :  { %v6247_v46 = vor.u32 %v6566_v29, %v6244_v1  ;;  %v6599_v29 = vld [vmem:[#allocation10 + $0x138] sm:$0xff] }
 0xf16   :  { %v4793_v48 = vmul.f32 %v8924_v61, %v8924_v61 }
 0xf17   :  { %5060 = vmatpush.bf16.msra.mxu2 %v6247_v46  ;;  %5042 = vmatpush.bf16.msrb.mxu1 %v6231_v32  ;;  %v6598_v46 = vld [vmem:[#allocation10 + $0x130] sm:$0xff]  ;;  %v6605_v32 = vld [vmem:[#allocation10 + $0x168] sm:$0xff] }
 0xf18   :  { %4800 = vadd.xlane.f32.xlu0 %v4793_v48  ;;  %v6250_v48 = vld [vmem:[#allocation8 + $0xf8] sm:$0xf] }
 0xf19   :  { %v6251_v24 = vor.u32 %v6568_v35, %v6250_v48  ;;  %v6607_v48 = vld [vmem:[#allocation10 + $0x178] sm:$0xff] }
 0xf1b   :  { %5079 = vmatpush.bf16.msra.mxu3 %v6251_v24  ;;  %5061 = vmatpush.bf16.msra.mxu2 %v6235_v62  ;;  %v6588_v62 = vld [vmem:[#allocation10 + $0xe0] sm:$0xff] }
 0xf1c   :  { %5043 = vmatpush.bf16.msrb.mxu1 %v6219_v63 }
 0xf1f   :  { %5080 = vmatpush.bf16.msra.mxu3 %v6239_v49  ;;  %5062 = vmatpush.bf16.msra.mxu2 %v6223_v58 }
 0xf20   :  { %5324 = vmatpush.bf16.msra.mxu1 %v6599_v29 }
 0xf23   :  { %5081 = vmatpush.bf16.msra.mxu3 %v6227_v3  ;;  %5343 = vmatpush.bf16.msrb.mxu2 %v6607_v48 }
 0xf24   :  { %5325 = vmatpush.bf16.msra.mxu1 %v6598_v46 }
 0xf27   :  { %5344 = vmatpush.bf16.msrb.mxu2 %v6606_v42 }
 0xf28   :  { %5326 = vmatpush.bf16.msra.mxu1 %v6597_v26 }
 0xf2b   :  { %5345 = vmatpush.bf16.msrb.mxu2 %v6605_v32 }
 0xf56   :  { %v4795_v22 = vpop.xlane.xlu0 %4794 }
 0xf57   :  { %v4802_v23 = vmul.f32 0.010416667, %v4795_v22  ;;  %v8929_v22 = vperm.slane %v8885_v4, 2 }
 0xf59   :  { %v4806_v27 = vadd.f32 1e-05, %v4802_v23  ;;  %v8933_v23 = vperm.slane %v8885_v4, 3 }
 0xf5b   :  { %7057 = vrsqrt.f32 %v4806_v27  ;;  %vm4816_vm12 = vweird.f32 %v4806_v27 }
 0xf5e   :  { %v4797_v0 = vpop.xlane.xlu2 %4796 }
 0xf5f   :  { %v4803_v18 = vmul.f32 0.010416667, %v4797_v0 }
 0xf61   :  { %v7058_v16 = vpop.eup %7057  ;;  %v4807_v38 = vadd.f32 1e-05, %v4803_v18 }
 0xf62   :  { %v4811_v7 = vmul.f32 %v7058_v16, %v4806_v27  ;;  %vm4817_vm3 = vweird.f32 %v7058_v16 }
 0xf63   :  { %7059 = vrsqrt.f32 %v4807_v38  ;;  %vm4818_vm13 = vmor %vm4816_vm12, %vm4817_vm3  ;;  %vm4826_vm15 = vweird.f32 %v4807_v38 }
 0xf64   :  { %v4812_v2 = vmul.f32 %v7058_v16, %v4811_v7 }
 0xf66   :  { %v4813_v51 = vmul.f32 0.5, %v4812_v2 }
 0xf68   :  { %v4814_v43 = vsub.f32 1.5, %v4813_v51 }
 0xf69   :  { %v7060_v45 = vpop.eup %7059 }
 0xf6a   :  { %v4815_v39 = vmul.f32 %v7058_v16, %v4814_v43  ;;  %v4821_v6 = vmul.f32 %v7060_v45, %v4807_v38  ;;  %vm4827_vm14 = vweird.f32 %v7060_v45  ;;  %v6587_v43 = vld [vmem:[#allocation10 + $0xd8] sm:$0xff] }
 0xf6b   :  { %vm4828_vm1 = vmor %vm4826_vm15, %vm4827_vm14 }
 0xf6c   :  { %v4822_v37 = vmul.f32 %v7060_v45, %v4821_v6  ;;  %v4819_v52 = vsel %vm4818_vm13, %v7058_v16, %v4815_v39  ;;  %v6586_v39 = vld [vmem:[#allocation10 + $0xd0] sm:$0xff]  ;;  %v6603_v6 = vld [vmem:[#allocation10 + $0x158] sm:$0xff] }
 0xf6d   :  { %v4850_v41 = vmul.f32 %v4819_v52, %v8906_v28  ;;  %v6594_v52 = vld [vmem:[#allocation10 + $0x110] sm:$0xff] }
 0xf6e   :  { %v4823_v5 = vmul.f32 0.5, %v4822_v37  ;;  %v6585_v37 = vld [vmem:[#allocation10 + $0xc8] sm:$0xff] }
 0xf6f   :  { %v4855_v15 = vmul.f32 %v8929_v22, %v4850_v41  ;;  %v6601_v41 = vld [vmem:[#allocation10 + $0x148] sm:$0xff] }
 0xf70   :  { %v4824_v12 = vsub.f32 1.5, %v4823_v5  ;;  %v6602_v5 = vld [vmem:[#allocation10 + $0x150] sm:$0xff] }
 0xf71   :  { %v4860_v55 = vadd.f32 %v8933_v23, %v4855_v15 }
 0xf72   :  { %v4825_v53 = vmul.f32 %v7060_v45, %v4824_v12  ;;  %v6584_v12 = vld [vmem:[#allocation10 + $0xc0] sm:$0xff] }
 0xf74   :  { %v4829_v56 = vsel %vm4828_vm1, %v7060_v45, %v4825_v53  ;;  %v6604_v45 = vld [vmem:[#allocation10 + $0x160] sm:$0xff] }
 0xf75   :  { %v4851_v47 = vmul.f32 %v4829_v56, %v8912_v54  ;;  %v6590_v54 = vld [vmem:[#allocation10 + $0xf0] sm:$0xff]  ;;  %5346 = vmatpush.bf16.msrb.mxu2 %v6604_v45  ;;  %v6592_v53 = vld [vmem:[#allocation10 + $0x100] sm:$0xff] }
 0xf76   :  { %5306 = vmatpush.bf16.msra.mxu0 %v6590_v54  ;;  %v6600_v56 = vld [vmem:[#allocation10 + $0x140] sm:$0xff] }
 0xf77   :  { %v4856_v57 = vmul.f32 %v8929_v22, %v4851_v47 }
 0xf79   :  { %v4861_v11 = vadd.f32 %v8933_v23, %v4856_v57  ;;  %5347 = vmatpush.bf16.msrb.mxu2 %v6603_v6 }
 0xf7a   :  { %5307 = vmatpush.bf16.msra.mxu0 %v6589_v25 }
 0xf7b   :  { %v4864_v27 = vpack.c.bf16 %v4861_v11, %v4860_v55 }
 0xf7d   :  { %5044 = vmatmul.bf16.vlgmr.msrb.gmra.mxu1 %v4864_v27  ;;  %5063 = vmatmul.bf16.vlgmr.msra.gmra.mxu2 %v4864_v27 }
 0xf7e   :  { %5082 = vmatmul.bf16.vlgmr.msra.gmra.mxu3 %v4864_v27  ;;  %5308 = vmatpush.bf16.msra.mxu0 %v6588_v62 }
 0xf7f   :  { %5348 = vmatpush.bf16.msrb.mxu2 %v6602_v5 }
 0xf82   :  { %5309 = vmatpush.bf16.msra.mxu0 %v6587_v43 }
 0xf83   :  { %v4799_v28 = vpop.xlane.xlu1 %4798  ;;  %5349 = vmatpush.bf16.msrb.mxu2 %v6601_v41 }
 0xf84   :  { %v4804_v30 = vmul.f32 0.010416667, %v4799_v28 }
 0xf86   :  { %v4808_v14 = vadd.f32 1e-05, %v4804_v30  ;;  %5310 = vmatpush.bf16.msra.mxu0 %v6586_v39  ;;  %v5160_v39 = vperm.slane %v8885_v4, 5 }
 0xf87   :  { %5350 = vmatpush.bf16.msrb.mxu2 %v6600_v56 }
 0xf88   :  { %7061 = vrsqrt.f32 %v4808_v14  ;;  %vm4836_vm4 = vweird.f32 %v4808_v14 }
 0xf8a   :  { %5311 = vmatpush.bf16.msra.mxu0 %v6585_v37 }
 0xf8b   :  { %v4801_v44 = vpop.xlane.xlu0 %4800 }
 0xf8c   :  { %v4805_v1 = vmul.f32 0.010416667, %v4801_v44 }
 0xf8e   :  { %v7062_v35 = vpop.eup %7061  ;;  %v4809_v21 = vadd.f32 1e-05, %v4805_v1  ;;  %5312 = vmatpush.bf16.msra.mxu0 %v6584_v12 }
 0xf8f   :  { %v4831_v24 = vmul.f32 %v7062_v35, %v4808_v14  ;;  %vm4837_vm2 = vweird.f32 %v7062_v35 }
 0xf90   :  { %7063 = vrsqrt.f32 %v4809_v21  ;;  %vm4838_vm5 = vmor %vm4836_vm4, %vm4837_vm2  ;;  %vm4846_vm7 = vweird.f32 %v4809_v21 }
 0xf91   :  { %v4832_v60 = vmul.f32 %v7062_v35, %v4831_v24 }
 0xf93   :  { %v4833_v17 = vmul.f32 0.5, %v4832_v60 }
 0xf95   :  { %v4834_v0 = vsub.f32 1.5, %v4833_v17 }
 0xf96   :  { %v7064_v40 = vpop.eup %7063 }
 0xf97   :  { %v4835_v50 = vmul.f32 %v7062_v35, %v4834_v0  ;;  %v4841_v18 = vmul.f32 %v7064_v40, %v4809_v21  ;;  %vm4847_vm6 = vweird.f32 %v7064_v40 }
 0xf98   :  { %vm4848_vm8 = vmor %vm4846_vm7, %vm4847_vm6 }
 0xf99   :  { %v4842_v49 = vmul.f32 %v7064_v40, %v4841_v18  ;;  %v4839_v19 = vsel %vm4838_vm5, %v7062_v35, %v4835_v50 }
 0xf9a   :  { %v4852_v34 = vmul.f32 %v4839_v19, %v8918_v9  ;;  %v6596_v9 = vld [vmem:[#allocation10 + $0x120] sm:$0xff] }
 0xf9b   :  { %v4843_v8 = vmul.f32 0.5, %v4842_v49  ;;  %5327 = vmatpush.bf16.msra.mxu1 %v6596_v9 }
 0xf9c   :  { %v4857_v7 = vmul.f32 %v8929_v22, %v4852_v34 }
 0xf9d   :  { %v4844_v20 = vsub.f32 1.5, %v4843_v8 }
 0xf9e   :  { %v4862_v3 = vadd.f32 %v8933_v23, %v4857_v7 }
 0xf9f   :  { %v4845_v16 = vmul.f32 %v7064_v40, %v4844_v20 }
 0xfa1   :  { %v4849_v38 = vsel %vm4848_vm8, %v7064_v40, %v4845_v16 }
 0xfa2   :  { %v4853_v63 = vmul.f32 %v4849_v38, %v8924_v61  ;;  %v6595_v61 = vld [vmem:[#allocation10 + $0x118] sm:$0xff] }
 0xfa3   :  { %5328 = vmatpush.bf16.msra.mxu1 %v6595_v61 }
 0xfa4   :  { %v4858_v58 = vmul.f32 %v8929_v22, %v4853_v63  ;;  %v6593_v22 = vld [vmem:[#allocation10 + $0x108] sm:$0xff] }
 0xfa6   :  { %v4863_v2 = vadd.f32 %v8933_v23, %v4858_v58  ;;  %v6215_v23 = vld [vmem:[%s8990_s6 + $0x3] sm:$0x7] }
 0xfa7   :  { %5329 = vmatpush.bf16.msra.mxu1 %v6594_v52  ;;  %v4902_v47 = vperm.slane %v6215_v23, 0  ;;  %v4903_v28 = vperm.slane %v6215_v23, 1  ;;  %v4904_v14 = vperm.slane %v6215_v23, 2 }
 0xfa8   :  { %v4865_v51 = vpack.c.bf16 %v4863_v2, %v4862_v3 }
 0xfaa   :  { %5049 = vmatmul.bf16.gmra.mxu1 %v4865_v51  ;;  %5068 = vmatmul.bf16.gmra.mxu2 %v4865_v51 }
 0xfab   :  { %5087 = vmatmul.bf16.gmra.mxu3 %v4865_v51  ;;  %5330 = vmatpush.bf16.msra.mxu1 %v6593_v22 }
 0xfaf   :  { %5331 = vmatpush.bf16.msra.mxu1 %v6592_v53 }
 0xffa   :  { %v5045_v15 = vpop.f32.mrf.mxu1 }
 0xffb   :  { %v5046_v55 = vadd.f32 %v5045_v15, %v4902_v47 }
 0xffd   :  { %v5093_v44 = vmax.f32 %v5046_v55, 0.0 }
0x1000   :  { %v5064_v57 = vpop.f32.mrf.mxu2 }
0x1001   :  { %v5083_v11 = vpop.f32.mrf.mxu3  ;;  %v5065_v29 = vadd.f32 %v5064_v57, %v4903_v28 }
0x1002   :  { %v5047_v27 = vpop.f32.mrf.mxu1  ;;  %v5084_v48 = vadd.f32 %v5083_v11, %v4904_v14 }
0x1003   :  { %v5048_v30 = vadd.f32 %v5047_v27, %v4902_v47  ;;  %v5094_v42 = vmax.f32 %v5065_v29, 0.0 }
0x1004   :  { %v5095_v60 = vmax.f32 %v5084_v48, 0.0 }
0x1005   :  { %v5096_v31 = vmax.f32 %v5048_v30, 0.0 }
0x1007   :  { %v5105_v1 = vpack.c.bf16 %v5096_v31, %v5093_v44 }
0x1008   :  { %v5066_v54 = vpop.f32.mrf.mxu2 }
0x1009   :  { %v5067_v46 = vadd.f32 %v5066_v54, %v4903_v28  ;;  %v5085_v35 = vpop.f32.mrf.mxu3  ;;  %5313 = vmatmul.bf16.vlgmr.msra.gmra.mxu0 %v5105_v1 }
0x100a   :  { %v5086_v21 = vadd.f32 %v5085_v35, %v4904_v14 }
0x100b   :  { %v5097_v24 = vmax.f32 %v5067_v46, 0.0 }
0x100c   :  { %v5098_v25 = vmax.f32 %v5086_v21, 0.0 }
0x100d   :  { %v5106_v26 = vpack.c.bf16 %v5097_v24, %v5094_v42 }
0x100e   :  { %v5107_v32 = vpack.c.bf16 %v5098_v25, %v5095_v60 }
0x100f   :  { %5332 = vmatmul.bf16.vlgmr.msra.gmra.mxu1 %v5106_v26 }
0x1010   :  { %5351 = vmatmul.bf16.vlgmr.msrb.gmra.mxu2 %v5107_v32 }
0x1027   :  { %v5050_v17 = vpop.f32.mrf.mxu1 }
0x1028   :  { %v5051_v62 = vadd.f32 %v5050_v17, %v4902_v47 }
0x102a   :  { %v5099_v49 = vmax.f32 %v5051_v62, 0.0 }
0x102d   :  { %v5069_v0 = vpop.f32.mrf.mxu2 }
0x102e   :  { %v5088_v40 = vpop.f32.mrf.mxu3  ;;  %v5070_v8 = vadd.f32 %v5069_v0, %v4903_v28 }
0x102f   :  { %v5052_v50 = vpop.f32.mrf.mxu1  ;;  %v5089_v34 = vadd.f32 %v5088_v40, %v4904_v14 }
0x1030   :  { %v5053_v18 = vadd.f32 %v5052_v50, %v4902_v47  ;;  %v5100_v58 = vmax.f32 %v5070_v8, 0.0  ;;  %v6614_v8 = vld [vmem:[#allocation11 + $0x30] sm:$0xff] }
0x1031   :  { %v5101_v2 = vmax.f32 %v5089_v34, 0.0  ;;  %v6612_v34 = vld [vmem:[#allocation11 + $0x20] sm:$0xff] }
0x1032   :  { %v5102_v19 = vmax.f32 %v5053_v18, 0.0 }
0x1034   :  { %v5108_v20 = vpack.c.bf16 %v5102_v19, %v5099_v49  ;;  %v6615_v19 = vld [vmem:[#allocation11 + $0x38] sm:$0xff] }
0x1035   :  { %v5071_v16 = vpop.f32.mrf.mxu2  ;;  %5528 = vmatpush.bf16.msrb.mxu3 %v6615_v19 }
0x1036   :  { %v5072_v38 = vadd.f32 %v5071_v16, %v4903_v28  ;;  %v5090_v63 = vpop.f32.mrf.mxu3  ;;  %5318 = vmatmul.bf16.gmra.mxu0 %v5108_v20  ;;  %v6613_v20 = vld [vmem:[#allocation11 + $0x28] sm:$0xff] }
0x1037   :  { %v5091_v7 = vadd.f32 %v5090_v63, %v4904_v14 }
0x1038   :  { %v5103_v3 = vmax.f32 %v5072_v38, 0.0  ;;  %v6611_v38 = vld [vmem:[#allocation11 + $0x18] sm:$0xff] }
0x1039   :  { %v5104_v51 = vmax.f32 %v5091_v7, 0.0  ;;  %5529 = vmatpush.bf16.msrb.mxu3 %v6614_v8 }
0x103a   :  { %v5109_v43 = vpack.c.bf16 %v5103_v3, %v5100_v58  ;;  %v6610_v58 = vld [vmem:[#allocation11 + $0x10] sm:$0xff] }
0x103b   :  { %v5110_v9 = vpack.c.bf16 %v5104_v51, %v5101_v2  ;;  %v6608_v51 = vld [vmem:[#allocation11] sm:$0xff] }
0x103c   :  { %5337 = vmatmul.bf16.gmra.mxu1 %v5109_v43 }
0x103d   :  { %5356 = vmatmul.bf16.gmra.mxu2 %v5110_v9  ;;  %5530 = vmatpush.bf16.msrb.mxu3 %v6613_v20 }
0x1041   :  { %5531 = vmatpush.bf16.msrb.mxu3 %v6612_v34 }
0x1045   :  { %5532 = vmatpush.bf16.msrb.mxu3 %v6611_v38 }
0x1049   :  { %5533 = vmatpush.bf16.msrb.mxu3 %v6610_v58 }
0x1086   :  { %v5314_v45 = vpop.f32.mrf.mxu0 }
0x1087   :  { %v5315_v6 = vadd.f32 %v5314_v45, %v5160_v39 }
0x108c   :  { %v5333_v61 = vpop.f32.mrf.mxu1 }
0x108d   :  { %v5334_v37 = vadd.f32 %v5333_v61, %v5315_v6 }
0x108e   :  { %v5316_v12 = vpop.f32.mrf.mxu0 }
0x108f   :  { %v5317_v53 = vadd.f32 %v5316_v12, %v5160_v39 }
0x1093   :  { %v5352_v52 = vpop.f32.mrf.mxu2 }
0x1094   :  { %v5353_v5 = vadd.f32 %v5352_v52, %v5334_v37  ;;  %v5335_v41 = vpop.f32.mrf.mxu1 }
0x1095   :  { %v5336_v56 = vadd.f32 %v5335_v41, %v5317_v53 }
0x1096   :  { %v5362_v22 = vadd.f32 %v5353_v5, %v8889_v59 }
0x1098   :  { %5367 = vadd.xlane.f32.xlu2 %v5362_v22 }
0x109b   :  { %v5354_v23 = vpop.f32.mrf.mxu2 }
0x109c   :  { %v5355_v15 = vadd.f32 %v5354_v23, %v5336_v56 }
0x109e   :  { %v5363_v47 = vadd.f32 %v5355_v15, %v8893_v10 }
0x10a0   :  { %5369 = vadd.xlane.f32.xlu1 %v5363_v47 }
0x10b3   :  { %v5319_v57 = vpop.f32.mrf.mxu0 }
0x10b4   :  { %v5320_v4 = vadd.f32 %v5319_v57, %v5160_v39 }
0x10b9   :  { %v5338_v55 = vpop.f32.mrf.mxu1 }
0x10ba   :  { %v5339_v11 = vadd.f32 %v5338_v55, %v5320_v4 }
0x10bb   :  { %v5321_v30 = vpop.f32.mrf.mxu0 }
0x10bc   :  { %v5322_v59 = vadd.f32 %v5321_v30, %v5160_v39 }
0x10c0   :  { %v5357_v27 = vpop.f32.mrf.mxu2 }
0x10c1   :  { %v5358_v28 = vadd.f32 %v5357_v27, %v5339_v11  ;;  %v5340_v44 = vpop.f32.mrf.mxu1 }
0x10c2   :  { %v5341_v31 = vadd.f32 %v5340_v44, %v5322_v59 }
0x10c3   :  { %v5364_v14 = vadd.f32 %v5358_v28, %v8897_v13 }
0x10c5   :  { %5371 = vadd.xlane.f32.xlu0 %v5364_v14 }
0x10c8   :  { %v5359_v29 = vpop.f32.mrf.mxu2 }
0x10c9   :  { %v5360_v1 = vadd.f32 %v5359_v29, %v5341_v31 }
0x10cb   :  { %v5365_v48 = vadd.f32 %v5360_v1, %v8901_v36 }
0x10cd   :  { %5373 = vadd.xlane.f32.xlu2 %v5365_v48 }
0x110b   :  { %v5368_v10 = vpop.xlane.xlu2 %5367 }
0x110c   :  { %v5375_v54 = vmul.f32 0.010416667, %v5368_v10 }
0x110e   :  { %v5379_v46 = vsub.f32 %v5362_v22, %v5375_v54  ;;  %v5366_v22 = vld [vmem:[%s8993_s9] sm:$0x7]  ;;  %s7273_s9 = smov [#allocation13]  }
0x110f   :  { %v5451_v23 = vperm.slane %v5366_v22, 0  ;;  %v5456_v55 = vperm.slane %v5366_v22, 1  ;;  %v5479_v34 = vperm.slane %v5366_v22, 2  ;;  %s5555_s29 = sshll.u32 %s7273_s9, 4  ;;  %s5556_s29 = int_to_ptr.vmem [resolvable:$true] %s5555_s29 }
0x1110   :  { %v8955_v35 = vmul.f32 %v7400_v33, %v5379_v46 }
0x1112   :  { %v5387_v21 = vmul.f32 %v8955_v35, %v8955_v35 }
0x1113   :  { %v5370_v42 = vpop.xlane.xlu1 %5369 }
0x1114   :  { %v5376_v13 = vmul.f32 0.010416667, %v5370_v42  ;;  %5391 = vadd.xlane.f32.xlu1 %v5387_v21 }
0x1116   :  { %v5380_v24 = vsub.f32 %v5363_v47, %v5376_v13 }
0x1118   :  { %v8960_v60 = vmul.f32 %v7400_v33, %v5380_v24 }
0x111a   :  { %v5388_v36 = vmul.f32 %v8960_v60, %v8960_v60 }
0x111c   :  { %5393 = vadd.xlane.f32.xlu0 %v5388_v36 }
0x1138   :  { %v5372_v25 = vpop.xlane.xlu0 %5371 }
0x1139   :  { %v5377_v26 = vmul.f32 0.010416667, %v5372_v25 }
0x113b   :  { %v5381_v32 = vsub.f32 %v5364_v14, %v5377_v26 }
0x113d   :  { %v8965_v17 = vmul.f32 %v7400_v33, %v5381_v32 }
0x113f   :  { %v5389_v0 = vmul.f32 %v8965_v17, %v8965_v17 }
0x1140   :  { %v5374_v62 = vpop.xlane.xlu2 %5373 }
0x1141   :  { %v5378_v40 = vmul.f32 0.010416667, %v5374_v62  ;;  %5395 = vadd.xlane.f32.xlu2 %v5389_v0 }
0x1143   :  { %v5382_v50 = vsub.f32 %v5365_v48, %v5378_v40 }
0x1145   :  { %v8970_v18 = vmul.f32 %v7400_v33, %v5382_v50  ;;  %v6609_v33 = vld [vmem:[#allocation11 + $0x8] sm:$0xff] }
0x1146   :  { %5534 = vmatpush.bf16.msrb.mxu3 %v6609_v33 }
0x1147   :  { %v5390_v49 = vmul.f32 %v8970_v18, %v8970_v18 }
0x1149   :  { %5397 = vadd.xlane.f32.xlu1 %v5390_v49 }
0x114a   :  { %5535 = vmatpush.bf16.msrb.mxu3 %v6608_v51 }
0x1187   :  { %v5392_v16 = vpop.xlane.xlu1 %5391 }
0x1188   :  { %v5399_v63 = vmul.f32 0.010416667, %v5392_v16 }
0x118a   :  { %v5403_v7 = vadd.f32 1e-05, %v5399_v63 }
0x118c   :  { %7065 = vrsqrt.f32 %v5403_v7  ;;  %vm5413_vm10 = vweird.f32 %v5403_v7 }
0x118f   :  { %v5394_v3 = vpop.xlane.xlu0 %5393 }
0x1190   :  { %v5400_v2 = vmul.f32 0.010416667, %v5394_v3 }
0x1192   :  { %v7066_v43 = vpop.eup %7065  ;;  %v5404_v9 = vadd.f32 1e-05, %v5400_v2 }
0x1193   :  { %v5408_v45 = vmul.f32 %v7066_v43, %v5403_v7  ;;  %vm5414_vm9 = vweird.f32 %v7066_v43 }
0x1194   :  { %7067 = vrsqrt.f32 %v5404_v9  ;;  %vm5415_vm11 = vmor %vm5413_vm10, %vm5414_vm9  ;;  %vm5423_vm3 = vweird.f32 %v5404_v9 }
0x1195   :  { %v5409_v39 = vmul.f32 %v7066_v43, %v5408_v45 }
0x1197   :  { %v5410_v61 = vmul.f32 0.5, %v5409_v39 }
0x1199   :  { %v5411_v6 = vsub.f32 1.5, %v5410_v61 }
0x119a   :  { %v7068_v37 = vpop.eup %7067 }
0x119b   :  { %v5412_v52 = vmul.f32 %v7066_v43, %v5411_v6  ;;  %v5418_v5 = vmul.f32 %v7068_v37, %v5404_v9  ;;  %vm5424_vm0 = vweird.f32 %v7068_v37 }
0x119c   :  { %vm5425_vm12 = vmor %vm5423_vm3, %vm5424_vm0 }
0x119d   :  { %v5419_v12 = vmul.f32 %v7068_v37, %v5418_v5  ;;  %v5416_v41 = vsel %vm5415_vm11, %v7066_v43, %v5412_v52 }
0x119e   :  { %v5447_v15 = vmul.f32 %v5416_v41, %v8955_v35 }
0x119f   :  { %v5420_v53 = vmul.f32 0.5, %v5419_v12 }
0x11a0   :  { %v5452_v4 = vmul.f32 %v5451_v23, %v5447_v15 }
0x11a1   :  { %v5421_v56 = vsub.f32 1.5, %v5420_v53 }
0x11a2   :  { %v5457_v28 = vadd.f32 %v5456_v55, %v5452_v4 }
0x11a3   :  { %v5422_v47 = vmul.f32 %v7068_v37, %v5421_v56 }
0x11a5   :  { %v5426_v57 = vsel %vm5425_vm12, %v7068_v37, %v5422_v47 }
0x11a6   :  { %v5448_v11 = vmul.f32 %v5426_v57, %v8960_v60 }
0x11a8   :  { %v5453_v27 = vmul.f32 %v5451_v23, %v5448_v11 }
0x11aa   :  { %v5458_v30 = vadd.f32 %v5456_v55, %v5453_v27 }
0x11ac   :  { %v5461_v14 = vpack.c.bf16 %v5458_v30, %v5457_v28 }
0x11ae   :  { %5536 = vmatmul.bf16.vlgmr.msrb.gmra.mxu3 %v5461_v14 }
0x11b4   :  { %v5396_v44 = vpop.xlane.xlu2 %5395 }
0x11b5   :  { %v5401_v59 = vmul.f32 0.010416667, %v5396_v44 }
0x11b7   :  { %v5405_v31 = vadd.f32 1e-05, %v5401_v59 }
0x11b9   :  { %7069 = vrsqrt.f32 %v5405_v31  ;;  %vm5433_vm14 = vweird.f32 %v5405_v31 }
0x11bc   :  { %v5398_v29 = vpop.xlane.xlu1 %5397 }
0x11bd   :  { %v5402_v1 = vmul.f32 0.010416667, %v5398_v29 }
0x11bf   :  { %v7070_v48 = vpop.eup %7069  ;;  %v5406_v10 = vadd.f32 1e-05, %v5402_v1 }
0x11c0   :  { %v5428_v54 = vmul.f32 %v7070_v48, %v5405_v31  ;;  %vm5434_vm13 = vweird.f32 %v7070_v48 }
0x11c1   :  { %7071 = vrsqrt.f32 %v5406_v10  ;;  %vm5435_vm15 = vmor %vm5433_vm14, %vm5434_vm13  ;;  %vm5443_vm2 = vweird.f32 %v5406_v10 }
0x11c2   :  { %v5429_v46 = vmul.f32 %v7070_v48, %v5428_v54 }
0x11c4   :  { %v5430_v35 = vmul.f32 0.5, %v5429_v46 }
0x11c6   :  { %v5431_v21 = vsub.f32 1.5, %v5430_v35 }
0x11c7   :  { %v7072_v42 = vpop.eup %7071 }
0x11c8   :  { %v5432_v13 = vmul.f32 %v7070_v48, %v5431_v21  ;;  %v5438_v24 = vmul.f32 %v7072_v42, %v5406_v10  ;;  %vm5444_vm1 = vweird.f32 %v7072_v42 }
0x11c9   :  { %vm5445_vm4 = vmor %vm5443_vm2, %vm5444_vm1 }
0x11ca   :  { %v5439_v60 = vmul.f32 %v7072_v42, %v5438_v24  ;;  %v5436_v36 = vsel %vm5435_vm15, %v7070_v48, %v5432_v13 }
0x11cb   :  { %v5449_v32 = vmul.f32 %v5436_v36, %v8965_v17 }
0x11cc   :  { %v5440_v25 = vmul.f32 0.5, %v5439_v60 }
0x11cd   :  { %v5454_v50 = vmul.f32 %v5451_v23, %v5449_v32 }
0x11ce   :  { %v5441_v26 = vsub.f32 1.5, %v5440_v25 }
0x11cf   :  { %v5459_v19 = vadd.f32 %v5456_v55, %v5454_v50 }
0x11d0   :  { %v5442_v0 = vmul.f32 %v7072_v42, %v5441_v26 }
0x11d2   :  { %v5446_v62 = vsel %vm5445_vm4, %v7072_v42, %v5442_v0 }
0x11d3   :  { %v5450_v40 = vmul.f32 %v5446_v62, %v8970_v18 }
0x11d5   :  { %v5455_v49 = vmul.f32 %v5451_v23, %v5450_v40 }
0x11d7   :  { %v5460_v8 = vadd.f32 %v5456_v55, %v5455_v49 }
0x11d9   :  { %v5462_v20 = vpack.c.bf16 %v5460_v8, %v5459_v19 }
0x11db   :  { %5541 = vmatmul.bf16.gmra.mxu3 %v5462_v20 }
0x1231   :  { %v5537_v16 = vpop.f32.mrf.mxu3 }
0x1232   :  { %v5538_v38 = vadd.f32 %v5537_v16, %v5479_v34 }
0x1234   :  { %5547 = vst [vmem:[#allocation13] sm:$0xff] %v5538_v38 }
0x1239   :  { %v5539_v63 = vpop.f32.mrf.mxu3 }
0x123a   :  { %v5540_v7 = vadd.f32 %v5539_v63, %v5479_v34 }
0x123c   :  { %5548 = vst [vmem:[#allocation13 + $0x8] sm:$0xff] %v5540_v7 }
0x125e   :  { %v5542_v17 = vpop.f32.mrf.mxu3 }
0x125f   :  { %v5543_v58 = vadd.f32 %v5542_v17, %v5479_v34 }
0x1261   :  { %5549 = vst [vmem:[#allocation13 + $0x10] sm:$0xff] %v5543_v58 }
0x1266   :  { %v5544_v18 = vpop.f32.mrf.mxu3 }
0x1267   :  { %v5545_v33 = vadd.f32 %v5544_v18, %v5479_v34 }
0x1269   :  { %5550 = vst [vmem:[#allocation13 + $0x18] sm:$0xff] %v5545_v33 }
0x126a   :  { %5563 = dma.vmem_to_hbm [thread:$0]  %s5556_s29, 512, %s5558_s3, [#allocation4], %s7274_s13, %s7274_s13, %s7275_s0  }
0x126b   :  { %7251 = dma.done.wait [#allocation4], 512  }
0x126c   :  { %7252 = vsyncadd [#allocation4], 4294966784 }
0x126d   :  { %5568 = vsyncpa [#allocation3], 1 }
0x126e   :  { %5569 = vsyncpa [#allocation6], 1 }
0x126f   :  { %5570 = vsyncpa [#allocation9], 1 }
0x1270   :  { %5571 = vsyncpa [#allocation12], 1 }
0x1271   :  { %5572 = vsyncpa [#allocation4], 1 }

</bundles_post_ra>
